<compile_context>
chip_gen: v6e
topology: v6e:2x2x1
jax: 0.10.0
libtpu: 0.0.40
codegen_flags: <defaults>
</compile_context>

<pallas_src>
import functools

import numpy as np
import jax
import jax.numpy as jnp
from jax.experimental import pallas as pl
from jax.experimental.pallas import tpu as pltpu

# ----------------------------- module constants -----------------------------
BATCH = 2
LATENT = 64                                   # latent_features
MID = 128                                     # Linear(latent, 128)
UNFLAT_C, UNFLAT_H, UNFLAT_W = 32, 5, 25      # nn.Unflatten(1, (32, 5, 25))
BN_EPS = 1e-5                                 # PyTorch BatchNorm2d default
# per ConvTranspose2d layer: (Cin, Cout, pad_h, pad_w); kernel 3x3, stride 2
CT_LAYERS = ((32, 16, 1, 1), (16, 8, 1, 1), (8, 1, 1, 0))


# ------------------------------ Pallas kernels -------------------------------
def _mlp_kernel(x_ref, w1_ref, b1_ref, w2_ref, b2_ref, o_ref):
    """relu(relu(x @ w1 + b1) @ w2 + b2), fused in one kernel."""
    h = jnp.dot(x_ref[...], w1_ref[...], preferred_element_type=jnp.float32)
    h = jnp.maximum(h + b1_ref[...], 0.0)
    y = jnp.dot(h, w2_ref[...], preferred_element_type=jnp.float32)
    o_ref[...] = jnp.maximum(y + b2_ref[...], 0.0)


def _convt_bn_relu_kernel(pt_ref, w_ref, g_ref, b_ref, o_ref, *, cout, n_pix):
    """Sub-pixel ConvTranspose2d + training-mode BatchNorm2d + ReLU (fused).

    pt_ref: (4*Cin, M)       patches, all B*H*W pixel groups on the lane axis
    w_ref : (4*Cout, 4*Cin)  combined sub-pixel weight (rows = parity*Cout + co)
    g/b   : (Cout, 1)        BN gamma / beta
    o_ref : (4*Cout, M)
    """
    y = jnp.dot(w_ref[...], pt_ref[...], preferred_element_type=jnp.float32)
    # per-channel batch statistics over all N*OH*OW = 4*M output pixels
    s1 = jnp.sum(y, axis=1, keepdims=True)                      # (4*Cout, 1)
    s2 = jnp.sum(y * y, axis=1, keepdims=True)
    s1 = s1[0:cout] + s1[cout:2 * cout] + s1[2 * cout:3 * cout] + s1[3 * cout:4 * cout]
    s2 = s2[0:cout] + s2[cout:2 * cout] + s2[2 * cout:3 * cout] + s2[3 * cout:4 * cout]
    mean = s1 * (1.0 / n_pix)
    var = s2 * (1.0 / n_pix) - mean * mean                      # single-pass, biased
    scale = g_ref[...] * jax.lax.rsqrt(var + BN_EPS)            # (Cout, 1)
    shift = b_ref[...] - mean * scale
    scale4 = jnp.concatenate([scale, scale, scale, scale], axis=0)   # (4*Cout, 1)
    shift4 = jnp.concatenate([shift, shift, shift, shift], axis=0)
    o_ref[...] = jnp.maximum(y * scale4 + shift4, 0.0)


def _convt_sigmoid_kernel(pt_ref, w_ref, b_ref, o_ref):
    """Sub-pixel ConvTranspose2d + bias + Sigmoid (fused, lane-blocked)."""
    y = jnp.dot(w_ref[...], pt_ref[...], preferred_element_type=jnp.float32)
    y = y + b_ref[...]
    o_ref[...] = 1.0 / (1.0 + jnp.exp(-y))


# ----------------------- wrappers around pallas_call -------------------------
def mlp_forward(x, w1, b1, w2, b2):
    m, k = x.shape
    h1 = w1.shape[1]
    n = w2.shape[1]
    bm = min(m, 128)
    mp = pl.cdiv(m, bm) * bm
    if mp != m:
        x = jnp.pad(x, ((0, mp - m), (0, 0)))
    out = pl.pallas_call(
        _mlp_kernel,
        out_shape=jax.ShapeDtypeStruct((mp, n), jnp.float32),
        grid=(mp // bm,),
        in_specs=[pl.BlockSpec((bm, k), lambda i: (i, 0)),
                  pl.BlockSpec((k, h1), lambda i: (0, 0)),
                  pl.BlockSpec((1, h1), lambda i: (0, 0)),
                  pl.BlockSpec((h1, n), lambda i: (0, 0)),
                  pl.BlockSpec((1, n), lambda i: (0, 0))],
        out_specs=pl.BlockSpec((bm, n), lambda i: (i, 0)),
        compiler_params=pltpu.CompilerParams(dimension_semantics=("parallel",)),
    )(x, w1, b1, w2, b2)
    return out[:m]


# stride-2 sub-pixel decomposition bookkeeping ---------------------------------
def _axis_groups(length, conv_pad):
    if conv_pad == 1:                 # padding=1, output_padding=1 -> out = 2*L
        return (0, 1), length         # pad (before, after), #groups
    return (1, 1), length + 1         # padding=0, output_padding=0 -> out = 2*L+1


# kernel-tap index per (output parity, neighbourhood-offset index); None = no tap
_TAP_MAP = {1: ((1, None), (2, 0)),   # conv padding = 1  (offsets 0, +1)
            0: ((2, 0), (None, 1))}   # conv padding = 0  (offsets -1, 0)


def subpixel_weight_T(w, pad_h, pad_w):
    """(Cin, Cout, 3, 3) PyTorch ConvTranspose2d weight -> (4*Cout, 4*Cin)."""
    cin, cout = w.shape[0], w.shape[1]
    kh_map, kw_map = _TAP_MAP[pad_h], _TAP_MAP[pad_w]
    zero = jnp.zeros((cout, cin), w.dtype)
    rows = []
    for r in range(2):
        for c in range(2):
            cols = []
            for dh in range(2):
                for dw in range(2):
                    kh, kw = kh_map[r][dh], kw_map[c][dw]
                    cols.append(zero if kh is None or kw is None
                                else w[:, :, kh, kw].T)
                rows.append if False else None
            rows.append(jnp.concatenate(cols, axis=1))          # (Cout, 4*Cin)
    return jnp.concatenate(rows, axis=0)                        # (4*Cout, 4*Cin)


def subpixel_patches_T(x, pad_h, pad_w):
    """NHWC x -> (4*Cin, B*Hg*Wg) un-dilated 2x2-neighbourhood patches."""
    b, h, w, c = x.shape
    (phb, pha), hg = _axis_groups(h, pad_h)
    (pwb, pwa), wg = _axis_groups(w, pad_w)
    xp = jnp.pad(x, ((0, 0), (phb, pha), (pwb, pwa), (0, 0)))
    parts = [xp[:, dh:dh + hg, dw:dw + wg, :] for dh in (0, 1) for dw in (0, 1)]
    p = jnp.concatenate(parts, axis=-1).reshape(b * hg * wg, 4 * c)
    return p.T, hg, wg


def depth_to_space(y, b, hg, wg, cout, pad_h, pad_w):
    """(4*Cout, B*Hg*Wg) parity-major rows -> NHWC (B, OH, OW, Cout)."""
    y = y.reshape(2, 2, cout, b, hg, wg)
    y = jnp.transpose(y, (3, 4, 0, 5, 1, 2))
    y = y.reshape(b, 2 * hg, 2 * wg, cout)
    oh = 2 * hg - (1 if pad_h == 0 else 0)
    ow = 2 * wg - (1 if pad_w == 0 else 0)
    return y[:, :oh, :ow, :]


def convt_bn_relu(x, wt, gamma, beta, pad_h, pad_w):
    # NOTE: BN fusion assumes no output trimming, which holds for the
    # padding=1/output_padding=1 layers this is used for.
    b, _, _, cin = x.shape
    cout = wt.shape[0] // 4
    pt, hg, wg = subpixel_patches_T(x, pad_h, pad_w)            # (4*Cin, M)
    m = b * hg * wg
    kernel = functools.partial(_convt_bn_relu_kernel, cout=cout, n_pix=float(4 * m))
    y = pl.pallas_call(
        kernel,
        out_shape=jax.ShapeDtypeStruct((4 * cout, m), jnp.float32),
        grid=(1,),
        in_specs=[pl.BlockSpec((4 * cin, m), lambda i: (0, 0)),
                  pl.BlockSpec((4 * cout, 4 * cin), lambda i: (0, 0)),
                  pl.BlockSpec((cout, 1), lambda i: (0, 0)),
                  pl.BlockSpec((cout, 1), lambda i: (0, 0))],
        out_specs=pl.BlockSpec((4 * cout, m), lambda i: (0, 0)),
    )(pt, wt, gamma, beta)
    return depth_to_space(y, b, hg, wg, cout, pad_h, pad_w)


def convt_sigmoid(x, wt, bias4, pad_h, pad_w):
    b, _, _, cin = x.shape
    cout = wt.shape[0] // 4
    pt, hg, wg = subpixel_patches_T(x, pad_h, pad_w)            # (4*Cin, M)
    m = b * hg * wg
    bn = min(2048, pl.cdiv(m, 128) * 128)                       # lane block
    mp = pl.cdiv(m, bn) * bn
    if mp != m:
        pt = jnp.pad(pt, ((0, 0), (0, mp - m)))                 # zero pad, sliced off
    y = pl.pallas_call(
        _convt_sigmoid_kernel,
        out_shape=jax.ShapeDtypeStruct((4 * cout, mp), jnp.float32),
        grid=(mp // bn,),
        in_specs=[pl.BlockSpec((4 * cin, bn), lambda i: (0, i)),
                  pl.BlockSpec((4 * cout, 4 * cin), lambda i: (0, 0)),
                  pl.BlockSpec((4 * cout, 1), lambda i: (0, 0))],
        out_specs=pl.BlockSpec((4 * cout, bn), lambda i: (0, i)),
        compiler_params=pltpu.CompilerParams(dimension_semantics=("parallel",)),
    )(pt, wt, bias4)
    return depth_to_space(y[:, :m], b, hg, wg, cout, pad_h, pad_w)


# ------------------------------ parameters -----------------------------------
def init_params(key):
    keys = iter(jax.random.split(key, 32))

    def rnd(shape, scale=0.1):
        return scale * jax.random.normal(next(keys), shape, jnp.float32)

    p = {"fc1_w": rnd((MID, LATENT)), "fc1_b": rnd((MID,)),
         "fc2_w": rnd((UNFLAT_C * UNFLAT_H * UNFLAT_W, MID)),
         "fc2_b": rnd((UNFLAT_C * UNFLAT_H * UNFLAT_W,))}
    for l, (cin, cout, _, _) in enumerate(CT_LAYERS, start=1):
        p[f"ct{l}_w"] = rnd((cin, cout, 3, 3))       # PyTorch ConvTranspose2d layout
        p[f"ct{l}_b"] = rnd((cout,))
        if l < 3:                                    # BN follows the first two
            p[f"bn{l}_g"] = 1.0 + rnd((cout,))
            p[f"bn{l}_b"] = rnd((cout,))
    return p


def preprocess_params(p):
    """One-time weight layout transforms (kept out of the per-call path)."""
    kp = {"w1": p["fc1_w"].T, "b1": p["fc1_b"].reshape(1, -1)}
    # permute fc2 columns so the MLP output is already NHWC-flat
    w2 = p["fc2_w"].T.reshape(MID, UNFLAT_C, UNFLAT_H, UNFLAT_W)
    kp["w2"] = jnp.transpose(w2, (0, 2, 3, 1)).reshape(MID, -1)
    kp["b2"] = jnp.transpose(
        p["fc2_b"].reshape(UNFLAT_C, UNFLAT_H, UNFLAT_W), (1, 2, 0)).reshape(1, -1)
    for l, (_, cout, ph, pw) in enumerate(CT_LAYERS, start=1):
        kp[f"wt{l}"] = subpixel_weight_T(p[f"ct{l}_w"], ph, pw)
        if l < 3:
            # conv bias before training-mode BN is exactly cancelled -> dropped
            kp[f"g{l}"] = p[f"bn{l}_g"].reshape(cout, 1)
            kp[f"beta{l}"] = p[f"bn{l}_b"].reshape(cout, 1)
        else:
            kp[f"b{l}4"] = jnp.tile(p[f"ct{l}_b"], 4).reshape(4 * cout, 1)
    return kp


# ------------------------------ forward pass ----------------------------------
def decoder_forward(kp, x):
    b = x.shape[0]
    h = mlp_forward(x, kp["w1"], kp["b1"], kp["w2"], kp["b2"])     # (B, 4000) NHWC-flat
    h = h.reshape(b, UNFLAT_H, UNFLAT_W, UNFLAT_C)                 # (B, 5, 25, 32)
    h = convt_bn_relu(h, kp["wt1"], kp["g1"], kp["beta1"], 1, 1)   # (B, 10, 50, 16)
    h = convt_bn_relu(h, kp["wt2"], kp["g2"], kp["beta2"], 1, 1)   # (B, 20, 100, 8)
    h = convt_sigmoid(h, kp["wt3"], kp["b34"], 1, 0)               # (B, 40, 201, 1)
    return jnp.transpose(h, (0, 3, 1, 2))                          # NCHW


# ------------------- pure-XLA reference (for correctness) ---------------------
HI = jax.lax.Precision.HIGHEST


def _ref_convt(x, w, b, pad, op):
    wf = jnp.transpose(jnp.flip(w, axis=(2, 3)), (1, 0, 2, 3))     # (Cout, Cin, 3, 3)
    padding = ((2 - pad[0], 2 - pad[0] + op[0]), (2 - pad[1], 2 - pad[1] + op[1]))
    y = jax.lax.conv_general_dilated(
        x, wf, window_strides=(1, 1), padding=padding, lhs_dilation=(2, 2),
        rhs_dilation=(1, 1), dimension_numbers=("NCHW", "OIHW", "NCHW"),
        precision=HI)
    return y + b.reshape(1, -1, 1, 1)


def _ref_bn_relu(x, g, b):
    mean = jnp.mean(x, axis=(0, 2, 3), keepdims=True)
    var = jnp.mean((x - mean) ** 2, axis=(0, 2, 3), keepdims=True)
    xn = (x - mean) * jax.lax.rsqrt(var + BN_EPS)
    return jnp.maximum(xn * g.reshape(1, -1, 1, 1) + b.reshape(1, -1, 1, 1), 0.0)


def reference_forward(p, x):
    h = jnp.maximum(jnp.dot(x, p["fc1_w"].T, precision=HI) + p["fc1_b"], 0.0)
    h = jnp.maximum(jnp.dot(h, p["fc2_w"].T, precision=HI) + p["fc2_b"], 0.0)
    h = h.reshape(x.shape[0], UNFLAT_C, UNFLAT_H, UNFLAT_W)
    h = _ref_bn_relu(_ref_convt(h, p["ct1_w"], p["ct1_b"], (1, 1), (1, 1)),
                     p["bn1_g"], p["bn1_b"])
    h = _ref_bn_relu(_ref_convt(h, p["ct2_w"], p["ct2_b"], (1, 1), (1, 1)),
                     p["bn2_g"], p["bn2_b"])
    h = _ref_convt(h, p["ct3_w"], p["ct3_b"], (1, 0), (1, 0))
    return 1.0 / (1.0 + jnp.exp(-h))


if __name__ == "__main__":
    key = jax.random.PRNGKey(0)
    pkey, xkey = jax.random.split(key)
    params = init_params(pkey)
    x = jax.random.normal(xkey, (BATCH, LATENT), jnp.float32)

    kparams = preprocess_params(params)            # one-time weight layout prep
    fwd = jax.jit(decoder_forward)
    out = fwd(kparams, x)
    jax.block_until_ready(out)
    assert out.shape == (BATCH, 1, 40, 201)

    # check against a pure-XLA reference of the PyTorch module (training-mode BN)
    ref = jax.jit(reference_forward)(params, x)
    jax.block_until_ready(ref)
    np.testing.assert_allclose(np.asarray(out), np.asarray(ref), atol=5e-3, rtol=5e-3)

    print("KERNEL_OK")
</pallas_src>

<mosaic_0001>
module attributes {stable_mosaic.version = 11 : i64} {
  func.func @_mlp_kernel(%arg0: i32, %arg1: memref<2x64xf32, #tpu.memory_space<vmem>>, %arg2: memref<64x128xf32, #tpu.memory_space<vmem>>, %arg3: memref<1x128xf32, #tpu.memory_space<vmem>>, %arg4: memref<128x4000xf32, #tpu.memory_space<vmem>>, %arg5: memref<1x4000xf32, #tpu.memory_space<vmem>>, %arg6: memref<2x4000xf32, #tpu.memory_space<vmem>>) attributes {dimension_semantics = [#tpu.dimension_semantics<parallel>], iteration_bounds = array<i64: 1>, scalar_prefetch = 0 : i64, scratch_operands = 0 : i64, tpu.core_type = #tpu.core_type<tc>, window_params = [{transform_indices = @transform_0, window_bounds = array<i64: 2, 64>}, {pipeline_mode = #tpu.pipeline_mode<synchronous>, transform_indices = @transform_1, window_bounds = array<i64: 64, 128>}, {pipeline_mode = #tpu.pipeline_mode<synchronous>, transform_indices = @transform_2, window_bounds = array<i64: 1, 128>}, {pipeline_mode = #tpu.pipeline_mode<synchronous>, transform_indices = @transform_3, window_bounds = array<i64: 128, 4000>}, {pipeline_mode = #tpu.pipeline_mode<synchronous>, transform_indices = @transform_4, window_bounds = array<i64: 1, 4000>}, {transform_indices = @transform_5, window_bounds = array<i64: 2, 4000>}]} {
    %c0 = arith.constant 0 : index
    %c0_0 = arith.constant 0 : index
    %0 = vector.load %arg1[%c0, %c0_0] : memref<2x64xf32, #tpu.memory_space<vmem>>, vector<2x64xf32>
    %c0_1 = arith.constant 0 : index
    %c0_2 = arith.constant 0 : index
    %1 = vector.load %arg2[%c0_1, %c0_2] : memref<64x128xf32, #tpu.memory_space<vmem>>, vector<64x128xf32>
    %cst = arith.constant dense<0.000000e+00> : vector<2x128xf32>
    %2 = tpu.matmul %0, %1, %cst {dimension_numbers = #tpu.dot_dimension_numbers<[1], [0], [0], [1], [0, 0, 1, 1], [], []>} : vector<2x64xf32>, vector<64x128xf32>, vector<2x128xf32> -> vector<2x128xf32>
    %c0_3 = arith.constant 0 : index
    %c0_4 = arith.constant 0 : index
    %3 = vector.load %arg3[%c0_3, %c0_4] : memref<1x128xf32, #tpu.memory_space<vmem>>, vector<1x128xf32>
    %4 = vector.broadcast %3 : vector<1x128xf32> to vector<2x128xf32>
    %5 = arith.addf %2, %4 : vector<2x128xf32>
    %cst_5 = arith.constant 0.000000e+00 : f32
    %6 = vector.broadcast %cst_5 : f32 to vector<2x128xf32>
    %7 = arith.maximumf %5, %6 : vector<2x128xf32>
    %c0_6 = arith.constant 0 : index
    %c0_7 = arith.constant 0 : index
    %8 = vector.load %arg4[%c0_6, %c0_7] : memref<128x4000xf32, #tpu.memory_space<vmem>>, vector<128x4000xf32>
    %cst_8 = arith.constant dense<0.000000e+00> : vector<2x4000xf32>
    %9 = tpu.matmul %7, %8, %cst_8 {dimension_numbers = #tpu.dot_dimension_numbers<[1], [0], [0], [1], [0, 0, 1, 1], [], []>} : vector<2x128xf32>, vector<128x4000xf32>, vector<2x4000xf32> -> vector<2x4000xf32>
    %c0_9 = arith.constant 0 : index
    %c0_10 = arith.constant 0 : index
    %10 = vector.load %arg5[%c0_9, %c0_10] : memref<1x4000xf32, #tpu.memory_space<vmem>>, vector<1x4000xf32>
    %11 = vector.broadcast %10 : vector<1x4000xf32> to vector<2x4000xf32>
    %12 = arith.addf %9, %11 : vector<2x4000xf32>
    %cst_11 = arith.constant 0.000000e+00 : f32
    %13 = vector.broadcast %cst_11 : f32 to vector<2x4000xf32>
    %14 = arith.maximumf %12, %13 : vector<2x4000xf32>
    %c0_12 = arith.constant 0 : index
    %c0_13 = arith.constant 0 : index
    %15 = vector.load %arg6[%c0_12, %c0_13] : memref<2x4000xf32, #tpu.memory_space<vmem>>, vector<2x4000xf32>
    tpu.vector_store %arg6[%c0_12, %c0_13], %14 {strides = array<i32>} : memref<2x4000xf32, #tpu.memory_space<vmem>>, vector<2x4000xf32>,
    return
  }
  func.func @transform_0(%arg0: i32) -> (i32, i32) {
    %c0_i32 = arith.constant 0 : i32
    %c0_i32_0 = arith.constant 0 : i32
    return %arg0, %c0_i32 : i32, i32
  }
  func.func @transform_1(%arg0: i32) -> (i32, i32) {
    %c0_i32 = arith.constant 0 : i32
    %c0_i32_0 = arith.constant 0 : i32
    %c0_i32_1 = arith.constant 0 : i32
    return %c0_i32, %c0_i32_0 : i32, i32
  }
  func.func @transform_2(%arg0: i32) -> (i32, i32) {
    %c0_i32 = arith.constant 0 : i32
    %c0_i32_0 = arith.constant 0 : i32
    %c0_i32_1 = arith.constant 0 : i32
    return %c0_i32, %c0_i32_0 : i32, i32
  }
  func.func @transform_3(%arg0: i32) -> (i32, i32) {
    %c0_i32 = arith.constant 0 : i32
    %c0_i32_0 = arith.constant 0 : i32
    %c0_i32_1 = arith.constant 0 : i32
    return %c0_i32, %c0_i32_0 : i32, i32
  }
  func.func @transform_4(%arg0: i32) -> (i32, i32) {
    %c0_i32 = arith.constant 0 : i32
    %c0_i32_0 = arith.constant 0 : i32
    %c0_i32_1 = arith.constant 0 : i32
    return %c0_i32, %c0_i32_0 : i32, i32
  }
  func.func @transform_5(%arg0: i32) -> (i32, i32) {
    %c0_i32 = arith.constant 0 : i32
    %c0_i32_0 = arith.constant 0 : i32
    return %arg0, %c0_i32 : i32, i32
  }
}

module attributes {stable_mosaic.version = 11 : i64} {
  func.func @_convt_bn_relu_kernel(%arg0: i32, %arg1: memref<128x250xf32, #tpu.memory_space<vmem>>, %arg2: memref<64x128xf32, #tpu.memory_space<vmem>>, %arg3: memref<16x1xf32, #tpu.memory_space<vmem>>, %arg4: memref<16x1xf32, #tpu.memory_space<vmem>>, %arg5: memref<64x250xf32, #tpu.memory_space<vmem>>) attributes {dimension_semantics = [#tpu.dimension_semantics<arbitrary>], iteration_bounds = array<i64: 1>, scalar_prefetch = 0 : i64, scratch_operands = 0 : i64, tpu.core_type = #tpu.core_type<tc>, window_params = [{pipeline_mode = #tpu.pipeline_mode<synchronous>, transform_indices = @transform_0, window_bounds = array<i64: 128, 250>}, {pipeline_mode = #tpu.pipeline_mode<synchronous>, transform_indices = @transform_1, window_bounds = array<i64: 64, 128>}, {pipeline_mode = #tpu.pipeline_mode<synchronous>, transform_indices = @transform_2, window_bounds = array<i64: 16, 1>}, {pipeline_mode = #tpu.pipeline_mode<synchronous>, transform_indices = @transform_3, window_bounds = array<i64: 16, 1>}, {pipeline_mode = #tpu.pipeline_mode<synchronous>, transform_indices = @transform_4, window_bounds = array<i64: 64, 250>}]} {
    %c0 = arith.constant 0 : index
    %c0_0 = arith.constant 0 : index
    %0 = vector.load %arg2[%c0, %c0_0] : memref<64x128xf32, #tpu.memory_space<vmem>>, vector<64x128xf32>
    %c0_1 = arith.constant 0 : index
    %c0_2 = arith.constant 0 : index
    %1 = vector.load %arg1[%c0_1, %c0_2] : memref<128x250xf32, #tpu.memory_space<vmem>>, vector<128x250xf32>
    %cst = arith.constant dense<0.000000e+00> : vector<64x250xf32>
    %2 = tpu.matmul %0, %1, %cst {dimension_numbers = #tpu.dot_dimension_numbers<[1], [0], [0], [1], [0, 0, 1, 1], [], []>} : vector<64x128xf32>, vector<128x250xf32>, vector<64x250xf32> -> vector<64x250xf32>
    %cst_3 = arith.constant dense<0.000000e+00> : vector<64xf32>
    %3 = vector.multi_reduction <add>, %2, %cst_3 [1] : vector<64x250xf32> to vector<64xf32>
    %4 = vector.shape_cast %3 : vector<64xf32> to vector<64x1xf32>
    %5 = arith.mulf %2, %2 : vector<64x250xf32>
    %cst_4 = arith.constant dense<0.000000e+00> : vector<64xf32>
    %6 = vector.multi_reduction <add>, %5, %cst_4 [1] : vector<64x250xf32> to vector<64xf32>
    %7 = vector.shape_cast %6 : vector<64xf32> to vector<64x1xf32>
    %8 = vector.extract_strided_slice %4 {offsets = [0, 0], sizes = [16, 1], strides = [1, 1]} : vector<64x1xf32> to vector<16x1xf32>
    %9 = vector.extract_strided_slice %4 {offsets = [16, 0], sizes = [16, 1], strides = [1, 1]} : vector<64x1xf32> to vector<16x1xf32>
    %10 = arith.addf %8, %9 : vector<16x1xf32>
    %11 = vector.extract_strided_slice %4 {offsets = [32, 0], sizes = [16, 1], strides = [1, 1]} : vector<64x1xf32> to vector<16x1xf32>
    %12 = arith.addf %10, %11 : vector<16x1xf32>
    %13 = vector.extract_strided_slice %4 {offsets = [48, 0], sizes = [16, 1], strides = [1, 1]} : vector<64x1xf32> to vector<16x1xf32>
    %14 = arith.addf %12, %13 : vector<16x1xf32>
    %15 = vector.extract_strided_slice %7 {offsets = [0, 0], sizes = [16, 1], strides = [1, 1]} : vector<64x1xf32> to vector<16x1xf32>
    %16 = vector.extract_strided_slice %7 {offsets = [16, 0], sizes = [16, 1], strides = [1, 1]} : vector<64x1xf32> to vector<16x1xf32>
    %17 = arith.addf %15, %16 : vector<16x1xf32>
    %18 = vector.extract_strided_slice %7 {offsets = [32, 0], sizes = [16, 1], strides = [1, 1]} : vector<64x1xf32> to vector<16x1xf32>
    %19 = arith.addf %17, %18 : vector<16x1xf32>
    %20 = vector.extract_strided_slice %7 {offsets = [48, 0], sizes = [16, 1], strides = [1, 1]} : vector<64x1xf32> to vector<16x1xf32>
    %21 = arith.addf %19, %20 : vector<16x1xf32>
    %cst_5 = arith.constant 1.000000e-03 : f32
    %22 = vector.broadcast %cst_5 : f32 to vector<16x1xf32>
    %23 = arith.mulf %14, %22 : vector<16x1xf32>
    %cst_6 = arith.constant 1.000000e-03 : f32
    %24 = vector.broadcast %cst_6 : f32 to vector<16x1xf32>
    %25 = arith.mulf %21, %24 : vector<16x1xf32>
    %26 = arith.mulf %23, %23 : vector<16x1xf32>
    %27 = arith.subf %25, %26 : vector<16x1xf32>
    %c0_7 = arith.constant 0 : index
    %c0_8 = arith.constant 0 : index
    %28 = vector.load %arg3[%c0_7, %c0_8] : memref<16x1xf32, #tpu.memory_space<vmem>>, vector<16x1xf32>
    %cst_9 = arith.constant 9.99999974E-6 : f32
    %29 = vector.broadcast %cst_9 : f32 to vector<16x1xf32>
    %30 = arith.addf %27, %29 : vector<16x1xf32>
    %31 = math.rsqrt %30 : vector<16x1xf32>
    %32 = arith.mulf %28, %31 : vector<16x1xf32>
    %c0_10 = arith.constant 0 : index
    %c0_11 = arith.constant 0 : index
    %33 = vector.load %arg4[%c0_10, %c0_11] : memref<16x1xf32, #tpu.memory_space<vmem>>, vector<16x1xf32>
    %34 = arith.mulf %23, %32 : vector<16x1xf32>
    %35 = arith.subf %33, %34 : vector<16x1xf32>
    %36 = tpu.concatenate %32, %32, %32, %32 in 0 : vector<16x1xf32>, vector<16x1xf32>, vector<16x1xf32>, vector<16x1xf32> -> vector<64x1xf32>
    %37 = tpu.concatenate %35, %35, %35, %35 in 0 : vector<16x1xf32>, vector<16x1xf32>, vector<16x1xf32>, vector<16x1xf32> -> vector<64x1xf32>
    %38 = vector.broadcast %36 : vector<64x1xf32> to vector<64x250xf32>
    %39 = arith.mulf %2, %38 : vector<64x250xf32>
    %40 = vector.broadcast %37 : vector<64x1xf32> to vector<64x250xf32>
    %41 = arith.addf %39, %40 : vector<64x250xf32>
    %cst_12 = arith.constant 0.000000e+00 : f32
    %42 = vector.broadcast %cst_12 : f32 to vector<64x250xf32>
    %43 = arith.maximumf %41, %42 : vector<64x250xf32>
    %c0_13 = arith.constant 0 : index
    %c0_14 = arith.constant 0 : index
    %44 = vector.load %arg5[%c0_13, %c0_14] : memref<64x250xf32, #tpu.memory_space<vmem>>, vector<64x250xf32>
    tpu.vector_store %arg5[%c0_13, %c0_14], %43 {strides = array<i32>} : memref<64x250xf32, #tpu.memory_space<vmem>>, vector<64x250xf32>,
    return
  }
  func.func @transform_0(%arg0: i32) -> (i32, i32) {
    %c0_i32 = arith.constant 0 : i32
    %c0_i32_0 = arith.constant 0 : i32
    %c0_i32_1 = arith.constant 0 : i32
    return %c0_i32, %c0_i32_0 : i32, i32
  }
  func.func @transform_1(%arg0: i32) -> (i32, i32) {
    %c0_i32 = arith.constant 0 : i32
    %c0_i32_0 = arith.constant 0 : i32
    %c0_i32_1 = arith.constant 0 : i32
    return %c0_i32, %c0_i32_0 : i32, i32
  }
  func.func @transform_2(%arg0: i32) -> (i32, i32) {
    %c0_i32 = arith.constant 0 : i32
    %c0_i32_0 = arith.constant 0 : i32
    %c0_i32_1 = arith.constant 0 : i32
    return %c0_i32, %c0_i32_0 : i32, i32
  }
  func.func @transform_3(%arg0: i32) -> (i32, i32) {
    %c0_i32 = arith.constant 0 : i32
    %c0_i32_0 = arith.constant 0 : i32
    %c0_i32_1 = arith.constant 0 : i32
    return %c0_i32, %c0_i32_0 : i32, i32
  }
  func.func @transform_4(%arg0: i32) -> (i32, i32) {
    %c0_i32 = arith.constant 0 : i32
    %c0_i32_0 = arith.constant 0 : i32
    %c0_i32_1 = arith.constant 0 : i32
    return %c0_i32, %c0_i32_0 : i32, i32
  }
}

module attributes {stable_mosaic.version = 11 : i64} {
  func.func @_convt_bn_relu_kernel(%arg0: i32, %arg1: memref<64x1000xf32, #tpu.memory_space<vmem>>, %arg2: memref<32x64xf32, #tpu.memory_space<vmem>>, %arg3: memref<8x1xf32, #tpu.memory_space<vmem>>, %arg4: memref<8x1xf32, #tpu.memory_space<vmem>>, %arg5: memref<32x1000xf32, #tpu.memory_space<vmem>>) attributes {dimension_semantics = [#tpu.dimension_semantics<arbitrary>], iteration_bounds = array<i64: 1>, scalar_prefetch = 0 : i64, scratch_operands = 0 : i64, tpu.core_type = #tpu.core_type<tc>, window_params = [{pipeline_mode = #tpu.pipeline_mode<synchronous>, transform_indices = @transform_0, window_bounds = array<i64: 64, 1000>}, {pipeline_mode = #tpu.pipeline_mode<synchronous>, transform_indices = @transform_1, window_bounds = array<i64: 32, 64>}, {pipeline_mode = #tpu.pipeline_mode<synchronous>, transform_indices = @transform_2, window_bounds = array<i64: 8, 1>}, {pipeline_mode = #tpu.pipeline_mode<synchronous>, transform_indices = @transform_3, window_bounds = array<i64: 8, 1>}, {pipeline_mode = #tpu.pipeline_mode<synchronous>, transform_indices = @transform_4, window_bounds = array<i64: 32, 1000>}]} {
    %c0 = arith.constant 0 : index
    %c0_0 = arith.constant 0 : index
    %0 = vector.load %arg2[%c0, %c0_0] : memref<32x64xf32, #tpu.memory_space<vmem>>, vector<32x64xf32>
    %c0_1 = arith.constant 0 : index
    %c0_2 = arith.constant 0 : index
    %1 = vector.load %arg1[%c0_1, %c0_2] : memref<64x1000xf32, #tpu.memory_space<vmem>>, vector<64x1000xf32>
    %cst = arith.constant dense<0.000000e+00> : vector<32x1000xf32>
    %2 = tpu.matmul %0, %1, %cst {dimension_numbers = #tpu.dot_dimension_numbers<[1], [0], [0], [1], [0, 0, 1, 1], [], []>} : vector<32x64xf32>, vector<64x1000xf32>, vector<32x1000xf32> -> vector<32x1000xf32>
    %cst_3 = arith.constant dense<0.000000e+00> : vector<32xf32>
    %3 = vector.multi_reduction <add>, %2, %cst_3 [1] : vector<32x1000xf32> to vector<32xf32>
    %4 = vector.shape_cast %3 : vector<32xf32> to vector<32x1xf32>
    %5 = arith.mulf %2, %2 : vector<32x1000xf32>
    %cst_4 = arith.constant dense<0.000000e+00> : vector<32xf32>
    %6 = vector.multi_reduction <add>, %5, %cst_4 [1] : vector<32x1000xf32> to vector<32xf32>
    %7 = vector.shape_cast %6 : vector<32xf32> to vector<32x1xf32>
    %8 = vector.extract_strided_slice %4 {offsets = [0, 0], sizes = [8, 1], strides = [1, 1]} : vector<32x1xf32> to vector<8x1xf32>
    %9 = vector.extract_strided_slice %4 {offsets = [8, 0], sizes = [8, 1], strides = [1, 1]} : vector<32x1xf32> to vector<8x1xf32>
    %10 = arith.addf %8, %9 : vector<8x1xf32>
    %11 = vector.extract_strided_slice %4 {offsets = [16, 0], sizes = [8, 1], strides = [1, 1]} : vector<32x1xf32> to vector<8x1xf32>
    %12 = arith.addf %10, %11 : vector<8x1xf32>
    %13 = vector.extract_strided_slice %4 {offsets = [24, 0], sizes = [8, 1], strides = [1, 1]} : vector<32x1xf32> to vector<8x1xf32>
    %14 = arith.addf %12, %13 : vector<8x1xf32>
    %15 = vector.extract_strided_slice %7 {offsets = [0, 0], sizes = [8, 1], strides = [1, 1]} : vector<32x1xf32> to vector<8x1xf32>
    %16 = vector.extract_strided_slice %7 {offsets = [8, 0], sizes = [8, 1], strides = [1, 1]} : vector<32x1xf32> to vector<8x1xf32>
    %17 = arith.addf %15, %16 : vector<8x1xf32>
    %18 = vector.extract_strided_slice %7 {offsets = [16, 0], sizes = [8, 1], strides = [1, 1]} : vector<32x1xf32> to vector<8x1xf32>
    %19 = arith.addf %17, %18 : vector<8x1xf32>
    %20 = vector.extract_strided_slice %7 {offsets = [24, 0], sizes = [8, 1], strides = [1, 1]} : vector<32x1xf32> to vector<8x1xf32>
    %21 = arith.addf %19, %20 : vector<8x1xf32>
    %cst_5 = arith.constant 2.500000e-04 : f32
    %22 = vector.broadcast %cst_5 : f32 to vector<8x1xf32>
    %23 = arith.mulf %14, %22 : vector<8x1xf32>
    %cst_6 = arith.constant 2.500000e-04 : f32
    %24 = vector.broadcast %cst_6 : f32 to vector<8x1xf32>
    %25 = arith.mulf %21, %24 : vector<8x1xf32>
    %26 = arith.mulf %23, %23 : vector<8x1xf32>
    %27 = arith.subf %25, %26 : vector<8x1xf32>
    %c0_7 = arith.constant 0 : index
    %c0_8 = arith.constant 0 : index
    %28 = vector.load %arg3[%c0_7, %c0_8] : memref<8x1xf32, #tpu.memory_space<vmem>>, vector<8x1xf32>
    %cst_9 = arith.constant 9.99999974E-6 : f32
    %29 = vector.broadcast %cst_9 : f32 to vector<8x1xf32>
    %30 = arith.addf %27, %29 : vector<8x1xf32>
    %31 = math.rsqrt %30 : vector<8x1xf32>
    %32 = arith.mulf %28, %31 : vector<8x1xf32>
    %c0_10 = arith.constant 0 : index
    %c0_11 = arith.constant 0 : index
    %33 = vector.load %arg4[%c0_10, %c0_11] : memref<8x1xf32, #tpu.memory_space<vmem>>, vector<8x1xf32>
    %34 = arith.mulf %23, %32 : vector<8x1xf32>
    %35 = arith.subf %33, %34 : vector<8x1xf32>
    %36 = tpu.concatenate %32, %32, %32, %32 in 0 : vector<8x1xf32>, vector<8x1xf32>, vector<8x1xf32>, vector<8x1xf32> -> vector<32x1xf32>
    %37 = tpu.concatenate %35, %35, %35, %35 in 0 : vector<8x1xf32>, vector<8x1xf32>, vector<8x1xf32>, vector<8x1xf32> -> vector<32x1xf32>
    %38 = vector.broadcast %36 : vector<32x1xf32> to vector<32x1000xf32>
    %39 = arith.mulf %2, %38 : vector<32x1000xf32>
    %40 = vector.broadcast %37 : vector<32x1xf32> to vector<32x1000xf32>
    %41 = arith.addf %39, %40 : vector<32x1000xf32>
    %cst_12 = arith.constant 0.000000e+00 : f32
    %42 = vector.broadcast %cst_12 : f32 to vector<32x1000xf32>
    %43 = arith.maximumf %41, %42 : vector<32x1000xf32>
    %c0_13 = arith.constant 0 : index
    %c0_14 = arith.constant 0 : index
    %44 = vector.load %arg5[%c0_13, %c0_14] : memref<32x1000xf32, #tpu.memory_space<vmem>>, vector<32x1000xf32>
    tpu.vector_store %arg5[%c0_13, %c0_14], %43 {strides = array<i32>} : memref<32x1000xf32, #tpu.memory_space<vmem>>, vector<32x1000xf32>,
    return
  }
  func.func @transform_0(%arg0: i32) -> (i32, i32) {
    %c0_i32 = arith.constant 0 : i32
    %c0_i32_0 = arith.constant 0 : i32
    %c0_i32_1 = arith.constant 0 : i32
    return %c0_i32, %c0_i32_0 : i32, i32
  }
  func.func @transform_1(%arg0: i32) -> (i32, i32) {
    %c0_i32 = arith.constant 0 : i32
    %c0_i32_0 = arith.constant 0 : i32
    %c0_i32_1 = arith.constant 0 : i32
    return %c0_i32, %c0_i32_0 : i32, i32
  }
  func.func @transform_2(%arg0: i32) -> (i32, i32) {
    %c0_i32 = arith.constant 0 : i32
    %c0_i32_0 = arith.constant 0 : i32
    %c0_i32_1 = arith.constant 0 : i32
    return %c0_i32, %c0_i32_0 : i32, i32
  }
  func.func @transform_3(%arg0: i32) -> (i32, i32) {
    %c0_i32 = arith.constant 0 : i32
    %c0_i32_0 = arith.constant 0 : i32
    %c0_i32_1 = arith.constant 0 : i32
    return %c0_i32, %c0_i32_0 : i32, i32
  }
  func.func @transform_4(%arg0: i32) -> (i32, i32) {
    %c0_i32 = arith.constant 0 : i32
    %c0_i32_0 = arith.constant 0 : i32
    %c0_i32_1 = arith.constant 0 : i32
    return %c0_i32, %c0_i32_0 : i32, i32
  }
}

module attributes {stable_mosaic.version = 11 : i64} {
  func.func @_convt_sigmoid_kernel(%arg0: i32, %arg1: memref<32x2048xf32, #tpu.memory_space<vmem>>, %arg2: memref<4x32xf32, #tpu.memory_space<vmem>>, %arg3: memref<4x1xf32, #tpu.memory_space<vmem>>, %arg4: memref<4x2048xf32, #tpu.memory_space<vmem>>) attributes {dimension_semantics = [#tpu.dimension_semantics<parallel>], iteration_bounds = array<i64: 2>, scalar_prefetch = 0 : i64, scratch_operands = 0 : i64, tpu.core_type = #tpu.core_type<tc>, window_params = [{transform_indices = @transform_0, window_bounds = array<i64: 32, 2048>}, {pipeline_mode = #tpu.pipeline_mode<synchronous>, transform_indices = @transform_1, window_bounds = array<i64: 4, 32>}, {pipeline_mode = #tpu.pipeline_mode<synchronous>, transform_indices = @transform_2, window_bounds = array<i64: 4, 1>}, {transform_indices = @transform_3, window_bounds = array<i64: 4, 2048>}]} {
    %c0 = arith.constant 0 : index
    %c0_0 = arith.constant 0 : index
    %0 = vector.load %arg2[%c0, %c0_0] : memref<4x32xf32, #tpu.memory_space<vmem>>, vector<4x32xf32>
    %c0_1 = arith.constant 0 : index
    %c0_2 = arith.constant 0 : index
    %1 = vector.load %arg1[%c0_1, %c0_2] : memref<32x2048xf32, #tpu.memory_space<vmem>>, vector<32x2048xf32>
    %cst = arith.constant dense<0.000000e+00> : vector<4x2048xf32>
    %2 = tpu.matmul %0, %1, %cst {dimension_numbers = #tpu.dot_dimension_numbers<[1], [0], [0], [1], [0, 0, 1, 1], [], []>} : vector<4x32xf32>, vector<32x2048xf32>, vector<4x2048xf32> -> vector<4x2048xf32>
    %c0_3 = arith.constant 0 : index
    %c0_4 = arith.constant 0 : index
    %3 = vector.load %arg3[%c0_3, %c0_4] : memref<4x1xf32, #tpu.memory_space<vmem>>, vector<4x1xf32>
    %4 = vector.broadcast %3 : vector<4x1xf32> to vector<4x2048xf32>
    %5 = arith.addf %2, %4 : vector<4x2048xf32>
    %cst_5 = arith.constant 0.000000e+00 : f32
    %6 = vector.broadcast %cst_5 : f32 to vector<4x2048xf32>
    %7 = arith.subf %6, %5 : vector<4x2048xf32>
    %8 = math.exp %7 : vector<4x2048xf32>
    %cst_6 = arith.constant 1.000000e+00 : f32
    %9 = vector.broadcast %cst_6 : f32 to vector<4x2048xf32>
    %10 = arith.addf %9, %8 : vector<4x2048xf32>
    %cst_7 = arith.constant 1.000000e+00 : f32
    %11 = vector.broadcast %cst_7 : f32 to vector<4x2048xf32>
    %12 = arith.divf %11, %10 : vector<4x2048xf32>
    %c0_8 = arith.constant 0 : index
    %c0_9 = arith.constant 0 : index
    %13 = vector.load %arg4[%c0_8, %c0_9] : memref<4x2048xf32, #tpu.memory_space<vmem>>, vector<4x2048xf32>
    tpu.vector_store %arg4[%c0_8, %c0_9], %12 {strides = array<i32>} : memref<4x2048xf32, #tpu.memory_space<vmem>>, vector<4x2048xf32>,
    return
  }
  func.func @transform_0(%arg0: i32) -> (i32, i32) {
    %c0_i32 = arith.constant 0 : i32
    %c0_i32_0 = arith.constant 0 : i32
    return %c0_i32, %arg0 : i32, i32
  }
  func.func @transform_1(%arg0: i32) -> (i32, i32) {
    %c0_i32 = arith.constant 0 : i32
    %c0_i32_0 = arith.constant 0 : i32
    %c0_i32_1 = arith.constant 0 : i32
    return %c0_i32, %c0_i32_0 : i32, i32
  }
  func.func @transform_2(%arg0: i32) -> (i32, i32) {
    %c0_i32 = arith.constant 0 : i32
    %c0_i32_0 = arith.constant 0 : i32
    %c0_i32_1 = arith.constant 0 : i32
    return %c0_i32, %c0_i32_0 : i32, i32
  }
  func.func @transform_3(%arg0: i32) -> (i32, i32) {
    %c0_i32 = arith.constant 0 : i32
    %c0_i32_0 = arith.constant 0 : i32
    return %c0_i32, %arg0 : i32, i32
  }
}

</mosaic_0001>

<bundles_post_ra>
// kernel: decoder_forward.5
= control target key start
LH: loop header
LB: loop body
LE: loop exit
PB: predicated region body
PF: predicated region fallthrough
CT: control target
= control target key end

     0   :  { %v413_v3 = vmov 0.0   ;;  %vm170_vm0 = vcmask 998400   ;;  %s748_s0 = inlined_call_operand.vmem [shape: f32[128,250], index: 0, kind: input, shape index: {}]   ;;  %s749_s1 = inlined_call_operand.vmem [shape: f32[64,128], index: 1, kind: input, shape index: {}]   ;;  %s750_s2 = inlined_call_operand.vmem [shape: f32[16,1], index: 2, kind: input, shape index: {}]   ;;  %s751_s3 = inlined_call_operand.vmem [shape: f32[16,1], index: 3, kind: input, shape index: {}]   ;;  %s752_s4 = inlined_call_operand.vmem [shape: f32[64,250], index: 4, kind: output, shape index: {}]  }
   0x1   :  { %v56_v0 = vld [vmem:[%s748_s0 + $0xf8] sm:$0xff]  ;;  %v55_v1 = vld [vmem:[%s748_s0 + $0xf0] sm:$0xff]  ;;  %v54_v2 = vld [vmem:[%s748_s0 + $0xe8] sm:$0xff]  ;;  %121 = vmatprep.mubr.f32.mxu0 %v413_v3  ;;  %145 = vmatprep.mubr.f32.mxu1 %v413_v3 }
   0x2   :  { %57 = vmatprep.subr.mxu0 %v56_v0  ;;  %373 = vmatprep.subr.mxu1 %v56_v0  ;;  %v53_v4 = vld [vmem:[%s748_s0 + $0xe0] sm:$0xff]  ;;  %v52_v5 = vld [vmem:[%s748_s0 + $0xd8] sm:$0xff]  ;;  %v51_v6 = vld [vmem:[%s748_s0 + $0xd0] sm:$0xff] }
   0x3   :  { %58 = vmatpush1.msra.mxu0 %v55_v1  ;;  %389 = vmatpush1.msra.mxu1 %v55_v1  ;;  %v50_v7 = vld [vmem:[%s748_s0 + $0xc8] sm:$0xff]  ;;  %v49_v8 = vld [vmem:[%s748_s0 + $0xc0] sm:$0xff]  ;;  %v48_v9 = vld [vmem:[%s748_s0 + $0xb8] sm:$0xff] }
   0x4   :  { %59 = vmatprep.subr.mxu0 %v54_v2  ;;  %374 = vmatprep.subr.mxu1 %v54_v2  ;;  %v47_v10 = vld [vmem:[%s748_s0 + $0xb0] sm:$0xff]  ;;  %v46_v11 = vld [vmem:[%s748_s0 + $0xa8] sm:$0xff]  ;;  %v45_v12 = vld [vmem:[%s748_s0 + $0xa0] sm:$0xff] }
   0x5   :  { %60 = vmatpush1.msra.mxu0 %v53_v4  ;;  %390 = vmatpush1.msra.mxu1 %v53_v4  ;;  %v44_v13 = vld [vmem:[%s748_s0 + $0x98] sm:$0xff]  ;;  %v43_v14 = vld [vmem:[%s748_s0 + $0x90] sm:$0xff]  ;;  %v42_v15 = vld [vmem:[%s748_s0 + $0x88] sm:$0xff] }
   0x6   :  { %61 = vmatprep.subr.mxu0 %v52_v5  ;;  %375 = vmatprep.subr.mxu1 %v52_v5  ;;  %v41_v16 = vld [vmem:[%s748_s0 + $0x80] sm:$0xff]  ;;  %v40_v17 = vld [vmem:[%s748_s0 + $0x78] sm:$0xff]  ;;  %v39_v18 = vld [vmem:[%s748_s0 + $0x70] sm:$0xff] }
   0x7   :  { %62 = vmatpush1.msra.mxu0 %v51_v6  ;;  %391 = vmatpush1.msra.mxu1 %v51_v6  ;;  %v38_v19 = vld [vmem:[%s748_s0 + $0x68] sm:$0xff]  ;;  %v37_v20 = vld [vmem:[%s748_s0 + $0x60] sm:$0xff]  ;;  %v36_v21 = vld [vmem:[%s748_s0 + $0x58] sm:$0xff] }
   0x8   :  { %63 = vmatprep.subr.mxu0 %v50_v7  ;;  %376 = vmatprep.subr.mxu1 %v50_v7  ;;  %v35_v22 = vld [vmem:[%s748_s0 + $0x50] sm:$0xff]  ;;  %v34_v23 = vld [vmem:[%s748_s0 + $0x48] sm:$0xff]  ;;  %v33_v24 = vld [vmem:[%s748_s0 + $0x40] sm:$0xff] }
   0x9   :  { %64 = vmatpush1.msra.mxu0 %v49_v8  ;;  %392 = vmatpush1.msra.mxu1 %v49_v8  ;;  %v32_v25 = vld [vmem:[%s748_s0 + $0x38] sm:$0xff]  ;;  %v31_v26 = vld [vmem:[%s748_s0 + $0x30] sm:$0xff]  ;;  %v30_v27 = vld [vmem:[%s748_s0 + $0x28] sm:$0xff] }
   0xa   :  { %65 = vmatprep.subr.mxu0 %v48_v9  ;;  %377 = vmatprep.subr.mxu1 %v48_v9  ;;  %v29_v28 = vld [vmem:[%s748_s0 + $0x20] sm:$0xff]  ;;  %v28_v29 = vld [vmem:[%s748_s0 + $0x18] sm:$0xff]  ;;  %v27_v30 = vld [vmem:[%s748_s0 + $0x10] sm:$0xff] }
   0xb   :  { %66 = vmatpush1.msra.mxu0 %v47_v10  ;;  %393 = vmatpush1.msra.mxu1 %v47_v10  ;;  %v26_v31 = vld [vmem:[%s748_s0 + $0x8] sm:$0xff]  ;;  %v25_v32 = vld [vmem:[%s748_s0] sm:$0xff]  ;;  %v19_v37 = vld [vmem:[%s749_s1 + $0x10] sm:$0xff] }
   0xc   :  { %67 = vmatprep.subr.mxu0 %v46_v11  ;;  %378 = vmatprep.subr.mxu1 %v46_v11  ;;  %v17_v33 = vld [vmem:[%s749_s1] sm:$0xff]  ;;  %v18_v35 = vld [vmem:[%s749_s1 + $0x8] sm:$0xff]  ;;  %v23_v38 = vld [vmem:[%s749_s1 + $0x30] sm:$0xff] }
   0xd   :  { %68 = vmatpush1.msra.mxu0 %v45_v12  ;;  %394 = vmatpush1.msra.mxu1 %v45_v12  ;;  %v21_v34 = vld [vmem:[%s749_s1 + $0x20] sm:$0xff]  ;;  %v22_v36 = vld [vmem:[%s749_s1 + $0x28] sm:$0xff]  ;;  %v20_v39 = vld [vmem:[%s749_s1 + $0x18] sm:$0xff] }
   0xe   :  { %69 = vmatprep.subr.mxu0 %v44_v13  ;;  %379 = vmatprep.subr.mxu1 %v44_v13  ;;  %v24_v40 = vld [vmem:[%s749_s1 + $0x38] sm:$0xff] }
   0xf   :  { %70 = vmatpush1.msra.mxu0 %v43_v14  ;;  %395 = vmatpush1.msra.mxu1 %v43_v14 }
  0x10   :  { %71 = vmatprep.subr.mxu0 %v42_v15  ;;  %380 = vmatprep.subr.mxu1 %v42_v15 }
  0x11   :  { %72 = vmatpush1.msra.mxu0 %v41_v16  ;;  %396 = vmatpush1.msra.mxu1 %v41_v16 }
  0x12   :  { %73 = vmatprep.subr.mxu0 %v40_v17  ;;  %381 = vmatprep.subr.mxu1 %v40_v17 }
  0x13   :  { %74 = vmatpush1.msra.mxu0 %v39_v18  ;;  %397 = vmatpush1.msra.mxu1 %v39_v18 }
  0x14   :  { %75 = vmatprep.subr.mxu0 %v38_v19  ;;  %382 = vmatprep.subr.mxu1 %v38_v19 }
  0x15   :  { %76 = vmatpush1.msra.mxu0 %v37_v20  ;;  %398 = vmatpush1.msra.mxu1 %v37_v20 }
  0x16   :  { %77 = vmatprep.subr.mxu0 %v36_v21  ;;  %383 = vmatprep.subr.mxu1 %v36_v21 }
  0x17   :  { %78 = vmatpush1.msra.mxu0 %v35_v22  ;;  %399 = vmatpush1.msra.mxu1 %v35_v22 }
  0x18   :  { %79 = vmatprep.subr.mxu0 %v34_v23  ;;  %384 = vmatprep.subr.mxu1 %v34_v23 }
  0x19   :  { %80 = vmatpush1.msra.mxu0 %v33_v24  ;;  %400 = vmatpush1.msra.mxu1 %v33_v24 }
  0x1a   :  { %81 = vmatprep.subr.mxu0 %v32_v25  ;;  %385 = vmatprep.subr.mxu1 %v32_v25 }
  0x1b   :  { %82 = vmatpush1.msra.mxu0 %v31_v26  ;;  %401 = vmatpush1.msra.mxu1 %v31_v26 }
  0x1c   :  { %83 = vmatprep.subr.mxu0 %v30_v27  ;;  %386 = vmatprep.subr.mxu1 %v30_v27 }
  0x1d   :  { %84 = vmatpush1.msra.mxu0 %v29_v28  ;;  %402 = vmatpush1.msra.mxu1 %v29_v28 }
  0x1e   :  { %85 = vmatprep.subr.mxu0 %v28_v29  ;;  %387 = vmatprep.subr.mxu1 %v28_v29 }
  0x1f   :  { %86 = vmatpush1.msra.mxu0 %v27_v30  ;;  %403 = vmatpush1.msra.mxu1 %v27_v30 }
  0x20   :  { %87 = vmatprep.subr.mxu0 %v26_v31  ;;  %388 = vmatprep.subr.mxu1 %v26_v31 }
  0x21   :  { %88 = vmatpush1.msra.mxu0 %v25_v32  ;;  %404 = vmatpush1.msra.mxu1 %v25_v32 }
  0x22   :  { %122 = vmatmul.mubr.f32.vlgmr.msra.gmra.mxu0 %v17_v33  ;;  %146 = vmatmul.mubr.f32.vlgmr.msra.gmra.mxu1 %v21_v34 }
  0x23   :  { %127 = vmatprep.mubr.f32.mxu0 %v413_v3  ;;  %151 = vmatprep.mubr.f32.mxu1 %v413_v3 }
  0x26   :  { %128 = vmatmul.mubr.f32.gmra.mxu0 %v18_v35  ;;  %152 = vmatmul.mubr.f32.gmra.mxu1 %v22_v36 }
  0x27   :  { %133 = vmatprep.mubr.f32.mxu0 %v413_v3  ;;  %157 = vmatprep.mubr.f32.mxu1 %v413_v3 }
  0x2a   :  { %134 = vmatmul.mubr.f32.gmra.mxu0 %v19_v37  ;;  %158 = vmatmul.mubr.f32.gmra.mxu1 %v23_v38 }
  0x2b   :  { %139 = vmatprep.mubr.f32.mxu0 %v413_v3  ;;  %163 = vmatprep.mubr.f32.mxu1 %v413_v3 }
  0x2e   :  { %140 = vmatmul.mubr.f32.gmra.mxu0 %v20_v39  ;;  %164 = vmatmul.mubr.f32.gmra.mxu1 %v24_v40 }
  0xe2   :  { %v568_v41 = vpop.f32.mrf.mxu0  ;;  %v570_v42 = vpop.f32.mrf.mxu1 }
  0xe3   :  { %v203_v58 = vmul.f32 %v568_v41, %v568_v41  ;;  %v211_v7 = vmul.f32 %v570_v42, %v570_v42 }
  0xe4   :  { %v572_v43 = vpop.f32.mrf.mxu0  ;;  %v574_v44 = vpop.f32.mrf.mxu1 }
  0xe5   :  { %v171_v45 = vsel %vm170_vm0, %v572_v43, 0.0  ;;  %v204_v49 = vmul.f32 %v572_v43, %v572_v43  ;;  %v187_v50 = vsel %vm170_vm0, %v574_v44, 0.0  ;;  %v212_v60 = vmul.f32 %v574_v44, %v574_v44 }
  0xe6   :  { %v578_v46 = vpop.f32.mrf.mxu0  ;;  %v580_v47 = vpop.f32.mrf.mxu1  ;;  %v172_v48 = vadd.f32 %v171_v45, %v568_v41  ;;  %v188_v56 = vadd.f32 %v187_v50, %v570_v42  ;;  %v414_v45 = vmov 0  }
  0xe7   :  { %v205_v59 = vmul.f32 %v578_v46, %v578_v46  ;;  %v219_v62 = vsel %vm170_vm0, %v204_v49, 0.0  ;;  %v235_v4 = vsel %vm170_vm0, %v212_v60, 0.0  ;;  %v213_v8 = vmul.f32 %v580_v47, %v580_v47  ;;  %407 = vset.pattern.permute.xlu0 %v414_v45  ;;  %408 = vset.pattern.permute.xlu1 %v414_v45 }
  0xe8   :  { %v587_v51 = vpop.f32.mrf.mxu1  ;;  %173 = vadd.xlane.f32.xlu0 %v172_v48  ;;  %v589_v52 = vpop.f32.mrf.mxu0  ;;  %v220_v2 = vadd.f32 %v219_v62, %v203_v58  ;;  %v236_v10 = vadd.f32 %v235_v4, %v211_v7 }
  0xe9   :  { %v206_v53 = vmul.f32 %v589_v52, %v589_v52  ;;  %v191_v54 = vsel %vm170_vm0, %v587_v51, 0.0  ;;  %v214_v61 = vmul.f32 %v587_v51, %v587_v51  ;;  %v175_v12 = vsel %vm170_vm0, %v589_v52, 0.0 }
  0xea   :  { %v192_v55 = vadd.f32 %v191_v54, %v580_v47  ;;  %v597_v57 = vpop.f32.mrf.mxu0  ;;  %v611_v1 = vpop.f32.mrf.mxu1  ;;  %v176_v16 = vadd.f32 %v175_v12, %v578_v46 }
  0xeb   :  { %v223_v63 = vsel %vm170_vm0, %v206_v53, 0.0  ;;  %v239_v5 = vsel %vm170_vm0, %v214_v61, 0.0  ;;  %v207_v24 = vmul.f32 %v597_v57, %v597_v57  ;;  %v215_v31 = vmul.f32 %v611_v1, %v611_v1 }
  0xec   :  { %193 = vadd.xlane.f32.xlu1 %v192_v55  ;;  %189 = vadd.xlane.f32.xlu0 %v188_v56  ;;  %v609_v0 = vpop.f32.mrf.mxu0  ;;  %v224_v3 = vadd.f32 %v223_v63, %v205_v59  ;;  %v621_v9 = vpop.f32.mrf.mxu1  ;;  %v240_v11 = vadd.f32 %v239_v5, %v213_v8 }
  0xed   :  { %v179_v13 = vsel %vm170_vm0, %v609_v0, 0.0  ;;  %v208_v18 = vmul.f32 %v609_v0, %v609_v0  ;;  %v195_v20 = vsel %vm170_vm0, %v621_v9, 0.0  ;;  %v216_v26 = vmul.f32 %v621_v9, %v621_v9 }
  0xee   :  { %v615_v6 = vpop.f32.mrf.mxu0  ;;  %v629_v15 = vpop.f32.mrf.mxu1  ;;  %v180_v17 = vadd.f32 %v179_v13, %v597_v57  ;;  %v196_v22 = vadd.f32 %v195_v20, %v611_v1 }
  0xef   :  { %v227_v28 = vsel %vm170_vm0, %v208_v18, 0.0  ;;  %v209_v32 = vmul.f32 %v615_v6, %v615_v6  ;;  %v243_v34 = vsel %vm170_vm0, %v216_v26, 0.0  ;;  %v217_v38 = vmul.f32 %v629_v15, %v629_v15 }
  0xf0   :  { %221 = vadd.xlane.f32.xlu0 %v220_v2  ;;  %225 = vadd.xlane.f32.xlu1 %v224_v3  ;;  %v627_v14 = vpop.f32.mrf.mxu0  ;;  %v639_v21 = vpop.f32.mrf.mxu1  ;;  %v228_v29 = vadd.f32 %v227_v28, %v207_v24  ;;  %v244_v36 = vadd.f32 %v243_v34, %v215_v31 }
  0xf1   :  { %v183_v19 = vsel %vm170_vm0, %v627_v14, 0.0  ;;  %v210_v25 = vmul.f32 %v627_v14, %v627_v14  ;;  %v199_v27 = vsel %vm170_vm0, %v639_v21, 0.0  ;;  %v218_v33 = vmul.f32 %v639_v21, %v639_v21 }
  0xf2   :  { %v184_v23 = vadd.f32 %v183_v19, %v615_v6  ;;  %v200_v30 = vadd.f32 %v199_v27, %v629_v15 }
  0xf3   :  { %v231_v35 = vsel %vm170_vm0, %v210_v25, 0.0  ;;  %v247_v39 = vsel %vm170_vm0, %v218_v33, 0.0 }
  0xf4   :  { %237 = vadd.xlane.f32.xlu0 %v236_v10  ;;  %241 = vadd.xlane.f32.xlu1 %v240_v11  ;;  %v232_v37 = vadd.f32 %v231_v35, %v209_v32  ;;  %v248_v40 = vadd.f32 %v247_v39, %v217_v38  ;;  %v271_v32 = vld [vmem:[%s750_s2] sm:$0xff]  ;;  %v272_v35 = vld [vmem:[%s750_s2 + $0x8] sm:$0xff] }
  0xf5   :  { %v279_v39 = vld [vmem:[%s751_s3] sm:$0xff] }
  0xf8   :  { %177 = vadd.xlane.f32.xlu0 %v176_v16  ;;  %181 = vadd.xlane.f32.xlu1 %v180_v17 }
  0xfc   :  { %197 = vadd.xlane.f32.xlu0 %v196_v22  ;;  %185 = vadd.xlane.f32.xlu1 %v184_v23 }
 0x100   :  { %229 = vadd.xlane.f32.xlu0 %v228_v29  ;;  %201 = vadd.xlane.f32.xlu1 %v200_v30 }
 0x104   :  { %245 = vadd.xlane.f32.xlu0 %v244_v36  ;;  %233 = vadd.xlane.f32.xlu1 %v232_v37 }
 0x108   :  { %249 = vadd.xlane.f32.xlu1 %v248_v40 }
 0x171   :  { %v174_v48 = vpop.xlane.xlu0 %173 }
 0x175   :  { %v194_v49 = vpop.xlane.xlu1 %193  ;;  %v190_v50 = vpop.xlane.xlu0 %189 }
 0x179   :  { %v222_v53 = vpop.xlane.xlu0 %221  ;;  %v226_v54 = vpop.xlane.xlu1 %225 }
 0x17d   :  { %v238_v55 = vpop.xlane.xlu0 %237  ;;  %v242_v56 = vpop.xlane.xlu1 %241 }
 0x181   :  { %v178_v58 = vpop.xlane.xlu0 %177  ;;  %v182_v59 = vpop.xlane.xlu1 %181 }
 0x182   :  { %v251_v60 = vadd.f32 %v182_v59, %v174_v48  ;;  %v280_v48 = vld [vmem:[%s751_s3 + $0x8] sm:$0xff] }
 0x184   :  { %v253_v61 = vadd.f32 %v251_v60, %v190_v50 }
 0x185   :  { %v198_v62 = vpop.xlane.xlu0 %197  ;;  %v186_v63 = vpop.xlane.xlu1 %185 }
 0x186   :  { %v252_v2 = vadd.f32 %v186_v63, %v178_v58  ;;  %v255_v3 = vadd.f32 %v253_v61, %v198_v62 }
 0x188   :  { %v254_v4 = vadd.f32 %v252_v2, %v194_v49  ;;  %v263_v10 = vmul.f32 0.001, %v255_v3 }
 0x189   :  { %v230_v5 = vpop.xlane.xlu0 %229  ;;  %v202_v7 = vpop.xlane.xlu1 %201 }
 0x18a   :  { %v257_v8 = vadd.f32 %v230_v5, %v222_v53  ;;  %v256_v11 = vadd.f32 %v254_v4, %v202_v7  ;;  %v267_v19 = vmul.f32 %v263_v10, %v263_v10 }
 0x18c   :  { %v259_v12 = vadd.f32 %v257_v8, %v238_v55  ;;  %v264_v20 = vmul.f32 0.001, %v256_v11 }
 0x18d   :  { %v246_v13 = vpop.xlane.xlu0 %245  ;;  %v234_v16 = vpop.xlane.xlu1 %233 }
 0x18e   :  { %v261_v17 = vadd.f32 %v259_v12, %v246_v13  ;;  %v258_v18 = vadd.f32 %v234_v16, %v226_v54  ;;  %v268_v27 = vmul.f32 %v264_v20, %v264_v20 }
 0x190   :  { %v265_v22 = vmul.f32 0.001, %v261_v17  ;;  %v260_v23 = vadd.f32 %v258_v18, %v242_v56 }
 0x191   :  { %v250_v24 = vpop.xlane.xlu1 %249 }
 0x192   :  { %v269_v25 = vsub.f32 %v265_v22, %v267_v19  ;;  %v262_v26 = vadd.f32 %v260_v23, %v250_v24 }
 0x194   :  { %v273_v28 = vadd.f32 1e-05, %v269_v25  ;;  %v266_v29 = vmul.f32 0.001, %v262_v26 }
 0x196   :  { %409 = vrsqrt.f32 %v273_v28  ;;  %v270_v30 = vsub.f32 %v266_v29, %v268_v27 }
 0x198   :  { %v274_v31 = vadd.f32 1e-05, %v270_v30 }
 0x19a   :  { %411 = vrsqrt.f32 %v274_v31 }
 0x1a3   :  { %v410_v33 = vpop.eup %409 }
 0x1a4   :  { %v277_v34 = vmul.f32 %v410_v33, %v271_v32 }
 0x1a6   :  { %287 = vperm.xlu0 %407, %v277_v34   ;;  %v281_v38 = vmul.f32 %v277_v34, %v263_v10 }
 0x1a7   :  { %v412_v36 = vpop.eup %411 }
 0x1a8   :  { %v278_v37 = vmul.f32 %v412_v36, %v272_v35  ;;  %v283_v40 = vsub.f32 %v279_v39, %v281_v38 }
 0x1aa   :  { %292 = vperm.xlu1 %408, %v278_v37   ;;  %v282_v45 = vmul.f32 %v278_v37, %v264_v20 }
 0x1ac   :  { %v284_v49 = vsub.f32 %v280_v48, %v282_v45 }
 0x1ae   :  { %313 = vperm.xlu1 %408, %v283_v40  }
 0x1b2   :  { %318 = vperm.xlu1 %408, %v284_v49  }
 0x221   :  { %v288_v50 = vpop.permute.xlu0 %287 }
 0x222   :  { %v295_v54 = vmul.f32 %v288_v50, %v568_v41  ;;  %v296_v55 = vmul.f32 %v288_v50, %v572_v43  ;;  %v299_v56 = vmul.f32 %v288_v50, %v597_v57  ;;  %v300_v58 = vmul.f32 %v288_v50, %v609_v0 }
 0x223   :  { %v303_v59 = vmul.f32 %v288_v50, %v570_v42  ;;  %v304_v60 = vmul.f32 %v288_v50, %v574_v44  ;;  %v307_v61 = vmul.f32 %v288_v50, %v611_v1  ;;  %v308_v62 = vmul.f32 %v288_v50, %v621_v9 }
 0x225   :  { %v293_v53 = vpop.permute.xlu1 %292 }
 0x226   :  { %v297_v63 = vmul.f32 %v293_v53, %v578_v46  ;;  %v298_v2 = vmul.f32 %v293_v53, %v589_v52  ;;  %v301_v41 = vmul.f32 %v293_v53, %v615_v6  ;;  %v302_v43 = vmul.f32 %v293_v53, %v627_v14 }
 0x227   :  { %v305_v57 = vmul.f32 %v293_v53, %v580_v47  ;;  %v306_v0 = vmul.f32 %v293_v53, %v587_v51  ;;  %v309_v42 = vmul.f32 %v293_v53, %v629_v15  ;;  %v310_v44 = vmul.f32 %v293_v53, %v639_v21 }
 0x229   :  { %v314_v3 = vpop.permute.xlu1 %313 }
 0x22a   :  { %v321_v1 = vadd.f32 %v314_v3, %v295_v54  ;;  %v322_v4 = vadd.f32 %v314_v3, %v296_v55  ;;  %v325_v9 = vadd.f32 %v314_v3, %v299_v56  ;;  %v326_v5 = vadd.f32 %v314_v3, %v300_v58 }
 0x22b   :  { %v329_v46 = vadd.f32 %v314_v3, %v303_v59  ;;  %v330_v7 = vadd.f32 %v314_v3, %v304_v60  ;;  %v333_v52 = vadd.f32 %v314_v3, %v307_v61  ;;  %v334_v8 = vadd.f32 %v314_v3, %v308_v62 }
 0x22c   :  { %v337_v6 = vmax.f32 %v321_v1, 0.0  ;;  %v338_v10 = vmax.f32 %v322_v4, 0.0  ;;  %v341_v14 = vmax.f32 %v325_v9, 0.0  ;;  %v342_v11 = vmax.f32 %v326_v5, 0.0 }
 0x22d   :  { %v345_v12 = vmax.f32 %v329_v46, 0.0  ;;  %v346_v47 = vmax.f32 %v330_v7, 0.0  ;;  %v349_v13 = vmax.f32 %v333_v52, 0.0  ;;  %v350_v51 = vmax.f32 %v334_v8, 0.0  ;;  %v319_v16 = vpop.permute.xlu1 %318 }
 0x22e   :  { %353 = vst [vmem:[%s752_s4] sm:$0xff] %v337_v6  ;;  %354 = vst.msk [vmem:[%s752_s4 + $0x8] sm:$0xff] %vm170_vm0, %v338_v10  ;;  %v323_v15 = vadd.f32 %v319_v16, %v297_v63  ;;  %v324_v21 = vadd.f32 %v319_v16, %v298_v2  ;;  %v327_v17 = vadd.f32 %v319_v16, %v301_v41 }
 0x22f   :  { %357 = vst [vmem:[%s752_s4 + $0x20] sm:$0xff] %v341_v14  ;;  %358 = vst.msk [vmem:[%s752_s4 + $0x28] sm:$0xff] %vm170_vm0, %v342_v11  ;;  %v328_v18 = vadd.f32 %v319_v16, %v302_v43  ;;  %v331_v19 = vadd.f32 %v319_v16, %v305_v57  ;;  %v332_v20 = vadd.f32 %v319_v16, %v306_v0 }
 0x230   :  { %361 = vst [vmem:[%s752_s4 + $0x40] sm:$0xff] %v345_v12  ;;  %362 = vst.msk [vmem:[%s752_s4 + $0x48] sm:$0xff] %vm170_vm0, %v346_v47  ;;  %v335_v22 = vadd.f32 %v319_v16, %v309_v42  ;;  %v336_v23 = vadd.f32 %v319_v16, %v310_v44  ;;  %v339_v24 = vmax.f32 %v323_v15, 0.0  ;;  %v340_v25 = vmax.f32 %v324_v21, 0.0 }
 0x231   :  { %365 = vst [vmem:[%s752_s4 + $0x60] sm:$0xff] %v349_v13  ;;  %366 = vst.msk [vmem:[%s752_s4 + $0x68] sm:$0xff] %vm170_vm0, %v350_v51  ;;  %v343_v26 = vmax.f32 %v327_v17, 0.0  ;;  %v344_v27 = vmax.f32 %v328_v18, 0.0  ;;  %v347_v28 = vmax.f32 %v331_v19, 0.0  ;;  %v348_v29 = vmax.f32 %v332_v20, 0.0 }
 0x232   :  { %v351_v30 = vmax.f32 %v335_v22, 0.0  ;;  %v352_v31 = vmax.f32 %v336_v23, 0.0  ;;  %355 = vst [vmem:[%s752_s4 + $0x10] sm:$0xff] %v339_v24  ;;  %356 = vst.msk [vmem:[%s752_s4 + $0x18] sm:$0xff] %vm170_vm0, %v340_v25 }
 0x233   :  { %359 = vst [vmem:[%s752_s4 + $0x30] sm:$0xff] %v343_v26  ;;  %360 = vst.msk [vmem:[%s752_s4 + $0x38] sm:$0xff] %vm170_vm0, %v344_v27 }
 0x234   :  { %363 = vst [vmem:[%s752_s4 + $0x50] sm:$0xff] %v347_v28  ;;  %364 = vst.msk [vmem:[%s752_s4 + $0x58] sm:$0xff] %vm170_vm0, %v348_v29 }
 0x235   :  { %367 = vst [vmem:[%s752_s4 + $0x70] sm:$0xff] %v351_v30  ;;  %368 = vst.msk [vmem:[%s752_s4 + $0x78] sm:$0xff] %vm170_vm0, %v352_v31 }

// kernel: decoder_forward.4
= control target key start
LH: loop header
LB: loop body
LE: loop exit
PB: predicated region body
PF: predicated region fallthrough
CT: control target
= control target key end

     0   :  { %v2187_v0 = vmov 0.0   ;;  %vm2188_vm0 = vmmov 0   ;;  %vm36_vm1 = vcmask 523264   ;;  %vm2142_vm2 = vcmask 1041408   ;;  %s3952_s1 = inlined_call_operand.vmem [shape: f32[64,128], index: 1, kind: input, shape index: {}]   ;;  %s3953_s3 = inlined_call_operand.vmem [shape: f32[128,4000], index: 3, kind: input, shape index: {}]   ;;  %s3954_s0 = inlined_call_operand.vmem [shape: f32[2,64], index: 0, kind: input, shape index: {}]   ;;  %s3955_s2 = inlined_call_operand.vmem [shape: f32[1,128], index: 2, kind: input, shape index: {}]   ;;  %s3956_s4 = inlined_call_operand.vmem [shape: f32[1,4000], index: 4, kind: input, shape index: {}]   ;;  %s3957_s5 = inlined_call_operand.vmem [shape: f32[2,4000], index: 5, kind: output, shape index: {}]  }
   0x1   :  { %2165 = vmatprep.subr.mxu0 %v2187_v0  ;;  %v28_v1 = vld [vmem:[%s3952_s1 + $0x38] sm:$0xff]  ;;  %v27_v2 = vld [vmem:[%s3952_s1 + $0x30] sm:$0xff]  ;;  %2181 = vmatprep.mubr.msk.f32.mxu0 %vm2188_vm0, %v2187_v0  ;;  %v26_v3 = vld [vmem:[%s3952_s1 + $0x28] sm:$0xff]  ;;  %vm2143_vm3 = vcmask 1043458   ;;  %vm2145_vm5 = vcmask 1045508   ;;  %vm2147_vm7 = vcmask 261126  }
   0x2   :  { %2166 = vmatpush3.msra.mxu0 %v28_v1  ;;  %855 = vmatprep.mubr.f32.mxu1 %v2187_v0  ;;  %v592_v4 = vld [vmem:[%s3953_s3 + $0xf08] sm:$0xff]  ;;  %v591_v5 = vld [vmem:[%s3953_s3 + $0xf00] sm:$0xff]  ;;  %v24_v10 = vld [vmem:[%s3952_s1 + $0x18] sm:$0xff] }
   0x3   :  { %2167 = vmatprep.subr.mxu0 %v2187_v0  ;;  %v25_v6 = vld [vmem:[%s3952_s1 + $0x20] sm:$0xff]  ;;  %791 = vmatprep.subr.mxu1 %v592_v4  ;;  %v560_v7 = vld [vmem:[%s3953_s3 + $0xe08] sm:$0xff]  ;;  %v23_v13 = vld [vmem:[%s3952_s1 + $0x10] sm:$0xff] }
   0x4   :  { %2168 = vmatpush3.msra.mxu0 %v27_v2  ;;  %792 = vmatpush1.msra.mxu1 %v591_v5  ;;  %v559_v8 = vld [vmem:[%s3953_s3 + $0xe00] sm:$0xff]  ;;  %v528_v9 = vld [vmem:[%s3953_s3 + $0xd08] sm:$0xff]  ;;  %v594_v22 = vld [vmem:[%s3953_s3 + $0xf18] sm:$0xff] }
   0x5   :  { %2169 = vmatprep.subr.mxu0 %v2187_v0  ;;  %793 = vmatprep.subr.mxu1 %v560_v7  ;;  %v527_v11 = vld [vmem:[%s3953_s3 + $0xd00] sm:$0xff]  ;;  %v496_v12 = vld [vmem:[%s3953_s3 + $0xc08] sm:$0xff]  ;;  %v593_v23 = vld [vmem:[%s3953_s3 + $0xf10] sm:$0xff] }
   0x6   :  { %2170 = vmatpush3.msra.mxu0 %v26_v3  ;;  %794 = vmatpush1.msra.mxu1 %v559_v8  ;;  %v495_v14 = vld [vmem:[%s3953_s3 + $0xc00] sm:$0xff]  ;;  %v464_v15 = vld [vmem:[%s3953_s3 + $0xb08] sm:$0xff]  ;;  %v562_v25 = vld [vmem:[%s3953_s3 + $0xe18] sm:$0xff] }
   0x7   :  { %2171 = vmatprep.subr.mxu0 %v2187_v0  ;;  %795 = vmatprep.subr.mxu1 %v528_v9  ;;  %v22_v16 = vld [vmem:[%s3952_s1 + $0x8] sm:$0xff]  ;;  %v463_v17 = vld [vmem:[%s3953_s3 + $0xb00] sm:$0xff]  ;;  %v561_v27 = vld [vmem:[%s3953_s3 + $0xe10] sm:$0xff] }
   0x8   :  { %2172 = vmatpush3.msra.mxu0 %v25_v6  ;;  %796 = vmatpush1.msra.mxu1 %v527_v11  ;;  %v432_v18 = vld [vmem:[%s3953_s3 + $0xa08] sm:$0xff]  ;;  %v21_v19 = vld [vmem:[%s3952_s1] sm:$0xff]  ;;  %v530_v29 = vld [vmem:[%s3953_s3 + $0xd18] sm:$0xff] }
   0x9   :  { %2173 = vmatprep.subr.mxu0 %v2187_v0  ;;  %797 = vmatprep.subr.mxu1 %v496_v12  ;;  %v431_v20 = vld [vmem:[%s3953_s3 + $0xa00] sm:$0xff]  ;;  %v400_v24 = vld [vmem:[%s3953_s3 + $0x908] sm:$0xff]  ;;  %v529_v31 = vld [vmem:[%s3953_s3 + $0xd10] sm:$0xff] }
   0xa   :  { %2174 = vmatpush3.msra.mxu0 %v24_v10  ;;  %798 = vmatpush1.msra.mxu1 %v495_v14  ;;  %v20_v21 = vld [vmem:[%s3954_s0] sm:$0x3]  ;;  %v368_v28 = vld [vmem:[%s3953_s3 + $0x808] sm:$0xff]  ;;  %v498_v33 = vld [vmem:[%s3953_s3 + $0xc18] sm:$0xff] }
   0xb   :  { %2175 = vmatprep.subr.mxu0 %v2187_v0  ;;  %799 = vmatprep.subr.mxu1 %v464_v15  ;;  %v399_v26 = vld [vmem:[%s3953_s3 + $0x900] sm:$0xff]  ;;  %v336_v32 = vld [vmem:[%s3953_s3 + $0x708] sm:$0xff]  ;;  %v497_v35 = vld [vmem:[%s3953_s3 + $0xc10] sm:$0xff] }
   0xc   :  { %2176 = vmatpush3.msra.mxu0 %v23_v13  ;;  %800 = vmatpush1.msra.mxu1 %v463_v17  ;;  %v367_v30 = vld [vmem:[%s3953_s3 + $0x800] sm:$0xff]  ;;  %v304_v36 = vld [vmem:[%s3953_s3 + $0x608] sm:$0xff]  ;;  %v466_v37 = vld [vmem:[%s3953_s3 + $0xb18] sm:$0xff] }
   0xd   :  { %2177 = vmatprep.subr.mxu0 %v2187_v0  ;;  %801 = vmatprep.subr.mxu1 %v432_v18  ;;  %v335_v34 = vld [vmem:[%s3953_s3 + $0x700] sm:$0xff]  ;;  %v465_v39 = vld [vmem:[%s3953_s3 + $0xb10] sm:$0xff]  ;;  %v272_v40 = vld [vmem:[%s3953_s3 + $0x508] sm:$0xff] }
   0xe   :  { %2178 = vmatpush3.msra.mxu0 %v22_v16  ;;  %802 = vmatpush1.msra.mxu1 %v431_v20  ;;  %v303_v38 = vld [vmem:[%s3953_s3 + $0x600] sm:$0xff]  ;;  %v434_v41 = vld [vmem:[%s3953_s3 + $0xa18] sm:$0xff]  ;;  %v433_v43 = vld [vmem:[%s3953_s3 + $0xa10] sm:$0xff] }
   0xf   :  { %2179 = vmatprep.subr.mxu0 %v2187_v0  ;;  %803 = vmatprep.subr.mxu1 %v400_v24  ;;  %v271_v42 = vld [vmem:[%s3953_s3 + $0x500] sm:$0xff]  ;;  %v240_v44 = vld [vmem:[%s3953_s3 + $0x408] sm:$0xff]  ;;  %v402_v45 = vld [vmem:[%s3953_s3 + $0x918] sm:$0xff] }
  0x10   :  { %2180 = vmatpush3.msra.mxu0 %v21_v19  ;;  %804 = vmatpush1.msra.mxu1 %v399_v26  ;;  %v239_v46 = vld [vmem:[%s3953_s3 + $0x400] sm:$0xff]  ;;  %v401_v47 = vld [vmem:[%s3953_s3 + $0x910] sm:$0xff]  ;;  %v208_v48 = vld [vmem:[%s3953_s3 + $0x308] sm:$0xff] }
  0x11   :  { %2182 = vmatmul.mubr.msk.f32.vlgmr.msra.gmra.mxu0 %vm36_vm1, %v20_v21  ;;  %862 = vmatprep.subr.mxu0 %v594_v22  ;;  %v370_v49 = vld [vmem:[%s3953_s3 + $0x818] sm:$0xff]  ;;  %v207_v50 = vld [vmem:[%s3953_s3 + $0x300] sm:$0xff]  ;;  %v369_v51 = vld [vmem:[%s3953_s3 + $0x810] sm:$0xff] }
  0x12   :  { %863 = vmatpush1.msra.mxu0 %v593_v23  ;;  %805 = vmatprep.subr.mxu1 %v368_v28  ;;  %v176_v52 = vld [vmem:[%s3953_s3 + $0x208] sm:$0xff]  ;;  %v338_v53 = vld [vmem:[%s3953_s3 + $0x718] sm:$0xff]  ;;  %v175_v54 = vld [vmem:[%s3953_s3 + $0x200] sm:$0xff] }
  0x13   :  { %864 = vmatprep.subr.mxu0 %v562_v25  ;;  %806 = vmatpush1.msra.mxu1 %v367_v30  ;;  %v337_v55 = vld [vmem:[%s3953_s3 + $0x710] sm:$0xff]  ;;  %v306_v56 = vld [vmem:[%s3953_s3 + $0x618] sm:$0xff]  ;;  %v144_v3 = vld [vmem:[%s3953_s3 + $0x108] sm:$0xff] }
  0x14   :  { %865 = vmatpush1.msra.mxu0 %v561_v27  ;;  %807 = vmatprep.subr.mxu1 %v336_v32  ;;  %v305_v57 = vld [vmem:[%s3953_s3 + $0x610] sm:$0xff]  ;;  %v274_v58 = vld [vmem:[%s3953_s3 + $0x518] sm:$0xff]  ;;  %v143_v5 = vld [vmem:[%s3953_s3 + $0x100] sm:$0xff] }
  0x15   :  { %866 = vmatprep.subr.mxu0 %v530_v29  ;;  %808 = vmatpush1.msra.mxu1 %v335_v34  ;;  %v273_v59 = vld [vmem:[%s3953_s3 + $0x510] sm:$0xff]  ;;  %v242_v60 = vld [vmem:[%s3953_s3 + $0x418] sm:$0xff]  ;;  %v112_v7 = vld [vmem:[%s3953_s3 + $0x8] sm:$0xff] }
  0x16   :  { %867 = vmatpush1.msra.mxu0 %v529_v31  ;;  %809 = vmatprep.subr.mxu1 %v304_v36  ;;  %v241_v61 = vld [vmem:[%s3953_s3 + $0x410] sm:$0xff]  ;;  %v210_v62 = vld [vmem:[%s3953_s3 + $0x318] sm:$0xff]  ;;  %v111_v9 = vld [vmem:[%s3953_s3] sm:$0xff] }
  0x17   :  { %868 = vmatprep.subr.mxu0 %v498_v33  ;;  %810 = vmatpush1.msra.mxu1 %v303_v38  ;;  %v209_v63 = vld [vmem:[%s3953_s3 + $0x310] sm:$0xff]  ;;  %v178_v1 = vld [vmem:[%s3953_s3 + $0x218] sm:$0xff]  ;;  %v596_v11 = vld [vmem:[%s3953_s3 + $0xf28] sm:$0xff] }
  0x18   :  { %869 = vmatpush1.msra.mxu0 %v497_v35  ;;  %811 = vmatprep.subr.mxu1 %v272_v40  ;;  %v177_v2 = vld [vmem:[%s3953_s3 + $0x210] sm:$0xff]  ;;  %v146_v4 = vld [vmem:[%s3953_s3 + $0x118] sm:$0xff]  ;;  %v2154_v13 = vld [vmem:[%s3955_s2] ss:$0 sm:$0xff] }
  0x19   :  { %870 = vmatprep.subr.mxu0 %v466_v37  ;;  %812 = vmatpush1.msra.mxu1 %v271_v42  ;;  %v145_v6 = vld [vmem:[%s3953_s3 + $0x110] sm:$0xff]  ;;  %v114_v8 = vld [vmem:[%s3953_s3 + $0x18] sm:$0xff]  ;;  %v595_v18 = vld [vmem:[%s3953_s3 + $0xf20] sm:$0xff] }
  0x1a   :  { %871 = vmatpush1.msra.mxu0 %v465_v39  ;;  %813 = vmatprep.subr.mxu1 %v240_v44  ;;  %v113_v10 = vld [vmem:[%s3953_s3 + $0x10] sm:$0xff]  ;;  %v598_v12 = vld [vmem:[%s3953_s3 + $0xf38] sm:$0xff]  ;;  %v564_v20 = vld [vmem:[%s3953_s3 + $0xe28] sm:$0xff] }
  0x1b   :  { %872 = vmatprep.subr.mxu0 %v434_v41  ;;  %814 = vmatpush1.msra.mxu1 %v239_v46  ;;  %v597_v19 = vld [vmem:[%s3953_s3 + $0xf30] sm:$0xff]  ;;  %v566_v21 = vld [vmem:[%s3953_s3 + $0xe38] sm:$0xff]  ;;  %v563_v22 = vld [vmem:[%s3953_s3 + $0xe20] sm:$0xff] }
  0x1c   :  { %873 = vmatpush1.msra.mxu0 %v433_v43  ;;  %815 = vmatprep.subr.mxu1 %v208_v48  ;;  %v565_v23 = vld [vmem:[%s3953_s3 + $0xe30] sm:$0xff]  ;;  %v532_v24 = vld [vmem:[%s3953_s3 + $0xd28] sm:$0xff]  ;;  %v534_v25 = vld [vmem:[%s3953_s3 + $0xd38] sm:$0xff] }
  0x1d   :  { %874 = vmatprep.subr.mxu0 %v402_v45  ;;  %816 = vmatpush1.msra.mxu1 %v207_v50  ;;  %v531_v26 = vld [vmem:[%s3953_s3 + $0xd20] sm:$0xff]  ;;  %v533_v27 = vld [vmem:[%s3953_s3 + $0xd30] sm:$0xff]  ;;  %v500_v28 = vld [vmem:[%s3953_s3 + $0xc28] sm:$0xff] }
  0x1e   :  { %875 = vmatpush1.msra.mxu0 %v401_v47  ;;  %817 = vmatprep.subr.mxu1 %v176_v52  ;;  %v502_v29 = vld [vmem:[%s3953_s3 + $0xc38] sm:$0xff]  ;;  %v499_v30 = vld [vmem:[%s3953_s3 + $0xc20] sm:$0xff]  ;;  %v501_v31 = vld [vmem:[%s3953_s3 + $0xc30] sm:$0xff] }
  0x1f   :  { %876 = vmatprep.subr.mxu0 %v370_v49  ;;  %818 = vmatpush1.msra.mxu1 %v175_v54  ;;  %v468_v32 = vld [vmem:[%s3953_s3 + $0xb28] sm:$0xff]  ;;  %v470_v33 = vld [vmem:[%s3953_s3 + $0xb38] sm:$0xff]  ;;  %v467_v34 = vld [vmem:[%s3953_s3 + $0xb20] sm:$0xff] }
  0x20   :  { %877 = vmatpush1.msra.mxu0 %v369_v51  ;;  %926 = vmatprep.mubr.f32.mxu0 %v2187_v0  ;;  %v469_v35 = vld [vmem:[%s3953_s3 + $0xb30] sm:$0xff]  ;;  %v436_v36 = vld [vmem:[%s3953_s3 + $0xa28] sm:$0xff]  ;;  %v438_v37 = vld [vmem:[%s3953_s3 + $0xa38] sm:$0xff] }
  0x21   :  { %878 = vmatprep.subr.mxu0 %v338_v53  ;;  %819 = vmatprep.subr.mxu1 %v144_v3  ;;  %v435_v38 = vld [vmem:[%s3953_s3 + $0xa20] sm:$0xff]  ;;  %v437_v39 = vld [vmem:[%s3953_s3 + $0xa30] sm:$0xff]  ;;  %v404_v40 = vld [vmem:[%s3953_s3 + $0x928] sm:$0xff] }
  0x22   :  { %879 = vmatpush1.msra.mxu0 %v337_v55  ;;  %820 = vmatpush1.msra.mxu1 %v143_v5  ;;  %v406_v41 = vld [vmem:[%s3953_s3 + $0x938] sm:$0xff]  ;;  %v403_v42 = vld [vmem:[%s3953_s3 + $0x920] sm:$0xff]  ;;  %v405_v43 = vld [vmem:[%s3953_s3 + $0x930] sm:$0xff] }
  0x23   :  { %880 = vmatprep.subr.mxu0 %v306_v56  ;;  %821 = vmatprep.subr.mxu1 %v112_v7  ;;  %v372_v44 = vld [vmem:[%s3953_s3 + $0x828] sm:$0xff]  ;;  %v374_v45 = vld [vmem:[%s3953_s3 + $0x838] sm:$0xff]  ;;  %v371_v46 = vld [vmem:[%s3953_s3 + $0x820] sm:$0xff] }
  0x24   :  { %881 = vmatpush1.msra.mxu0 %v305_v57  ;;  %822 = vmatpush1.msra.mxu1 %v111_v9  ;;  %v373_v47 = vld [vmem:[%s3953_s3 + $0x830] sm:$0xff]  ;;  %v340_v48 = vld [vmem:[%s3953_s3 + $0x728] sm:$0xff]  ;;  %v342_v49 = vld [vmem:[%s3953_s3 + $0x738] sm:$0xff] }
  0x25   :  { %882 = vmatprep.subr.mxu0 %v274_v58  ;;  %933 = vmatprep.subr.mxu1 %v596_v11  ;;  %v339_v50 = vld [vmem:[%s3953_s3 + $0x720] sm:$0xff]  ;;  %v341_v51 = vld [vmem:[%s3953_s3 + $0x730] sm:$0xff]  ;;  %v308_v52 = vld [vmem:[%s3953_s3 + $0x628] sm:$0xff] }
  0x26   :  { %883 = vmatpush1.msra.mxu0 %v273_v59  ;;  %v310_v53 = vld [vmem:[%s3953_s3 + $0x638] sm:$0xff]  ;;  %v307_v54 = vld [vmem:[%s3953_s3 + $0x620] sm:$0xff]  ;;  %v309_v55 = vld [vmem:[%s3953_s3 + $0x630] sm:$0xff] }
  0x27   :  { %884 = vmatprep.subr.mxu0 %v242_v60  ;;  %v276_v56 = vld [vmem:[%s3953_s3 + $0x528] sm:$0xff]  ;;  %v278_v57 = vld [vmem:[%s3953_s3 + $0x538] sm:$0xff]  ;;  %v275_v58 = vld [vmem:[%s3953_s3 + $0x520] sm:$0xff] }
  0x28   :  { %885 = vmatpush1.msra.mxu0 %v241_v61  ;;  %v277_v59 = vld [vmem:[%s3953_s3 + $0x530] sm:$0xff]  ;;  %v244_v60 = vld [vmem:[%s3953_s3 + $0x428] sm:$0xff]  ;;  %v246_v61 = vld [vmem:[%s3953_s3 + $0x438] sm:$0xff] }
  0x29   :  { %886 = vmatprep.subr.mxu0 %v210_v62  ;;  %v243_v62 = vld [vmem:[%s3953_s3 + $0x420] sm:$0xff]  ;;  %v180_v5 = vld [vmem:[%s3953_s3 + $0x228] sm:$0xff]  ;;  %vm2144_vm4 = vmor %vm2143_vm3, %vm2142_vm2 }
  0x2a   :  { %887 = vmatpush1.msra.mxu0 %v209_v63  ;;  %v245_v63 = vld [vmem:[%s3953_s3 + $0x430] sm:$0xff]  ;;  %v211_v3 = vld [vmem:[%s3953_s3 + $0x320] sm:$0xff]  ;;  %v148_v9 = vld [vmem:[%s3953_s3 + $0x128] sm:$0xff] }
  0x2b   :  { %888 = vmatprep.subr.mxu0 %v178_v1  ;;  %v212_v1 = vld [vmem:[%s3953_s3 + $0x328] sm:$0xff]  ;;  %v179_v7 = vld [vmem:[%s3953_s3 + $0x220] sm:$0xff]  ;;  %vm2146_vm6 = vmor %vm2145_vm5, %vm2144_vm4 }
  0x2c   :  { %889 = vmatpush1.msra.mxu0 %v177_v2  ;;  %v214_v2 = vld [vmem:[%s3953_s3 + $0x338] sm:$0xff]  ;;  %v147_v11 = vld [vmem:[%s3953_s3 + $0x120] sm:$0xff]  ;;  %vm2148_vm8 = vmor %vm2147_vm7, %vm2146_vm6 }
  0x2d   :  { %890 = vmatprep.subr.mxu0 %v146_v4  ;;  %v213_v4 = vld [vmem:[%s3953_s3 + $0x330] sm:$0xff] }
  0x2e   :  { %891 = vmatpush1.msra.mxu0 %v145_v6  ;;  %v182_v6 = vld [vmem:[%s3953_s3 + $0x238] sm:$0xff] }
  0x2f   :  { %892 = vmatprep.subr.mxu0 %v114_v8  ;;  %v181_v8 = vld [vmem:[%s3953_s3 + $0x230] sm:$0xff] }
  0x30   :  { %893 = vmatpush1.msra.mxu0 %v113_v10  ;;  %v150_v10 = vld [vmem:[%s3953_s3 + $0x138] sm:$0xff] }
  0x31   :  { %1004 = vmatprep.subr.mxu0 %v598_v12  ;;  %v149_v12 = vld [vmem:[%s3953_s3 + $0x130] sm:$0xff] }
  0xd1   :  { %v106_v14 = vpop.f32.mrf.mxu0 }
  0xd2   :  { %v107_v15 = vadd.f32 %v2154_v13, %v106_v14  ;;  %v116_v13 = vld [vmem:[%s3953_s3 + $0x28] sm:$0xff]  ;;  %v118_v14 = vld [vmem:[%s3953_s3 + $0x38] sm:$0xff] }
  0xd3   :  { %v2183_v16 = vpop.f32.mrf.mxu0 }
  0xd4   :  { %v2459_v17 = vmax.f32 %v107_v15, 0.0  ;;  %v115_v15 = vld [vmem:[%s3953_s3 + $0x20] sm:$0xff]  ;;  %v117_v16 = vld [vmem:[%s3953_s3 + $0x30] sm:$0xff] }
  0xd6   :  { %856 = vmatmul.mubr.f32.vlgmr.msra.gmra.mxu1 %v2459_v17  ;;  %927 = vmatmul.mubr.f32.vlgmr.msra.gmra.mxu0 %v2459_v17 }
  0xd7   :  { %934 = vmatpush1.msra.mxu1 %v595_v18  ;;  %1005 = vmatpush1.msra.mxu0 %v597_v19  ;;  %v600_v18 = vld [vmem:[%s3953_s3 + $0xf48] sm:$0xff]  ;;  %v602_v19 = vld [vmem:[%s3953_s3 + $0xf58] sm:$0xff] }
  0xd8   :  { %935 = vmatprep.subr.mxu1 %v564_v20  ;;  %1006 = vmatprep.subr.mxu0 %v566_v21  ;;  %v599_v20 = vld [vmem:[%s3953_s3 + $0xf40] sm:$0xff]  ;;  %v601_v21 = vld [vmem:[%s3953_s3 + $0xf50] sm:$0xff] }
  0xd9   :  { %936 = vmatpush1.msra.mxu1 %v563_v22  ;;  %1007 = vmatpush1.msra.mxu0 %v565_v23  ;;  %v568_v22 = vld [vmem:[%s3953_s3 + $0xe48] sm:$0xff]  ;;  %v570_v23 = vld [vmem:[%s3953_s3 + $0xe58] sm:$0xff] }
  0xda   :  { %937 = vmatprep.subr.mxu1 %v532_v24  ;;  %1008 = vmatprep.subr.mxu0 %v534_v25  ;;  %v567_v24 = vld [vmem:[%s3953_s3 + $0xe40] sm:$0xff]  ;;  %v569_v25 = vld [vmem:[%s3953_s3 + $0xe50] sm:$0xff] }
  0xdb   :  { %938 = vmatpush1.msra.mxu1 %v531_v26  ;;  %1009 = vmatpush1.msra.mxu0 %v533_v27  ;;  %v536_v26 = vld [vmem:[%s3953_s3 + $0xd48] sm:$0xff]  ;;  %v538_v27 = vld [vmem:[%s3953_s3 + $0xd58] sm:$0xff] }
  0xdc   :  { %939 = vmatprep.subr.mxu1 %v500_v28  ;;  %1010 = vmatprep.subr.mxu0 %v502_v29  ;;  %v535_v28 = vld [vmem:[%s3953_s3 + $0xd40] sm:$0xff]  ;;  %v537_v29 = vld [vmem:[%s3953_s3 + $0xd50] sm:$0xff] }
  0xdd   :  { %940 = vmatpush1.msra.mxu1 %v499_v30  ;;  %1011 = vmatpush1.msra.mxu0 %v501_v31  ;;  %v504_v30 = vld [vmem:[%s3953_s3 + $0xc48] sm:$0xff]  ;;  %v506_v31 = vld [vmem:[%s3953_s3 + $0xc58] sm:$0xff] }
  0xde   :  { %941 = vmatprep.subr.mxu1 %v468_v32  ;;  %1012 = vmatprep.subr.mxu0 %v470_v33  ;;  %v503_v32 = vld [vmem:[%s3953_s3 + $0xc40] sm:$0xff]  ;;  %v505_v33 = vld [vmem:[%s3953_s3 + $0xc50] sm:$0xff] }
  0xdf   :  { %942 = vmatpush1.msra.mxu1 %v467_v34  ;;  %1013 = vmatpush1.msra.mxu0 %v469_v35  ;;  %v472_v34 = vld [vmem:[%s3953_s3 + $0xb48] sm:$0xff]  ;;  %v474_v35 = vld [vmem:[%s3953_s3 + $0xb58] sm:$0xff] }
  0xe0   :  { %943 = vmatprep.subr.mxu1 %v436_v36  ;;  %1014 = vmatprep.subr.mxu0 %v438_v37  ;;  %v471_v36 = vld [vmem:[%s3953_s3 + $0xb40] sm:$0xff]  ;;  %v473_v37 = vld [vmem:[%s3953_s3 + $0xb50] sm:$0xff] }
  0xe1   :  { %944 = vmatpush1.msra.mxu1 %v435_v38  ;;  %1015 = vmatpush1.msra.mxu0 %v437_v39  ;;  %v440_v38 = vld [vmem:[%s3953_s3 + $0xa48] sm:$0xff]  ;;  %v442_v39 = vld [vmem:[%s3953_s3 + $0xa58] sm:$0xff] }
  0xe2   :  { %945 = vmatprep.subr.mxu1 %v404_v40  ;;  %1016 = vmatprep.subr.mxu0 %v406_v41  ;;  %v439_v40 = vld [vmem:[%s3953_s3 + $0xa40] sm:$0xff]  ;;  %v441_v41 = vld [vmem:[%s3953_s3 + $0xa50] sm:$0xff] }
  0xe3   :  { %946 = vmatpush1.msra.mxu1 %v403_v42  ;;  %1017 = vmatpush1.msra.mxu0 %v405_v43  ;;  %v408_v42 = vld [vmem:[%s3953_s3 + $0x948] sm:$0xff]  ;;  %v410_v43 = vld [vmem:[%s3953_s3 + $0x958] sm:$0xff] }
  0xe4   :  { %947 = vmatprep.subr.mxu1 %v372_v44  ;;  %1018 = vmatprep.subr.mxu0 %v374_v45  ;;  %v407_v44 = vld [vmem:[%s3953_s3 + $0x940] sm:$0xff]  ;;  %v409_v45 = vld [vmem:[%s3953_s3 + $0x950] sm:$0xff] }
  0xe5   :  { %948 = vmatpush1.msra.mxu1 %v371_v46  ;;  %1019 = vmatpush1.msra.mxu0 %v373_v47  ;;  %v376_v46 = vld [vmem:[%s3953_s3 + $0x848] sm:$0xff]  ;;  %v378_v47 = vld [vmem:[%s3953_s3 + $0x858] sm:$0xff] }
  0xe6   :  { %949 = vmatprep.subr.mxu1 %v340_v48  ;;  %1020 = vmatprep.subr.mxu0 %v342_v49  ;;  %v375_v48 = vld [vmem:[%s3953_s3 + $0x840] sm:$0xff]  ;;  %v377_v49 = vld [vmem:[%s3953_s3 + $0x850] sm:$0xff] }
  0xe7   :  { %950 = vmatpush1.msra.mxu1 %v339_v50  ;;  %1021 = vmatpush1.msra.mxu0 %v341_v51  ;;  %v344_v50 = vld [vmem:[%s3953_s3 + $0x748] sm:$0xff]  ;;  %v346_v51 = vld [vmem:[%s3953_s3 + $0x758] sm:$0xff] }
  0xe8   :  { %951 = vmatprep.subr.mxu1 %v308_v52  ;;  %1022 = vmatprep.subr.mxu0 %v310_v53  ;;  %v343_v52 = vld [vmem:[%s3953_s3 + $0x740] sm:$0xff]  ;;  %v345_v53 = vld [vmem:[%s3953_s3 + $0x750] sm:$0xff] }
  0xe9   :  { %952 = vmatpush1.msra.mxu1 %v307_v54  ;;  %1023 = vmatpush1.msra.mxu0 %v309_v55  ;;  %v312_v54 = vld [vmem:[%s3953_s3 + $0x648] sm:$0xff]  ;;  %v314_v55 = vld [vmem:[%s3953_s3 + $0x658] sm:$0xff] }
  0xea   :  { %953 = vmatprep.subr.mxu1 %v276_v56  ;;  %1024 = vmatprep.subr.mxu0 %v278_v57  ;;  %v311_v56 = vld [vmem:[%s3953_s3 + $0x640] sm:$0xff]  ;;  %v313_v57 = vld [vmem:[%s3953_s3 + $0x650] sm:$0xff] }
  0xeb   :  { %954 = vmatpush1.msra.mxu1 %v275_v58  ;;  %1025 = vmatpush1.msra.mxu0 %v277_v59  ;;  %v280_v58 = vld [vmem:[%s3953_s3 + $0x548] sm:$0xff]  ;;  %v282_v59 = vld [vmem:[%s3953_s3 + $0x558] sm:$0xff] }
  0xec   :  { %955 = vmatprep.subr.mxu1 %v244_v60  ;;  %1026 = vmatprep.subr.mxu0 %v246_v61  ;;  %v279_v60 = vld [vmem:[%s3953_s3 + $0x540] sm:$0xff]  ;;  %v281_v61 = vld [vmem:[%s3953_s3 + $0x550] sm:$0xff] }
  0xed   :  { %956 = vmatpush1.msra.mxu1 %v243_v62  ;;  %1027 = vmatpush1.msra.mxu0 %v245_v63  ;;  %v248_v62 = vld [vmem:[%s3953_s3 + $0x448] sm:$0xff]  ;;  %v250_v63 = vld [vmem:[%s3953_s3 + $0x458] sm:$0xff] }
  0xee   :  { %957 = vmatprep.subr.mxu1 %v212_v1  ;;  %1028 = vmatprep.subr.mxu0 %v214_v2  ;;  %v247_v1 = vld [vmem:[%s3953_s3 + $0x440] sm:$0xff]  ;;  %v249_v2 = vld [vmem:[%s3953_s3 + $0x450] sm:$0xff] }
  0xef   :  { %958 = vmatpush1.msra.mxu1 %v211_v3  ;;  %1029 = vmatpush1.msra.mxu0 %v213_v4  ;;  %v216_v3 = vld [vmem:[%s3953_s3 + $0x348] sm:$0xff]  ;;  %v218_v4 = vld [vmem:[%s3953_s3 + $0x358] sm:$0xff] }
  0xf0   :  { %959 = vmatprep.subr.mxu1 %v180_v5  ;;  %1030 = vmatprep.subr.mxu0 %v182_v6  ;;  %v215_v5 = vld [vmem:[%s3953_s3 + $0x340] sm:$0xff]  ;;  %v217_v6 = vld [vmem:[%s3953_s3 + $0x350] sm:$0xff] }
  0xf1   :  { %960 = vmatpush1.msra.mxu1 %v179_v7  ;;  %1031 = vmatpush1.msra.mxu0 %v181_v8  ;;  %v184_v7 = vld [vmem:[%s3953_s3 + $0x248] sm:$0xff]  ;;  %v186_v8 = vld [vmem:[%s3953_s3 + $0x258] sm:$0xff] }
  0xf2   :  { %961 = vmatprep.subr.mxu1 %v148_v9  ;;  %1032 = vmatprep.subr.mxu0 %v150_v10  ;;  %v183_v9 = vld [vmem:[%s3953_s3 + $0x240] sm:$0xff]  ;;  %v185_v10 = vld [vmem:[%s3953_s3 + $0x250] sm:$0xff] }
  0xf3   :  { %962 = vmatpush1.msra.mxu1 %v147_v11  ;;  %1033 = vmatpush1.msra.mxu0 %v149_v12  ;;  %v152_v11 = vld [vmem:[%s3953_s3 + $0x148] sm:$0xff]  ;;  %v154_v12 = vld [vmem:[%s3953_s3 + $0x158] sm:$0xff] }
  0xf4   :  { %963 = vmatprep.subr.mxu1 %v116_v13  ;;  %1034 = vmatprep.subr.mxu0 %v118_v14  ;;  %v151_v13 = vld [vmem:[%s3953_s3 + $0x140] sm:$0xff]  ;;  %v153_v14 = vld [vmem:[%s3953_s3 + $0x150] sm:$0xff] }
  0xf5   :  { %964 = vmatpush1.msra.mxu1 %v115_v15  ;;  %997 = vmatprep.mubr.f32.mxu1 %v2187_v0  ;;  %v120_v15 = vld [vmem:[%s3953_s3 + $0x48] sm:$0xff] }
  0xf6   :  { %1035 = vmatpush1.msra.mxu0 %v117_v16  ;;  %1068 = vmatprep.mubr.f32.mxu0 %v2187_v0  ;;  %v122_v16 = vld [vmem:[%s3953_s3 + $0x58] sm:$0xff] }
  0xf7   :  { %998 = vmatmul.mubr.f32.vlgmr.msra.gmra.mxu1 %v2459_v17  ;;  %1069 = vmatmul.mubr.f32.vlgmr.msra.gmra.mxu0 %v2459_v17 }
  0xf8   :  { %1075 = vmatprep.subr.mxu1 %v600_v18  ;;  %1146 = vmatprep.subr.mxu0 %v602_v19  ;;  %v119_v18 = vld [vmem:[%s3953_s3 + $0x40] sm:$0xff]  ;;  %v121_v19 = vld [vmem:[%s3953_s3 + $0x50] sm:$0xff] }
  0xf9   :  { %1076 = vmatpush1.msra.mxu1 %v599_v20  ;;  %1147 = vmatpush1.msra.mxu0 %v601_v21  ;;  %v604_v20 = vld [vmem:[%s3953_s3 + $0xf68] sm:$0xff]  ;;  %v606_v21 = vld [vmem:[%s3953_s3 + $0xf78] sm:$0xff] }
  0xfa   :  { %1077 = vmatprep.subr.mxu1 %v568_v22  ;;  %1148 = vmatprep.subr.mxu0 %v570_v23  ;;  %v603_v22 = vld [vmem:[%s3953_s3 + $0xf60] sm:$0xff]  ;;  %v605_v23 = vld [vmem:[%s3953_s3 + $0xf70] sm:$0xff] }
  0xfb   :  { %1078 = vmatpush1.msra.mxu1 %v567_v24  ;;  %1149 = vmatpush1.msra.mxu0 %v569_v25  ;;  %v572_v24 = vld [vmem:[%s3953_s3 + $0xe68] sm:$0xff]  ;;  %v574_v25 = vld [vmem:[%s3953_s3 + $0xe78] sm:$0xff] }
  0xfc   :  { %1079 = vmatprep.subr.mxu1 %v536_v26  ;;  %1150 = vmatprep.subr.mxu0 %v538_v27  ;;  %v571_v26 = vld [vmem:[%s3953_s3 + $0xe60] sm:$0xff]  ;;  %v573_v27 = vld [vmem:[%s3953_s3 + $0xe70] sm:$0xff] }
  0xfd   :  { %1080 = vmatpush1.msra.mxu1 %v535_v28  ;;  %1151 = vmatpush1.msra.mxu0 %v537_v29  ;;  %v540_v28 = vld [vmem:[%s3953_s3 + $0xd68] sm:$0xff]  ;;  %v542_v29 = vld [vmem:[%s3953_s3 + $0xd78] sm:$0xff] }
  0xfe   :  { %1081 = vmatprep.subr.mxu1 %v504_v30  ;;  %1152 = vmatprep.subr.mxu0 %v506_v31  ;;  %v539_v30 = vld [vmem:[%s3953_s3 + $0xd60] sm:$0xff]  ;;  %v541_v31 = vld [vmem:[%s3953_s3 + $0xd70] sm:$0xff] }
  0xff   :  { %1082 = vmatpush1.msra.mxu1 %v503_v32  ;;  %1153 = vmatpush1.msra.mxu0 %v505_v33  ;;  %v508_v32 = vld [vmem:[%s3953_s3 + $0xc68] sm:$0xff]  ;;  %v510_v33 = vld [vmem:[%s3953_s3 + $0xc78] sm:$0xff] }
 0x100   :  { %1083 = vmatprep.subr.mxu1 %v472_v34  ;;  %1154 = vmatprep.subr.mxu0 %v474_v35  ;;  %v507_v34 = vld [vmem:[%s3953_s3 + $0xc60] sm:$0xff]  ;;  %v509_v35 = vld [vmem:[%s3953_s3 + $0xc70] sm:$0xff] }
 0x101   :  { %1084 = vmatpush1.msra.mxu1 %v471_v36  ;;  %1155 = vmatpush1.msra.mxu0 %v473_v37  ;;  %v476_v36 = vld [vmem:[%s3953_s3 + $0xb68] sm:$0xff]  ;;  %v478_v37 = vld [vmem:[%s3953_s3 + $0xb78] sm:$0xff] }
 0x102   :  { %1085 = vmatprep.subr.mxu1 %v440_v38  ;;  %1156 = vmatprep.subr.mxu0 %v442_v39  ;;  %v475_v38 = vld [vmem:[%s3953_s3 + $0xb60] sm:$0xff]  ;;  %v477_v39 = vld [vmem:[%s3953_s3 + $0xb70] sm:$0xff] }
 0x103   :  { %1086 = vmatpush1.msra.mxu1 %v439_v40  ;;  %1157 = vmatpush1.msra.mxu0 %v441_v41  ;;  %v444_v40 = vld [vmem:[%s3953_s3 + $0xa68] sm:$0xff]  ;;  %v446_v41 = vld [vmem:[%s3953_s3 + $0xa78] sm:$0xff] }
 0x104   :  { %1087 = vmatprep.subr.mxu1 %v408_v42  ;;  %1158 = vmatprep.subr.mxu0 %v410_v43  ;;  %v443_v42 = vld [vmem:[%s3953_s3 + $0xa60] sm:$0xff]  ;;  %v445_v43 = vld [vmem:[%s3953_s3 + $0xa70] sm:$0xff] }
 0x105   :  { %1088 = vmatpush1.msra.mxu1 %v407_v44  ;;  %1159 = vmatpush1.msra.mxu0 %v409_v45  ;;  %v412_v44 = vld [vmem:[%s3953_s3 + $0x968] sm:$0xff]  ;;  %v414_v45 = vld [vmem:[%s3953_s3 + $0x978] sm:$0xff] }
 0x106   :  { %1089 = vmatprep.subr.mxu1 %v376_v46  ;;  %1160 = vmatprep.subr.mxu0 %v378_v47  ;;  %v411_v46 = vld [vmem:[%s3953_s3 + $0x960] sm:$0xff]  ;;  %v413_v47 = vld [vmem:[%s3953_s3 + $0x970] sm:$0xff] }
 0x107   :  { %1090 = vmatpush1.msra.mxu1 %v375_v48  ;;  %1161 = vmatpush1.msra.mxu0 %v377_v49  ;;  %v380_v48 = vld [vmem:[%s3953_s3 + $0x868] sm:$0xff]  ;;  %v382_v49 = vld [vmem:[%s3953_s3 + $0x878] sm:$0xff] }
 0x108   :  { %1091 = vmatprep.subr.mxu1 %v344_v50  ;;  %1162 = vmatprep.subr.mxu0 %v346_v51  ;;  %v379_v50 = vld [vmem:[%s3953_s3 + $0x860] sm:$0xff]  ;;  %v381_v51 = vld [vmem:[%s3953_s3 + $0x870] sm:$0xff] }
 0x109   :  { %1092 = vmatpush1.msra.mxu1 %v343_v52  ;;  %1163 = vmatpush1.msra.mxu0 %v345_v53  ;;  %v348_v52 = vld [vmem:[%s3953_s3 + $0x768] sm:$0xff]  ;;  %v350_v53 = vld [vmem:[%s3953_s3 + $0x778] sm:$0xff] }
 0x10a   :  { %1093 = vmatprep.subr.mxu1 %v312_v54  ;;  %1164 = vmatprep.subr.mxu0 %v314_v55  ;;  %v347_v54 = vld [vmem:[%s3953_s3 + $0x760] sm:$0xff]  ;;  %v349_v55 = vld [vmem:[%s3953_s3 + $0x770] sm:$0xff] }
 0x10b   :  { %1094 = vmatpush1.msra.mxu1 %v311_v56  ;;  %1165 = vmatpush1.msra.mxu0 %v313_v57  ;;  %v316_v56 = vld [vmem:[%s3953_s3 + $0x668] sm:$0xff]  ;;  %v318_v57 = vld [vmem:[%s3953_s3 + $0x678] sm:$0xff] }
 0x10c   :  { %1095 = vmatprep.subr.mxu1 %v280_v58  ;;  %1166 = vmatprep.subr.mxu0 %v282_v59  ;;  %v315_v58 = vld [vmem:[%s3953_s3 + $0x660] sm:$0xff]  ;;  %v317_v59 = vld [vmem:[%s3953_s3 + $0x670] sm:$0xff] }
 0x10d   :  { %1096 = vmatpush1.msra.mxu1 %v279_v60  ;;  %1167 = vmatpush1.msra.mxu0 %v281_v61  ;;  %v284_v60 = vld [vmem:[%s3953_s3 + $0x568] sm:$0xff]  ;;  %v286_v61 = vld [vmem:[%s3953_s3 + $0x578] sm:$0xff] }
 0x10e   :  { %1097 = vmatprep.subr.mxu1 %v248_v62  ;;  %1168 = vmatprep.subr.mxu0 %v250_v63  ;;  %v283_v62 = vld [vmem:[%s3953_s3 + $0x560] sm:$0xff]  ;;  %v285_v63 = vld [vmem:[%s3953_s3 + $0x570] sm:$0xff] }
 0x10f   :  { %1098 = vmatpush1.msra.mxu1 %v247_v1  ;;  %1169 = vmatpush1.msra.mxu0 %v249_v2  ;;  %v252_v1 = vld [vmem:[%s3953_s3 + $0x468] sm:$0xff]  ;;  %v254_v2 = vld [vmem:[%s3953_s3 + $0x478] sm:$0xff] }
 0x110   :  { %1099 = vmatprep.subr.mxu1 %v216_v3  ;;  %1170 = vmatprep.subr.mxu0 %v218_v4  ;;  %v251_v3 = vld [vmem:[%s3953_s3 + $0x460] sm:$0xff]  ;;  %v253_v4 = vld [vmem:[%s3953_s3 + $0x470] sm:$0xff] }
 0x111   :  { %1100 = vmatpush1.msra.mxu1 %v215_v5  ;;  %1171 = vmatpush1.msra.mxu0 %v217_v6  ;;  %v220_v5 = vld [vmem:[%s3953_s3 + $0x368] sm:$0xff]  ;;  %v222_v6 = vld [vmem:[%s3953_s3 + $0x378] sm:$0xff] }
 0x112   :  { %1101 = vmatprep.subr.mxu1 %v184_v7  ;;  %1172 = vmatprep.subr.mxu0 %v186_v8  ;;  %v219_v7 = vld [vmem:[%s3953_s3 + $0x360] sm:$0xff]  ;;  %v221_v8 = vld [vmem:[%s3953_s3 + $0x370] sm:$0xff] }
 0x113   :  { %1102 = vmatpush1.msra.mxu1 %v183_v9  ;;  %1173 = vmatpush1.msra.mxu0 %v185_v10  ;;  %v188_v9 = vld [vmem:[%s3953_s3 + $0x268] sm:$0xff]  ;;  %v190_v10 = vld [vmem:[%s3953_s3 + $0x278] sm:$0xff] }
 0x114   :  { %1103 = vmatprep.subr.mxu1 %v152_v11  ;;  %1174 = vmatprep.subr.mxu0 %v154_v12  ;;  %v187_v11 = vld [vmem:[%s3953_s3 + $0x260] sm:$0xff]  ;;  %v189_v12 = vld [vmem:[%s3953_s3 + $0x270] sm:$0xff] }
 0x115   :  { %1104 = vmatpush1.msra.mxu1 %v151_v13  ;;  %1175 = vmatpush1.msra.mxu0 %v153_v14  ;;  %v156_v13 = vld [vmem:[%s3953_s3 + $0x168] sm:$0xff]  ;;  %v158_v14 = vld [vmem:[%s3953_s3 + $0x178] sm:$0xff] }
 0x116   :  { %1105 = vmatprep.subr.mxu1 %v120_v15  ;;  %1176 = vmatprep.subr.mxu0 %v122_v16  ;;  %v155_v15 = vld [vmem:[%s3953_s3 + $0x160] sm:$0xff]  ;;  %v157_v16 = vld [vmem:[%s3953_s3 + $0x170] sm:$0xff] }
 0x117   :  { %1106 = vmatpush1.msra.mxu1 %v119_v18  ;;  %1139 = vmatprep.mubr.f32.mxu1 %v2187_v0  ;;  %v124_v18 = vld [vmem:[%s3953_s3 + $0x68] sm:$0xff] }
 0x118   :  { %1177 = vmatpush1.msra.mxu0 %v121_v19  ;;  %1210 = vmatprep.mubr.f32.mxu0 %v2187_v0  ;;  %v126_v19 = vld [vmem:[%s3953_s3 + $0x78] sm:$0xff] }
 0x119   :  { %1140 = vmatmul.mubr.f32.vlgmr.msra.gmra.mxu1 %v2459_v17  ;;  %1211 = vmatmul.mubr.f32.vlgmr.msra.gmra.mxu0 %v2459_v17 }
 0x11a   :  { %1217 = vmatprep.subr.mxu1 %v604_v20  ;;  %1288 = vmatprep.subr.mxu0 %v606_v21  ;;  %v123_v20 = vld [vmem:[%s3953_s3 + $0x60] sm:$0xff]  ;;  %v125_v21 = vld [vmem:[%s3953_s3 + $0x70] sm:$0xff] }
 0x11b   :  { %1218 = vmatpush1.msra.mxu1 %v603_v22  ;;  %1289 = vmatpush1.msra.mxu0 %v605_v23  ;;  %v608_v22 = vld [vmem:[%s3953_s3 + $0xf88] sm:$0xff]  ;;  %v610_v23 = vld [vmem:[%s3953_s3 + $0xf98] sm:$0xff] }
 0x11c   :  { %1219 = vmatprep.subr.mxu1 %v572_v24  ;;  %1290 = vmatprep.subr.mxu0 %v574_v25  ;;  %v607_v24 = vld [vmem:[%s3953_s3 + $0xf80] sm:$0xff]  ;;  %v609_v25 = vld [vmem:[%s3953_s3 + $0xf90] sm:$0xff] }
 0x11d   :  { %1220 = vmatpush1.msra.mxu1 %v571_v26  ;;  %1291 = vmatpush1.msra.mxu0 %v573_v27  ;;  %v576_v26 = vld [vmem:[%s3953_s3 + $0xe88] sm:$0xff]  ;;  %v578_v27 = vld [vmem:[%s3953_s3 + $0xe98] sm:$0xff] }
 0x11e   :  { %1221 = vmatprep.subr.mxu1 %v540_v28  ;;  %1292 = vmatprep.subr.mxu0 %v542_v29  ;;  %v575_v28 = vld [vmem:[%s3953_s3 + $0xe80] sm:$0xff]  ;;  %v577_v29 = vld [vmem:[%s3953_s3 + $0xe90] sm:$0xff] }
 0x11f   :  { %1222 = vmatpush1.msra.mxu1 %v539_v30  ;;  %1293 = vmatpush1.msra.mxu0 %v541_v31  ;;  %v544_v30 = vld [vmem:[%s3953_s3 + $0xd88] sm:$0xff]  ;;  %v546_v31 = vld [vmem:[%s3953_s3 + $0xd98] sm:$0xff] }
 0x120   :  { %1223 = vmatprep.subr.mxu1 %v508_v32  ;;  %1294 = vmatprep.subr.mxu0 %v510_v33  ;;  %v543_v32 = vld [vmem:[%s3953_s3 + $0xd80] sm:$0xff]  ;;  %v545_v33 = vld [vmem:[%s3953_s3 + $0xd90] sm:$0xff] }
 0x121   :  { %1224 = vmatpush1.msra.mxu1 %v507_v34  ;;  %1295 = vmatpush1.msra.mxu0 %v509_v35  ;;  %v512_v34 = vld [vmem:[%s3953_s3 + $0xc88] sm:$0xff]  ;;  %v514_v35 = vld [vmem:[%s3953_s3 + $0xc98] sm:$0xff] }
 0x122   :  { %1225 = vmatprep.subr.mxu1 %v476_v36  ;;  %1296 = vmatprep.subr.mxu0 %v478_v37  ;;  %v511_v36 = vld [vmem:[%s3953_s3 + $0xc80] sm:$0xff]  ;;  %v513_v37 = vld [vmem:[%s3953_s3 + $0xc90] sm:$0xff] }
 0x123   :  { %1226 = vmatpush1.msra.mxu1 %v475_v38  ;;  %1297 = vmatpush1.msra.mxu0 %v477_v39  ;;  %v480_v38 = vld [vmem:[%s3953_s3 + $0xb88] sm:$0xff]  ;;  %v482_v39 = vld [vmem:[%s3953_s3 + $0xb98] sm:$0xff] }
 0x124   :  { %1227 = vmatprep.subr.mxu1 %v444_v40  ;;  %1298 = vmatprep.subr.mxu0 %v446_v41  ;;  %v479_v40 = vld [vmem:[%s3953_s3 + $0xb80] sm:$0xff]  ;;  %v481_v41 = vld [vmem:[%s3953_s3 + $0xb90] sm:$0xff] }
 0x125   :  { %1228 = vmatpush1.msra.mxu1 %v443_v42  ;;  %1299 = vmatpush1.msra.mxu0 %v445_v43  ;;  %v448_v42 = vld [vmem:[%s3953_s3 + $0xa88] sm:$0xff]  ;;  %v450_v43 = vld [vmem:[%s3953_s3 + $0xa98] sm:$0xff] }
 0x126   :  { %1229 = vmatprep.subr.mxu1 %v412_v44  ;;  %1300 = vmatprep.subr.mxu0 %v414_v45  ;;  %v447_v44 = vld [vmem:[%s3953_s3 + $0xa80] sm:$0xff]  ;;  %v449_v45 = vld [vmem:[%s3953_s3 + $0xa90] sm:$0xff] }
 0x127   :  { %1230 = vmatpush1.msra.mxu1 %v411_v46  ;;  %1301 = vmatpush1.msra.mxu0 %v413_v47  ;;  %v416_v46 = vld [vmem:[%s3953_s3 + $0x988] sm:$0xff]  ;;  %v418_v47 = vld [vmem:[%s3953_s3 + $0x998] sm:$0xff] }
 0x128   :  { %1231 = vmatprep.subr.mxu1 %v380_v48  ;;  %1302 = vmatprep.subr.mxu0 %v382_v49  ;;  %v415_v48 = vld [vmem:[%s3953_s3 + $0x980] sm:$0xff]  ;;  %v417_v49 = vld [vmem:[%s3953_s3 + $0x990] sm:$0xff] }
 0x129   :  { %1232 = vmatpush1.msra.mxu1 %v379_v50  ;;  %1303 = vmatpush1.msra.mxu0 %v381_v51  ;;  %v384_v50 = vld [vmem:[%s3953_s3 + $0x888] sm:$0xff]  ;;  %v386_v51 = vld [vmem:[%s3953_s3 + $0x898] sm:$0xff] }
 0x12a   :  { %1233 = vmatprep.subr.mxu1 %v348_v52  ;;  %1304 = vmatprep.subr.mxu0 %v350_v53  ;;  %v383_v52 = vld [vmem:[%s3953_s3 + $0x880] sm:$0xff]  ;;  %v385_v53 = vld [vmem:[%s3953_s3 + $0x890] sm:$0xff] }
 0x12b   :  { %1234 = vmatpush1.msra.mxu1 %v347_v54  ;;  %1305 = vmatpush1.msra.mxu0 %v349_v55  ;;  %v352_v54 = vld [vmem:[%s3953_s3 + $0x788] sm:$0xff]  ;;  %v354_v55 = vld [vmem:[%s3953_s3 + $0x798] sm:$0xff] }
 0x12c   :  { %1235 = vmatprep.subr.mxu1 %v316_v56  ;;  %1306 = vmatprep.subr.mxu0 %v318_v57  ;;  %v351_v56 = vld [vmem:[%s3953_s3 + $0x780] sm:$0xff]  ;;  %v353_v57 = vld [vmem:[%s3953_s3 + $0x790] sm:$0xff] }
 0x12d   :  { %1236 = vmatpush1.msra.mxu1 %v315_v58  ;;  %1307 = vmatpush1.msra.mxu0 %v317_v59  ;;  %v320_v58 = vld [vmem:[%s3953_s3 + $0x688] sm:$0xff]  ;;  %v322_v59 = vld [vmem:[%s3953_s3 + $0x698] sm:$0xff] }
 0x12e   :  { %1237 = vmatprep.subr.mxu1 %v284_v60  ;;  %1308 = vmatprep.subr.mxu0 %v286_v61  ;;  %v319_v60 = vld [vmem:[%s3953_s3 + $0x680] sm:$0xff]  ;;  %v321_v61 = vld [vmem:[%s3953_s3 + $0x690] sm:$0xff] }
 0x12f   :  { %1238 = vmatpush1.msra.mxu1 %v283_v62  ;;  %1309 = vmatpush1.msra.mxu0 %v285_v63  ;;  %v288_v62 = vld [vmem:[%s3953_s3 + $0x588] sm:$0xff]  ;;  %v290_v63 = vld [vmem:[%s3953_s3 + $0x598] sm:$0xff] }
 0x130   :  { %1239 = vmatprep.subr.mxu1 %v252_v1  ;;  %1310 = vmatprep.subr.mxu0 %v254_v2  ;;  %v287_v1 = vld [vmem:[%s3953_s3 + $0x580] sm:$0xff]  ;;  %v289_v2 = vld [vmem:[%s3953_s3 + $0x590] sm:$0xff] }
 0x131   :  { %1240 = vmatpush1.msra.mxu1 %v251_v3  ;;  %1311 = vmatpush1.msra.mxu0 %v253_v4  ;;  %v256_v3 = vld [vmem:[%s3953_s3 + $0x488] sm:$0xff]  ;;  %v258_v4 = vld [vmem:[%s3953_s3 + $0x498] sm:$0xff] }
 0x132   :  { %1241 = vmatprep.subr.mxu1 %v220_v5  ;;  %1312 = vmatprep.subr.mxu0 %v222_v6  ;;  %v255_v5 = vld [vmem:[%s3953_s3 + $0x480] sm:$0xff]  ;;  %v257_v6 = vld [vmem:[%s3953_s3 + $0x490] sm:$0xff] }
 0x133   :  { %1242 = vmatpush1.msra.mxu1 %v219_v7  ;;  %1313 = vmatpush1.msra.mxu0 %v221_v8  ;;  %v224_v7 = vld [vmem:[%s3953_s3 + $0x388] sm:$0xff]  ;;  %v226_v8 = vld [vmem:[%s3953_s3 + $0x398] sm:$0xff] }
 0x134   :  { %1243 = vmatprep.subr.mxu1 %v188_v9  ;;  %1314 = vmatprep.subr.mxu0 %v190_v10  ;;  %v223_v9 = vld [vmem:[%s3953_s3 + $0x380] sm:$0xff]  ;;  %v225_v10 = vld [vmem:[%s3953_s3 + $0x390] sm:$0xff] }
 0x135   :  { %1244 = vmatpush1.msra.mxu1 %v187_v11  ;;  %1315 = vmatpush1.msra.mxu0 %v189_v12  ;;  %v192_v11 = vld [vmem:[%s3953_s3 + $0x288] sm:$0xff]  ;;  %v194_v12 = vld [vmem:[%s3953_s3 + $0x298] sm:$0xff] }
 0x136   :  { %1245 = vmatprep.subr.mxu1 %v156_v13  ;;  %1316 = vmatprep.subr.mxu0 %v158_v14  ;;  %v191_v13 = vld [vmem:[%s3953_s3 + $0x280] sm:$0xff]  ;;  %v193_v14 = vld [vmem:[%s3953_s3 + $0x290] sm:$0xff] }
 0x137   :  { %1246 = vmatpush1.msra.mxu1 %v155_v15  ;;  %1317 = vmatpush1.msra.mxu0 %v157_v16  ;;  %v160_v15 = vld [vmem:[%s3953_s3 + $0x188] sm:$0xff]  ;;  %v162_v16 = vld [vmem:[%s3953_s3 + $0x198] sm:$0xff] }
 0x138   :  { %1247 = vmatprep.subr.mxu1 %v124_v18  ;;  %1318 = vmatprep.subr.mxu0 %v126_v19  ;;  %v159_v18 = vld [vmem:[%s3953_s3 + $0x180] sm:$0xff]  ;;  %v161_v19 = vld [vmem:[%s3953_s3 + $0x190] sm:$0xff] }
 0x139   :  { %1248 = vmatpush1.msra.mxu1 %v123_v20  ;;  %1281 = vmatprep.mubr.f32.mxu1 %v2187_v0  ;;  %v128_v20 = vld [vmem:[%s3953_s3 + $0x88] sm:$0xff] }
 0x13a   :  { %1319 = vmatpush1.msra.mxu0 %v125_v21  ;;  %1352 = vmatprep.mubr.f32.mxu0 %v2187_v0  ;;  %v130_v21 = vld [vmem:[%s3953_s3 + $0x98] sm:$0xff] }
 0x13b   :  { %1282 = vmatmul.mubr.f32.vlgmr.msra.gmra.mxu1 %v2459_v17  ;;  %1353 = vmatmul.mubr.f32.vlgmr.msra.gmra.mxu0 %v2459_v17 }
 0x13c   :  { %1359 = vmatprep.subr.mxu1 %v608_v22  ;;  %1430 = vmatprep.subr.mxu0 %v610_v23  ;;  %v127_v22 = vld [vmem:[%s3953_s3 + $0x80] sm:$0xff]  ;;  %v129_v23 = vld [vmem:[%s3953_s3 + $0x90] sm:$0xff] }
 0x13d   :  { %1360 = vmatpush1.msra.mxu1 %v607_v24  ;;  %1431 = vmatpush1.msra.mxu0 %v609_v25  ;;  %v612_v24 = vld [vmem:[%s3953_s3 + $0xfa8] sm:$0xff]  ;;  %v614_v25 = vld [vmem:[%s3953_s3 + $0xfb8] sm:$0xff] }
 0x13e   :  { %1361 = vmatprep.subr.mxu1 %v576_v26  ;;  %1432 = vmatprep.subr.mxu0 %v578_v27  ;;  %v611_v26 = vld [vmem:[%s3953_s3 + $0xfa0] sm:$0xff]  ;;  %v613_v27 = vld [vmem:[%s3953_s3 + $0xfb0] sm:$0xff] }
 0x13f   :  { %1362 = vmatpush1.msra.mxu1 %v575_v28  ;;  %1433 = vmatpush1.msra.mxu0 %v577_v29  ;;  %v580_v28 = vld [vmem:[%s3953_s3 + $0xea8] sm:$0xff]  ;;  %v582_v29 = vld [vmem:[%s3953_s3 + $0xeb8] sm:$0xff] }
 0x140   :  { %1363 = vmatprep.subr.mxu1 %v544_v30  ;;  %1434 = vmatprep.subr.mxu0 %v546_v31  ;;  %v579_v30 = vld [vmem:[%s3953_s3 + $0xea0] sm:$0xff]  ;;  %v581_v31 = vld [vmem:[%s3953_s3 + $0xeb0] sm:$0xff] }
 0x141   :  { %1364 = vmatpush1.msra.mxu1 %v543_v32  ;;  %1435 = vmatpush1.msra.mxu0 %v545_v33  ;;  %v548_v32 = vld [vmem:[%s3953_s3 + $0xda8] sm:$0xff]  ;;  %v550_v33 = vld [vmem:[%s3953_s3 + $0xdb8] sm:$0xff] }
 0x142   :  { %1365 = vmatprep.subr.mxu1 %v512_v34  ;;  %1436 = vmatprep.subr.mxu0 %v514_v35  ;;  %v547_v34 = vld [vmem:[%s3953_s3 + $0xda0] sm:$0xff]  ;;  %v549_v35 = vld [vmem:[%s3953_s3 + $0xdb0] sm:$0xff] }
 0x143   :  { %1366 = vmatpush1.msra.mxu1 %v511_v36  ;;  %1437 = vmatpush1.msra.mxu0 %v513_v37  ;;  %v516_v36 = vld [vmem:[%s3953_s3 + $0xca8] sm:$0xff]  ;;  %v518_v37 = vld [vmem:[%s3953_s3 + $0xcb8] sm:$0xff] }
 0x144   :  { %1367 = vmatprep.subr.mxu1 %v480_v38  ;;  %1438 = vmatprep.subr.mxu0 %v482_v39  ;;  %v515_v38 = vld [vmem:[%s3953_s3 + $0xca0] sm:$0xff]  ;;  %v517_v39 = vld [vmem:[%s3953_s3 + $0xcb0] sm:$0xff] }
 0x145   :  { %1368 = vmatpush1.msra.mxu1 %v479_v40  ;;  %1439 = vmatpush1.msra.mxu0 %v481_v41  ;;  %v484_v40 = vld [vmem:[%s3953_s3 + $0xba8] sm:$0xff]  ;;  %v486_v41 = vld [vmem:[%s3953_s3 + $0xbb8] sm:$0xff] }
 0x146   :  { %1369 = vmatprep.subr.mxu1 %v448_v42  ;;  %1440 = vmatprep.subr.mxu0 %v450_v43  ;;  %v483_v42 = vld [vmem:[%s3953_s3 + $0xba0] sm:$0xff]  ;;  %v485_v43 = vld [vmem:[%s3953_s3 + $0xbb0] sm:$0xff] }
 0x147   :  { %1370 = vmatpush1.msra.mxu1 %v447_v44  ;;  %1441 = vmatpush1.msra.mxu0 %v449_v45  ;;  %v452_v44 = vld [vmem:[%s3953_s3 + $0xaa8] sm:$0xff]  ;;  %v454_v45 = vld [vmem:[%s3953_s3 + $0xab8] sm:$0xff] }
 0x148   :  { %1371 = vmatprep.subr.mxu1 %v416_v46  ;;  %1442 = vmatprep.subr.mxu0 %v418_v47  ;;  %v451_v46 = vld [vmem:[%s3953_s3 + $0xaa0] sm:$0xff]  ;;  %v453_v47 = vld [vmem:[%s3953_s3 + $0xab0] sm:$0xff] }
 0x149   :  { %1372 = vmatpush1.msra.mxu1 %v415_v48  ;;  %1443 = vmatpush1.msra.mxu0 %v417_v49  ;;  %v420_v48 = vld [vmem:[%s3953_s3 + $0x9a8] sm:$0xff]  ;;  %v422_v49 = vld [vmem:[%s3953_s3 + $0x9b8] sm:$0xff] }
 0x14a   :  { %1373 = vmatprep.subr.mxu1 %v384_v50  ;;  %1444 = vmatprep.subr.mxu0 %v386_v51  ;;  %v419_v50 = vld [vmem:[%s3953_s3 + $0x9a0] sm:$0xff]  ;;  %v421_v51 = vld [vmem:[%s3953_s3 + $0x9b0] sm:$0xff] }
 0x14b   :  { %1374 = vmatpush1.msra.mxu1 %v383_v52  ;;  %1445 = vmatpush1.msra.mxu0 %v385_v53  ;;  %v388_v52 = vld [vmem:[%s3953_s3 + $0x8a8] sm:$0xff]  ;;  %v390_v53 = vld [vmem:[%s3953_s3 + $0x8b8] sm:$0xff] }
 0x14c   :  { %1375 = vmatprep.subr.mxu1 %v352_v54  ;;  %1446 = vmatprep.subr.mxu0 %v354_v55  ;;  %v387_v54 = vld [vmem:[%s3953_s3 + $0x8a0] sm:$0xff]  ;;  %v389_v55 = vld [vmem:[%s3953_s3 + $0x8b0] sm:$0xff] }
 0x14d   :  { %1376 = vmatpush1.msra.mxu1 %v351_v56  ;;  %1447 = vmatpush1.msra.mxu0 %v353_v57  ;;  %v356_v56 = vld [vmem:[%s3953_s3 + $0x7a8] sm:$0xff]  ;;  %v358_v57 = vld [vmem:[%s3953_s3 + $0x7b8] sm:$0xff] }
 0x14e   :  { %1377 = vmatprep.subr.mxu1 %v320_v58  ;;  %1448 = vmatprep.subr.mxu0 %v322_v59  ;;  %v355_v58 = vld [vmem:[%s3953_s3 + $0x7a0] sm:$0xff]  ;;  %v357_v59 = vld [vmem:[%s3953_s3 + $0x7b0] sm:$0xff] }
 0x14f   :  { %1378 = vmatpush1.msra.mxu1 %v319_v60  ;;  %1449 = vmatpush1.msra.mxu0 %v321_v61  ;;  %v324_v60 = vld [vmem:[%s3953_s3 + $0x6a8] sm:$0xff]  ;;  %v326_v61 = vld [vmem:[%s3953_s3 + $0x6b8] sm:$0xff] }
 0x150   :  { %1379 = vmatprep.subr.mxu1 %v288_v62  ;;  %1450 = vmatprep.subr.mxu0 %v290_v63  ;;  %v323_v62 = vld [vmem:[%s3953_s3 + $0x6a0] sm:$0xff]  ;;  %v325_v63 = vld [vmem:[%s3953_s3 + $0x6b0] sm:$0xff] }
 0x151   :  { %1380 = vmatpush1.msra.mxu1 %v287_v1  ;;  %1451 = vmatpush1.msra.mxu0 %v289_v2  ;;  %v292_v1 = vld [vmem:[%s3953_s3 + $0x5a8] sm:$0xff]  ;;  %v294_v2 = vld [vmem:[%s3953_s3 + $0x5b8] sm:$0xff] }
 0x152   :  { %1381 = vmatprep.subr.mxu1 %v256_v3  ;;  %1452 = vmatprep.subr.mxu0 %v258_v4  ;;  %v291_v3 = vld [vmem:[%s3953_s3 + $0x5a0] sm:$0xff]  ;;  %v293_v4 = vld [vmem:[%s3953_s3 + $0x5b0] sm:$0xff] }
 0x153   :  { %1382 = vmatpush1.msra.mxu1 %v255_v5  ;;  %1453 = vmatpush1.msra.mxu0 %v257_v6  ;;  %v260_v5 = vld [vmem:[%s3953_s3 + $0x4a8] sm:$0xff]  ;;  %v262_v6 = vld [vmem:[%s3953_s3 + $0x4b8] sm:$0xff] }
 0x154   :  { %1383 = vmatprep.subr.mxu1 %v224_v7  ;;  %1454 = vmatprep.subr.mxu0 %v226_v8  ;;  %v259_v7 = vld [vmem:[%s3953_s3 + $0x4a0] sm:$0xff]  ;;  %v261_v8 = vld [vmem:[%s3953_s3 + $0x4b0] sm:$0xff] }
 0x155   :  { %1384 = vmatpush1.msra.mxu1 %v223_v9  ;;  %1455 = vmatpush1.msra.mxu0 %v225_v10  ;;  %v228_v9 = vld [vmem:[%s3953_s3 + $0x3a8] sm:$0xff]  ;;  %v230_v10 = vld [vmem:[%s3953_s3 + $0x3b8] sm:$0xff] }
 0x156   :  { %1385 = vmatprep.subr.mxu1 %v192_v11  ;;  %1456 = vmatprep.subr.mxu0 %v194_v12  ;;  %v227_v11 = vld [vmem:[%s3953_s3 + $0x3a0] sm:$0xff]  ;;  %v229_v12 = vld [vmem:[%s3953_s3 + $0x3b0] sm:$0xff] }
 0x157   :  { %1386 = vmatpush1.msra.mxu1 %v191_v13  ;;  %1457 = vmatpush1.msra.mxu0 %v193_v14  ;;  %v196_v13 = vld [vmem:[%s3953_s3 + $0x2a8] sm:$0xff]  ;;  %v198_v14 = vld [vmem:[%s3953_s3 + $0x2b8] sm:$0xff] }
 0x158   :  { %1387 = vmatprep.subr.mxu1 %v160_v15  ;;  %1458 = vmatprep.subr.mxu0 %v162_v16  ;;  %v195_v15 = vld [vmem:[%s3953_s3 + $0x2a0] sm:$0xff]  ;;  %v197_v16 = vld [vmem:[%s3953_s3 + $0x2b0] sm:$0xff] }
 0x159   :  { %1388 = vmatpush1.msra.mxu1 %v159_v18  ;;  %1459 = vmatpush1.msra.mxu0 %v161_v19  ;;  %v164_v18 = vld [vmem:[%s3953_s3 + $0x1a8] sm:$0xff]  ;;  %v166_v19 = vld [vmem:[%s3953_s3 + $0x1b8] sm:$0xff] }
 0x15a   :  { %1389 = vmatprep.subr.mxu1 %v128_v20  ;;  %1460 = vmatprep.subr.mxu0 %v130_v21  ;;  %v163_v20 = vld [vmem:[%s3953_s3 + $0x1a0] sm:$0xff]  ;;  %v165_v21 = vld [vmem:[%s3953_s3 + $0x1b0] sm:$0xff] }
 0x15b   :  { %1390 = vmatpush1.msra.mxu1 %v127_v22  ;;  %1423 = vmatprep.mubr.f32.mxu1 %v2187_v0  ;;  %v132_v22 = vld [vmem:[%s3953_s3 + $0xa8] sm:$0xff] }
 0x15c   :  { %1461 = vmatpush1.msra.mxu0 %v129_v23  ;;  %1494 = vmatprep.mubr.f32.mxu0 %v2187_v0  ;;  %v134_v23 = vld [vmem:[%s3953_s3 + $0xb8] sm:$0xff] }
 0x15d   :  { %1424 = vmatmul.mubr.f32.vlgmr.msra.gmra.mxu1 %v2459_v17  ;;  %1495 = vmatmul.mubr.f32.vlgmr.msra.gmra.mxu0 %v2459_v17 }
 0x15e   :  { %1501 = vmatprep.subr.mxu1 %v612_v24  ;;  %1572 = vmatprep.subr.mxu0 %v614_v25  ;;  %v131_v24 = vld [vmem:[%s3953_s3 + $0xa0] sm:$0xff]  ;;  %v133_v25 = vld [vmem:[%s3953_s3 + $0xb0] sm:$0xff] }
 0x15f   :  { %1502 = vmatpush1.msra.mxu1 %v611_v26  ;;  %1573 = vmatpush1.msra.mxu0 %v613_v27  ;;  %v616_v26 = vld [vmem:[%s3953_s3 + $0xfc8] sm:$0xff]  ;;  %v618_v27 = vld [vmem:[%s3953_s3 + $0xfd8] sm:$0xff] }
 0x160   :  { %1503 = vmatprep.subr.mxu1 %v580_v28  ;;  %1574 = vmatprep.subr.mxu0 %v582_v29  ;;  %v615_v28 = vld [vmem:[%s3953_s3 + $0xfc0] sm:$0xff]  ;;  %v617_v29 = vld [vmem:[%s3953_s3 + $0xfd0] sm:$0xff] }
 0x161   :  { %1504 = vmatpush1.msra.mxu1 %v579_v30  ;;  %1575 = vmatpush1.msra.mxu0 %v581_v31  ;;  %v584_v30 = vld [vmem:[%s3953_s3 + $0xec8] sm:$0xff]  ;;  %v586_v31 = vld [vmem:[%s3953_s3 + $0xed8] sm:$0xff] }
 0x162   :  { %1505 = vmatprep.subr.mxu1 %v548_v32  ;;  %1576 = vmatprep.subr.mxu0 %v550_v33  ;;  %v583_v32 = vld [vmem:[%s3953_s3 + $0xec0] sm:$0xff]  ;;  %v585_v33 = vld [vmem:[%s3953_s3 + $0xed0] sm:$0xff] }
 0x163   :  { %1506 = vmatpush1.msra.mxu1 %v547_v34  ;;  %1577 = vmatpush1.msra.mxu0 %v549_v35  ;;  %v552_v34 = vld [vmem:[%s3953_s3 + $0xdc8] sm:$0xff]  ;;  %v554_v35 = vld [vmem:[%s3953_s3 + $0xdd8] sm:$0xff] }
 0x164   :  { %1507 = vmatprep.subr.mxu1 %v516_v36  ;;  %1578 = vmatprep.subr.mxu0 %v518_v37  ;;  %v551_v36 = vld [vmem:[%s3953_s3 + $0xdc0] sm:$0xff]  ;;  %v553_v37 = vld [vmem:[%s3953_s3 + $0xdd0] sm:$0xff] }
 0x165   :  { %1508 = vmatpush1.msra.mxu1 %v515_v38  ;;  %1579 = vmatpush1.msra.mxu0 %v517_v39  ;;  %v520_v38 = vld [vmem:[%s3953_s3 + $0xcc8] sm:$0xff]  ;;  %v522_v39 = vld [vmem:[%s3953_s3 + $0xcd8] sm:$0xff] }
 0x166   :  { %1509 = vmatprep.subr.mxu1 %v484_v40  ;;  %1580 = vmatprep.subr.mxu0 %v486_v41  ;;  %v519_v40 = vld [vmem:[%s3953_s3 + $0xcc0] sm:$0xff]  ;;  %v521_v41 = vld [vmem:[%s3953_s3 + $0xcd0] sm:$0xff] }
 0x167   :  { %1510 = vmatpush1.msra.mxu1 %v483_v42  ;;  %1581 = vmatpush1.msra.mxu0 %v485_v43  ;;  %v488_v42 = vld [vmem:[%s3953_s3 + $0xbc8] sm:$0xff]  ;;  %v490_v43 = vld [vmem:[%s3953_s3 + $0xbd8] sm:$0xff] }
 0x168   :  { %1511 = vmatprep.subr.mxu1 %v452_v44  ;;  %1582 = vmatprep.subr.mxu0 %v454_v45  ;;  %v487_v44 = vld [vmem:[%s3953_s3 + $0xbc0] sm:$0xff]  ;;  %v489_v45 = vld [vmem:[%s3953_s3 + $0xbd0] sm:$0xff] }
 0x169   :  { %1512 = vmatpush1.msra.mxu1 %v451_v46  ;;  %1583 = vmatpush1.msra.mxu0 %v453_v47  ;;  %v456_v46 = vld [vmem:[%s3953_s3 + $0xac8] sm:$0xff]  ;;  %v458_v47 = vld [vmem:[%s3953_s3 + $0xad8] sm:$0xff] }
 0x16a   :  { %1513 = vmatprep.subr.mxu1 %v420_v48  ;;  %1584 = vmatprep.subr.mxu0 %v422_v49  ;;  %v631_v48 = vlaneseq  ;;  %v455_v49 = vld [vmem:[%s3953_s3 + $0xac0] sm:$0xff] }
 0x16b   :  { %1514 = vmatpush1.msra.mxu1 %v419_v50  ;;  %1585 = vmatpush1.msra.mxu0 %v421_v51  ;;  %v457_v50 = vld [vmem:[%s3953_s3 + $0xad0] sm:$0xff]  ;;  %v424_v51 = vld [vmem:[%s3953_s3 + $0x9c8] sm:$0xff] }
 0x16c   :  { %1515 = vmatprep.subr.mxu1 %v388_v52  ;;  %1586 = vmatprep.subr.mxu0 %v390_v53  ;;  %v426_v52 = vld [vmem:[%s3953_s3 + $0x9d8] sm:$0xff]  ;;  %v423_v53 = vld [vmem:[%s3953_s3 + $0x9c0] sm:$0xff] }
 0x16d   :  { %1516 = vmatpush1.msra.mxu1 %v387_v54  ;;  %1587 = vmatpush1.msra.mxu0 %v389_v55  ;;  %v425_v54 = vld [vmem:[%s3953_s3 + $0x9d0] sm:$0xff]  ;;  %v392_v55 = vld [vmem:[%s3953_s3 + $0x8c8] sm:$0xff] }
 0x16e   :  { %1517 = vmatprep.subr.mxu1 %v356_v56  ;;  %1588 = vmatprep.subr.mxu0 %v358_v57  ;;  %v394_v56 = vld [vmem:[%s3953_s3 + $0x8d8] sm:$0xff]  ;;  %v3527_v57 = vshrl.u32 %v631_v48, 7 }
 0x16f   :  { %1518 = vmatpush1.msra.mxu1 %v355_v58  ;;  %1589 = vmatpush1.msra.mxu0 %v357_v59  ;;  %v391_v58 = vld [vmem:[%s3953_s3 + $0x8c0] sm:$0xff]  ;;  %v393_v59 = vld [vmem:[%s3953_s3 + $0x8d0] sm:$0xff]  ;;  %v138_v48 = vld [vmem:[%s3953_s3 + $0xd8] sm:$0xff] }
 0x170   :  { %1519 = vmatprep.subr.mxu1 %v324_v60  ;;  %1590 = vmatprep.subr.mxu0 %v326_v61  ;;  %v360_v60 = vld [vmem:[%s3953_s3 + $0x7c8] sm:$0xff]  ;;  %v362_v61 = vld [vmem:[%s3953_s3 + $0x7d8] sm:$0xff] }
 0x171   :  { %1520 = vmatpush1.msra.mxu1 %v323_v62  ;;  %1591 = vmatpush1.msra.mxu0 %v325_v63  ;;  %v359_v62 = vld [vmem:[%s3953_s3 + $0x7c0] sm:$0xff]  ;;  %v361_v63 = vld [vmem:[%s3953_s3 + $0x7d0] sm:$0xff] }
 0x172   :  { %1521 = vmatprep.subr.mxu1 %v292_v1  ;;  %1592 = vmatprep.subr.mxu0 %v294_v2  ;;  %v328_v1 = vld [vmem:[%s3953_s3 + $0x6c8] sm:$0xff]  ;;  %v330_v2 = vld [vmem:[%s3953_s3 + $0x6d8] sm:$0xff] }
 0x173   :  { %1522 = vmatpush1.msra.mxu1 %v291_v3  ;;  %1593 = vmatpush1.msra.mxu0 %v293_v4  ;;  %v3554_v3 = vsub.s32 0, %v3527_v57  ;;  %v3557_v4 = vsub.s32 2, %v3527_v57 }
 0x174   :  { %1523 = vmatprep.subr.mxu1 %v260_v5  ;;  %1594 = vmatprep.subr.mxu0 %v262_v6  ;;  %v327_v5 = vld [vmem:[%s3953_s3 + $0x6c0] sm:$0xff]  ;;  %v329_v6 = vld [vmem:[%s3953_s3 + $0x6d0] sm:$0xff] }
 0x175   :  { %1524 = vmatpush1.msra.mxu1 %v259_v7  ;;  %1595 = vmatpush1.msra.mxu0 %v261_v8  ;;  %v3568_v7 = vld [vmem:[%s3956_s4] sm:$0xff]  ;;  %v296_v8 = vld [vmem:[%s3953_s3 + $0x5c8] sm:$0xff] }
 0x176   :  { %1525 = vmatprep.subr.mxu1 %v228_v9  ;;  %1596 = vmatprep.subr.mxu0 %v230_v10  ;;  %v298_v9 = vld [vmem:[%s3953_s3 + $0x5d8] sm:$0xff]  ;;  %v3577_v10 = vsub.s32 1, %v3527_v57 }
 0x177   :  { %1526 = vmatpush1.msra.mxu1 %v227_v11  ;;  %1597 = vmatpush1.msra.mxu0 %v229_v12  ;;  %v3580_v11 = vsub.s32 3, %v3527_v57  ;;  %v295_v12 = vld [vmem:[%s3953_s3 + $0x5c0] sm:$0xff] }
 0x178   :  { %1527 = vmatprep.subr.mxu1 %v196_v13  ;;  %1598 = vmatprep.subr.mxu0 %v198_v14  ;;  %v297_v13 = vld [vmem:[%s3953_s3 + $0x5d0] sm:$0xff]  ;;  %v2189_v14 = vmov 1983009808  }
 0x179   :  { %1528 = vmatpush1.msra.mxu1 %v195_v15  ;;  %1599 = vmatpush1.msra.mxu0 %v197_v16  ;;  %v1994_v15 = vunpack.c.l.s4 %v2189_v14  ;;  %v264_v16 = vld [vmem:[%s3953_s3 + $0x4c8] sm:$0xff]  ;;  %v557_v14 = vld [vmem:[%s3953_s3 + $0xdf0] sm:$0xff] }
 0x17a   :  { %1529 = vmatprep.subr.mxu1 %v164_v18  ;;  %1600 = vmatprep.subr.mxu0 %v166_v19  ;;  %v266_v18 = vld [vmem:[%s3953_s3 + $0x4d8] sm:$0xff]  ;;  %v634_v19 = vrot.slane %v3568_v7, %v3554_v3 }
 0x17b   :  { %1530 = vmatpush1.msra.mxu1 %v163_v20  ;;  %1601 = vmatpush1.msra.mxu0 %v165_v21  ;;  %v642_v20 = vrot.slane %v3568_v7, %v3557_v4  ;;  %v263_v21 = vld [vmem:[%s3953_s3 + $0x4c0] sm:$0xff] }
 0x17c   :  { %1531 = vmatprep.subr.mxu1 %v132_v22  ;;  %1602 = vmatprep.subr.mxu0 %v134_v23  ;;  %v265_v22 = vld [vmem:[%s3953_s3 + $0x4d0] sm:$0xff]  ;;  %v232_v23 = vld [vmem:[%s3953_s3 + $0x3c8] sm:$0xff] }
 0x17d   :  { %1532 = vmatpush1.msra.mxu1 %v131_v24  ;;  %1565 = vmatprep.mubr.f32.mxu1 %v2187_v0  ;;  %v234_v24 = vld [vmem:[%s3953_s3 + $0x3d8] sm:$0xff] }
 0x17e   :  { %1603 = vmatpush1.msra.mxu0 %v133_v25  ;;  %1636 = vmatprep.mubr.f32.mxu0 %v2187_v0  ;;  %v638_v25 = vrot.slane %v3568_v7, %v3577_v10 }
 0x17f   :  { %1566 = vmatmul.mubr.f32.vlgmr.msra.gmra.mxu1 %v2459_v17  ;;  %1637 = vmatmul.mubr.f32.vlgmr.msra.gmra.mxu0 %v2459_v17 }
 0x180   :  { %1643 = vmatprep.subr.mxu1 %v616_v26  ;;  %1714 = vmatprep.subr.mxu0 %v618_v27  ;;  %v646_v26 = vrot.slane %v3568_v7, %v3580_v11  ;;  %v231_v27 = vld [vmem:[%s3953_s3 + $0x3c0] sm:$0xff] }
 0x181   :  { %1644 = vmatpush1.msra.mxu1 %v615_v28  ;;  %1715 = vmatpush1.msra.mxu0 %v617_v29  ;;  %v233_v28 = vld [vmem:[%s3953_s3 + $0x3d0] sm:$0xff] }
 0x182   :  { %1645 = vmatprep.subr.mxu1 %v584_v30  ;;  %1716 = vmatprep.subr.mxu0 %v586_v31  ;;  %v1995_v31 = vunpack.c.0.s8 %v1994_v15  ;;  %v524_v15 = vld [vmem:[%s3953_s3 + $0xce8] sm:$0xff] }
 0x183   :  { %1646 = vmatpush1.msra.mxu1 %v583_v32  ;;  %1717 = vmatpush1.msra.mxu0 %v585_v33  ;;  %v200_v32 = vld [vmem:[%s3953_s3 + $0x2c8] sm:$0xff]  ;;  %v202_v33 = vld [vmem:[%s3953_s3 + $0x2d8] sm:$0xff] }
 0x184   :  { %1647 = vmatprep.subr.mxu1 %v552_v34  ;;  %1718 = vmatprep.subr.mxu0 %v554_v35 }
 0x185   :  { %1648 = vmatpush1.msra.mxu1 %v551_v36  ;;  %1719 = vmatpush1.msra.mxu0 %v553_v37  ;;  %v199_v36 = vld [vmem:[%s3953_s3 + $0x2c0] sm:$0xff]  ;;  %v201_v37 = vld [vmem:[%s3953_s3 + $0x2d0] sm:$0xff] }
 0x186   :  { %1649 = vmatprep.subr.mxu1 %v520_v38  ;;  %1720 = vmatprep.subr.mxu0 %v522_v39 }
 0x187   :  { %1650 = vmatpush1.msra.mxu1 %v519_v40  ;;  %1721 = vmatpush1.msra.mxu0 %v521_v41  ;;  %v168_v40 = vld [vmem:[%s3953_s3 + $0x1c8] sm:$0xff]  ;;  %v170_v41 = vld [vmem:[%s3953_s3 + $0x1d8] sm:$0xff] }
 0x188   :  { %1651 = vmatprep.subr.mxu1 %v488_v42  ;;  %1722 = vmatprep.subr.mxu0 %v490_v43 }
 0x189   :  { %1652 = vmatpush1.msra.mxu1 %v487_v44  ;;  %1723 = vmatpush1.msra.mxu0 %v489_v45  ;;  %v167_v44 = vld [vmem:[%s3953_s3 + $0x1c0] sm:$0xff]  ;;  %v169_v45 = vld [vmem:[%s3953_s3 + $0x1d0] sm:$0xff] }
 0x18a   :  { %1653 = vmatprep.subr.mxu1 %v456_v46  ;;  %1724 = vmatprep.subr.mxu0 %v458_v47  ;;  %v3645_v46 = vsub.s32 %v1995_v31, %v3527_v57  ;;  %v136_v47 = vld [vmem:[%s3953_s3 + $0xc8] sm:$0xff]  ;;  %v429_v31 = vld [vmem:[%s3953_s3 + $0x9f0] sm:$0xff] }
 0x18b   :  { %1654 = vmatpush1.msra.mxu1 %v455_v49  ;;  %1725 = vmatpush1.msra.mxu0 %v457_v50 }
 0x18c   :  { %1655 = vmatprep.subr.mxu1 %v424_v51  ;;  %1726 = vmatprep.subr.mxu0 %v426_v52 }
 0x18d   :  { %1656 = vmatpush1.msra.mxu1 %v423_v53  ;;  %1727 = vmatpush1.msra.mxu0 %v425_v54  ;;  %v135_v53 = vld [vmem:[%s3953_s3 + $0xc0] sm:$0xff]  ;;  %v137_v54 = vld [vmem:[%s3953_s3 + $0xd0] sm:$0xff] }
 0x18e   :  { %1657 = vmatprep.subr.mxu1 %v392_v55  ;;  %1728 = vmatprep.subr.mxu0 %v394_v56 }
 0x18f   :  { %1658 = vmatpush1.msra.mxu1 %v391_v58  ;;  %1729 = vmatpush1.msra.mxu0 %v393_v59  ;;  %v620_v58 = vld [vmem:[%s3953_s3 + $0xfe8] sm:$0xff]  ;;  %v622_v59 = vld [vmem:[%s3953_s3 + $0xff8] sm:$0xff] }
 0x190   :  { %1659 = vmatprep.subr.mxu1 %v360_v60  ;;  %1730 = vmatprep.subr.mxu0 %v362_v61 }
 0x191   :  { %1660 = vmatpush1.msra.mxu1 %v359_v62  ;;  %1731 = vmatpush1.msra.mxu0 %v361_v63  ;;  %v619_v62 = vld [vmem:[%s3953_s3 + $0xfe0] sm:$0xff]  ;;  %v621_v63 = vld [vmem:[%s3953_s3 + $0xff0] sm:$0xff] }
 0x192   :  { %1661 = vmatprep.subr.mxu1 %v328_v1  ;;  %1732 = vmatprep.subr.mxu0 %v330_v2  ;;  %v588_v1 = vld [vmem:[%s3953_s3 + $0xee8] sm:$0xff]  ;;  %v590_v2 = vld [vmem:[%s3953_s3 + $0xef8] sm:$0xff] }
 0x193   :  { %1662 = vmatpush1.msra.mxu1 %v327_v5  ;;  %1733 = vmatpush1.msra.mxu0 %v329_v6  ;;  %v587_v6 = vld [vmem:[%s3953_s3 + $0xee0] sm:$0xff] }
 0x194   :  { %1663 = vmatprep.subr.mxu1 %v296_v8  ;;  %1734 = vmatprep.subr.mxu0 %v298_v9  ;;  %v589_v8 = vld [vmem:[%s3953_s3 + $0xef0] sm:$0xff]  ;;  %v556_v9 = vld [vmem:[%s3953_s3 + $0xde8] sm:$0xff] }
 0x195   :  { %1664 = vmatpush1.msra.mxu1 %v295_v12  ;;  %1735 = vmatpush1.msra.mxu0 %v297_v13  ;;  %v558_v12 = vld [vmem:[%s3953_s3 + $0xdf8] sm:$0xff]  ;;  %v555_v13 = vld [vmem:[%s3953_s3 + $0xde0] sm:$0xff] }
 0x196   :  { %1665 = vmatprep.subr.mxu1 %v264_v16  ;;  %1736 = vmatprep.subr.mxu0 %v266_v18  ;;  %v857_v29 = vpop.f32.mrf.mxu1  ;;  %v928_v30 = vpop.f32.mrf.mxu0  ;;  %v526_v16 = vld [vmem:[%s3953_s3 + $0xcf8] sm:$0xff]  ;;  %v523_v18 = vld [vmem:[%s3953_s3 + $0xce0] sm:$0xff] }
 0x197   :  { %1666 = vmatpush1.msra.mxu1 %v263_v21  ;;  %1737 = vmatpush1.msra.mxu0 %v265_v22  ;;  %v858_v34 = vadd.f32 %v857_v29, %v634_v19  ;;  %v929_v35 = vadd.f32 %v928_v30, %v642_v20  ;;  %v525_v19 = vld [vmem:[%s3953_s3 + $0xcf0] sm:$0xff]  ;;  %v492_v20 = vld [vmem:[%s3953_s3 + $0xbe8] sm:$0xff]  ;;  %v494_v21 = vld [vmem:[%s3953_s3 + $0xbf8] sm:$0xff] }
 0x198   :  { %1667 = vmatprep.subr.mxu1 %v232_v23  ;;  %1738 = vmatprep.subr.mxu0 %v234_v24  ;;  %v859_v38 = vpop.f32.mrf.mxu1  ;;  %v930_v39 = vpop.f32.mrf.mxu0  ;;  %v491_v22 = vld [vmem:[%s3953_s3 + $0xbe0] sm:$0xff]  ;;  %v493_v23 = vld [vmem:[%s3953_s3 + $0xbf0] sm:$0xff]  ;;  %v460_v24 = vld [vmem:[%s3953_s3 + $0xae8] sm:$0xff] }
 0x199   :  { %1668 = vmatpush1.msra.mxu1 %v231_v27  ;;  %1739 = vmatpush1.msra.mxu0 %v233_v28  ;;  %v860_v42 = vadd.f32 %v859_v38, %v638_v25  ;;  %v931_v43 = vadd.f32 %v930_v39, %v646_v26  ;;  %v1927_v49 = vmax.f32 %v858_v34, 0.0  ;;  %v1929_v50 = vmax.f32 %v929_v35, 0.0  ;;  %v462_v25 = vld [vmem:[%s3953_s3 + $0xaf8] sm:$0xff]  ;;  %v459_v26 = vld [vmem:[%s3953_s3 + $0xae0] sm:$0xff]  ;;  %v461_v27 = vld [vmem:[%s3953_s3 + $0xaf0] sm:$0xff] }
 0x19a   :  { %1669 = vmatprep.subr.mxu1 %v200_v32  ;;  %1740 = vmatprep.subr.mxu0 %v202_v33  ;;  %v428_v28 = vld [vmem:[%s3953_s3 + $0x9e8] sm:$0xff]  ;;  %v430_v29 = vld [vmem:[%s3953_s3 + $0x9f8] sm:$0xff]  ;;  %v427_v30 = vld [vmem:[%s3953_s3 + $0x9e0] sm:$0xff] }
 0x19b   :  { %1670 = vmatpush1.msra.mxu1 %v199_v36  ;;  %1741 = vmatpush1.msra.mxu0 %v201_v37  ;;  %v1928_v51 = vmax.f32 %v860_v42, 0.0  ;;  %v1930_v52 = vmax.f32 %v931_v43, 0.0  ;;  %v396_v32 = vld [vmem:[%s3953_s3 + $0x8e8] sm:$0xff]  ;;  %v398_v33 = vld [vmem:[%s3953_s3 + $0x8f8] sm:$0xff]  ;;  %v395_v34 = vld [vmem:[%s3953_s3 + $0x8e0] sm:$0xff] }
 0x19c   :  { %1671 = vmatprep.subr.mxu1 %v168_v40  ;;  %1742 = vmatprep.subr.mxu0 %v170_v41  ;;  %v397_v35 = vld [vmem:[%s3953_s3 + $0x8f0] sm:$0xff]  ;;  %v364_v36 = vld [vmem:[%s3953_s3 + $0x7e8] sm:$0xff]  ;;  %v366_v37 = vld [vmem:[%s3953_s3 + $0x7f8] sm:$0xff]  ;;  %v3777_v40 = vsub.s32 4, %v3527_v57  ;;  %v3780_v41 = vsub.s32 6, %v3527_v57 }
 0x19d   :  { %1672 = vmatpush1.msra.mxu1 %v167_v44  ;;  %1743 = vmatpush1.msra.mxu0 %v169_v45  ;;  %v1991_v55 = vcombine.low %v1927_v49, %v1928_v51  ;;  %v1992_v56 = vcombine.low %v1929_v50, %v1930_v52  ;;  %v363_v38 = vld [vmem:[%s3953_s3 + $0x7e0] sm:$0xff]  ;;  %v365_v39 = vld [vmem:[%s3953_s3 + $0x7f0] sm:$0xff]  ;;  %v332_v42 = vld [vmem:[%s3953_s3 + $0x6e8] sm:$0xff] }
 0x19e   :  { %1673 = vmatprep.subr.mxu1 %v136_v47  ;;  %1744 = vmatprep.subr.mxu0 %v138_v48  ;;  %v334_v43 = vld [vmem:[%s3953_s3 + $0x6f8] sm:$0xff]  ;;  %v331_v44 = vld [vmem:[%s3953_s3 + $0x6e0] sm:$0xff]  ;;  %v333_v45 = vld [vmem:[%s3953_s3 + $0x6f0] sm:$0xff]  ;;  %v3795_v47 = vsub.s32 5, %v3527_v57  ;;  %v3798_v48 = vsub.s32 7, %v3527_v57  ;;  %v650_v52 = vrot.slane %v3568_v7, %v3777_v40 }
 0x19f   :  { %1674 = vmatpush1.msra.mxu1 %v135_v53  ;;  %1707 = vmatprep.mubr.f32.mxu1 %v2187_v0  ;;  %v1999_v60 = vrot.slane %v1991_v55, %v3645_v46  ;;  %v2006_v61 = vrot.slane %v1992_v56, %v3645_v46  ;;  %v300_v49 = vld [vmem:[%s3953_s3 + $0x5e8] sm:$0xff]  ;;  %v302_v50 = vld [vmem:[%s3953_s3 + $0x5f8] sm:$0xff]  ;;  %v299_v51 = vld [vmem:[%s3953_s3 + $0x5e0] sm:$0xff]  ;;  %v658_v53 = vrot.slane %v3568_v7, %v3780_v41 }
 0x1a0   :  { %1745 = vmatpush1.msra.mxu0 %v137_v54  ;;  %1778 = vmatprep.mubr.f32.mxu0 %v2187_v0  ;;  %v301_v57 = vld [vmem:[%s3953_s3 + $0x5f0] sm:$0xff]  ;;  %v268_v54 = vld [vmem:[%s3953_s3 + $0x4e8] sm:$0xff]  ;;  %v270_v55 = vld [vmem:[%s3953_s3 + $0x4f8] sm:$0xff] }
 0x1a1   :  { %1708 = vmatmul.mubr.f32.vlgmr.msra.gmra.mxu1 %v2459_v17  ;;  %1779 = vmatmul.mubr.f32.vlgmr.msra.gmra.mxu0 %v2459_v17  ;;  %v2007_v5 = vcombine.low %v1999_v60, %v2006_v61  ;;  %v267_v56 = vld [vmem:[%s3953_s3 + $0x4e0] sm:$0xff]  ;;  %v662_v60 = vrot.slane %v3568_v7, %v3798_v48  ;;  %v236_v61 = vld [vmem:[%s3953_s3 + $0x3e8] sm:$0xff] }
 0x1a2   :  { %1785 = vmatprep.subr.mxu1 %v620_v58  ;;  %1856 = vmatprep.subr.mxu0 %v622_v59  ;;  %v269_v58 = vld [vmem:[%s3953_s3 + $0x4f0] sm:$0xff]  ;;  %v654_v59 = vrot.slane %v3568_v7, %v3795_v47 }
 0x1a3   :  { %1786 = vmatpush1.msra.mxu1 %v619_v62  ;;  %1857 = vmatpush1.msra.mxu0 %v621_v63  ;;  %2135 = vst [vmem:[%s3957_s5] sm:$0xff] %v2007_v5  ;;  %v238_v62 = vld [vmem:[%s3953_s3 + $0x3f8] sm:$0xff]  ;;  %v237_v7 = vld [vmem:[%s3953_s3 + $0x3f0] sm:$0xff] }
 0x1a4   :  { %1787 = vmatprep.subr.mxu1 %v588_v1  ;;  %1858 = vmatprep.subr.mxu0 %v590_v2  ;;  %v235_v2 = vld [vmem:[%s3953_s3 + $0x3e0] sm:$0xff] }
 0x1a5   :  { %1788 = vmatpush1.msra.mxu1 %v587_v6  ;;  %1859 = vmatpush1.msra.mxu0 %v589_v8  ;;  %v204_v8 = vld [vmem:[%s3953_s3 + $0x2e8] sm:$0xff] }
 0x1a6   :  { %1789 = vmatprep.subr.mxu1 %v556_v9  ;;  %1860 = vmatprep.subr.mxu0 %v558_v12  ;;  %v206_v9 = vld [vmem:[%s3953_s3 + $0x2f8] sm:$0xff] }
 0x1a7   :  { %1790 = vmatpush1.msra.mxu1 %v555_v13  ;;  %1861 = vmatpush1.msra.mxu0 %v557_v14  ;;  %v203_v14 = vld [vmem:[%s3953_s3 + $0x2e0] sm:$0xff] }
 0x1a8   :  { %1791 = vmatprep.subr.mxu1 %v524_v15  ;;  %1862 = vmatprep.subr.mxu0 %v526_v16  ;;  %v205_v15 = vld [vmem:[%s3953_s3 + $0x2f0] sm:$0xff] }
 0x1a9   :  { %1792 = vmatpush1.msra.mxu1 %v523_v18  ;;  %1863 = vmatpush1.msra.mxu0 %v525_v19  ;;  %v172_v19 = vld [vmem:[%s3953_s3 + $0x1e8] sm:$0xff] }
 0x1aa   :  { %1793 = vmatprep.subr.mxu1 %v492_v20  ;;  %1864 = vmatprep.subr.mxu0 %v494_v21  ;;  %v174_v20 = vld [vmem:[%s3953_s3 + $0x1f8] sm:$0xff]  ;;  %v171_v21 = vld [vmem:[%s3953_s3 + $0x1e0] sm:$0xff] }
 0x1ab   :  { %1794 = vmatpush1.msra.mxu1 %v491_v22  ;;  %1865 = vmatpush1.msra.mxu0 %v493_v23  ;;  %v173_v22 = vld [vmem:[%s3953_s3 + $0x1f0] sm:$0xff] }
 0x1ac   :  { %1795 = vmatprep.subr.mxu1 %v460_v24  ;;  %1866 = vmatprep.subr.mxu0 %v462_v25 }
 0x1ad   :  { %1796 = vmatpush1.msra.mxu1 %v459_v26  ;;  %1867 = vmatpush1.msra.mxu0 %v461_v27  ;;  %v140_v27 = vld [vmem:[%s3953_s3 + $0xe8] sm:$0xff] }
 0x1ae   :  { %1797 = vmatprep.subr.mxu1 %v428_v28  ;;  %1868 = vmatprep.subr.mxu0 %v430_v29  ;;  %v142_v28 = vld [vmem:[%s3953_s3 + $0xf8] sm:$0xff]  ;;  %v139_v29 = vld [vmem:[%s3953_s3 + $0xe0] sm:$0xff] }
 0x1af   :  { %1798 = vmatpush1.msra.mxu1 %v427_v30  ;;  %1869 = vmatpush1.msra.mxu0 %v429_v31 }
 0x1b0   :  { %1799 = vmatprep.subr.mxu1 %v396_v32  ;;  %1870 = vmatprep.subr.mxu0 %v398_v33  ;;  %v141_v32 = vld [vmem:[%s3953_s3 + $0xf0] sm:$0xff] }
 0x1b1   :  { %1800 = vmatpush1.msra.mxu1 %v395_v34  ;;  %1871 = vmatpush1.msra.mxu0 %v397_v35 }
 0x1b2   :  { %1801 = vmatprep.subr.mxu1 %v364_v36  ;;  %1872 = vmatprep.subr.mxu0 %v366_v37  ;;  %v624_v36 = vld [vmem:[%s3956_s4 + $0x8] sm:$0xff] }
 0x1b3   :  { %1802 = vmatpush1.msra.mxu1 %v363_v38  ;;  %1873 = vmatpush1.msra.mxu0 %v365_v39  ;;  %v666_v37 = vrot.slane %v624_v36, %v3554_v3  ;;  %v674_v38 = vrot.slane %v624_v36, %v3557_v4  ;;  %v670_v39 = vrot.slane %v624_v36, %v3577_v10 }
 0x1b4   :  { %1803 = vmatprep.subr.mxu1 %v332_v42  ;;  %1874 = vmatprep.subr.mxu0 %v334_v43 }
 0x1b5   :  { %1804 = vmatpush1.msra.mxu1 %v331_v44  ;;  %1875 = vmatpush1.msra.mxu0 %v333_v45 }
 0x1b6   :  { %1805 = vmatprep.subr.mxu1 %v300_v49  ;;  %1876 = vmatprep.subr.mxu0 %v302_v50 }
 0x1b7   :  { %1806 = vmatpush1.msra.mxu1 %v299_v51  ;;  %1877 = vmatpush1.msra.mxu0 %v301_v57  ;;  %v999_v63 = vpop.f32.mrf.mxu1  ;;  %v1070_v1 = vpop.f32.mrf.mxu0 }
 0x1b8   :  { %1807 = vmatprep.subr.mxu1 %v268_v54  ;;  %1878 = vmatprep.subr.mxu0 %v270_v55  ;;  %v1000_v5 = vadd.f32 %v999_v63, %v650_v52  ;;  %v1071_v6 = vadd.f32 %v1070_v1, %v658_v53  ;;  %v686_v63 = vrot.slane %v624_v36, %v3795_v47 }
 0x1b9   :  { %1808 = vmatpush1.msra.mxu1 %v267_v56  ;;  %1879 = vmatpush1.msra.mxu0 %v269_v58  ;;  %v1001_v12 = vpop.f32.mrf.mxu1  ;;  %v1072_v13 = vpop.f32.mrf.mxu0  ;;  %v694_v1 = vrot.slane %v624_v36, %v3798_v48 }
 0x1ba   :  { %1809 = vmatprep.subr.mxu1 %v236_v61  ;;  %1880 = vmatprep.subr.mxu0 %v238_v62  ;;  %v1002_v16 = vadd.f32 %v1001_v12, %v654_v59  ;;  %v1073_v18 = vadd.f32 %v1072_v13, %v662_v60  ;;  %v1931_v23 = vmax.f32 %v1000_v5, 0.0  ;;  %v1933_v24 = vmax.f32 %v1071_v6, 0.0 }
 0x1bb   :  { %1810 = vmatpush1.msra.mxu1 %v235_v2  ;;  %1881 = vmatpush1.msra.mxu0 %v237_v7  ;;  %v682_v61 = vrot.slane %v624_v36, %v3777_v40  ;;  %v690_v62 = vrot.slane %v624_v36, %v3780_v41 }
 0x1bc   :  { %1811 = vmatprep.subr.mxu1 %v204_v8  ;;  %1882 = vmatprep.subr.mxu0 %v206_v9  ;;  %v1932_v25 = vmax.f32 %v1002_v16, 0.0  ;;  %v1934_v26 = vmax.f32 %v1073_v18, 0.0 }
 0x1bd   :  { %1812 = vmatpush1.msra.mxu1 %v203_v14  ;;  %1883 = vmatpush1.msra.mxu0 %v205_v15 }
 0x1be   :  { %1813 = vmatprep.subr.mxu1 %v172_v19  ;;  %1884 = vmatprep.subr.mxu0 %v174_v20  ;;  %v2008_v30 = vcombine.low %v1931_v23, %v1932_v25  ;;  %v2009_v31 = vcombine.low %v1933_v24, %v1934_v26  ;;  %v625_v24 = vld [vmem:[%s3956_s4 + $0x10] sm:$0xff] }
 0x1bf   :  { %1814 = vmatpush1.msra.mxu1 %v171_v21  ;;  %1885 = vmatpush1.msra.mxu0 %v173_v22  ;;  %v698_v25 = vrot.slane %v625_v24, %v3554_v3  ;;  %v706_v26 = vrot.slane %v625_v24, %v3557_v4 }
 0x1c0   :  { %1815 = vmatprep.subr.mxu1 %v140_v27  ;;  %1886 = vmatprep.subr.mxu0 %v142_v28  ;;  %v2016_v33 = vrot.slane %v2008_v30, %v3645_v46  ;;  %v2023_v34 = vrot.slane %v2009_v31, %v3645_v46  ;;  %v702_v27 = vrot.slane %v625_v24, %v3577_v10 }
 0x1c1   :  { %1816 = vmatpush1.msra.mxu1 %v139_v29  ;;  %1849 = vmatprep.mubr.f32.mxu1 %v2187_v0  ;;  %v710_v28 = vrot.slane %v625_v24, %v3580_v11 }
 0x1c2   :  { %1887 = vmatpush1.msra.mxu0 %v141_v32  ;;  %1920 = vmatprep.mubr.f32.mxu0 %v2187_v0  ;;  %v2024_v35 = vcombine.low %v2016_v33, %v2023_v34  ;;  %v678_v0 = vrot.slane %v624_v36, %v3580_v11 }
 0x1c3   :  { %1850 = vmatmul.mubr.f32.vlgmr.msra.gmra.mxu1 %v2459_v17  ;;  %1921 = vmatmul.mubr.f32.vlgmr.msra.gmra.mxu0 %v2459_v17 }
 0x1c4   :  { %2136 = vst [vmem:[%s3957_s5 + $0x8] sm:$0xff] %v2024_v35 }
 0x1d9   :  { %v1141_v42 = vpop.f32.mrf.mxu1  ;;  %v1212_v43 = vpop.f32.mrf.mxu0 }
 0x1da   :  { %v1142_v44 = vadd.f32 %v1141_v42, %v666_v37  ;;  %v1213_v17 = vadd.f32 %v1212_v43, %v674_v38 }
 0x1db   :  { %v1143_v45 = vpop.f32.mrf.mxu1  ;;  %v1214_v49 = vpop.f32.mrf.mxu0 }
 0x1dc   :  { %v1144_v50 = vadd.f32 %v1143_v45, %v670_v39  ;;  %v1215_v51 = vadd.f32 %v1214_v49, %v678_v0  ;;  %v1935_v57 = vmax.f32 %v1142_v44, 0.0  ;;  %v1937_v52 = vmax.f32 %v1213_v17, 0.0 }
 0x1dd   :  { %v714_v49 = vrot.slane %v625_v24, %v3777_v40 }
 0x1de   :  { %v1936_v53 = vmax.f32 %v1144_v50, 0.0  ;;  %v1938_v54 = vmax.f32 %v1215_v51, 0.0  ;;  %v722_v50 = vrot.slane %v625_v24, %v3780_v41  ;;  %v718_v51 = vrot.slane %v625_v24, %v3795_v47 }
 0x1e0   :  { %v2025_v55 = vcombine.low %v1935_v57, %v1936_v53  ;;  %v2026_v56 = vcombine.low %v1937_v52, %v1938_v54  ;;  %v726_v57 = vrot.slane %v625_v24, %v3798_v48 }
 0x1e2   :  { %v2033_v58 = vrot.slane %v2025_v55, %v3645_v46  ;;  %v2040_v59 = vrot.slane %v2026_v56, %v3645_v46 }
 0x1e4   :  { %v2041_v60 = vcombine.low %v2033_v58, %v2040_v59 }
 0x1e6   :  { %2137 = vst [vmem:[%s3957_s5 + $0x10] sm:$0xff] %v2041_v60 }
 0x1fb   :  { %v1283_v2 = vpop.f32.mrf.mxu1  ;;  %v1354_v7 = vpop.f32.mrf.mxu0 }
 0x1fc   :  { %v1284_v5 = vadd.f32 %v1283_v2, %v682_v61  ;;  %v1355_v6 = vadd.f32 %v1354_v7, %v690_v62 }
 0x1fd   :  { %v1285_v8 = vpop.f32.mrf.mxu1  ;;  %v1356_v9 = vpop.f32.mrf.mxu0 }
 0x1fe   :  { %v1286_v12 = vadd.f32 %v1285_v8, %v686_v63  ;;  %v1357_v13 = vadd.f32 %v1356_v9, %v694_v1  ;;  %v1939_v14 = vmax.f32 %v1284_v5, 0.0  ;;  %v1941_v15 = vmax.f32 %v1355_v6, 0.0  ;;  %v626_v9 = vld [vmem:[%s3956_s4 + $0x18] sm:$0xff] }
 0x200   :  { %v1940_v16 = vmax.f32 %v1286_v12, 0.0  ;;  %v1942_v18 = vmax.f32 %v1357_v13, 0.0  ;;  %v730_v12 = vrot.slane %v626_v9, %v3554_v3  ;;  %v738_v13 = vrot.slane %v626_v9, %v3557_v4 }
 0x202   :  { %v2042_v19 = vcombine.low %v1939_v14, %v1940_v16  ;;  %v2043_v20 = vcombine.low %v1941_v15, %v1942_v18  ;;  %v734_v14 = vrot.slane %v626_v9, %v3577_v10  ;;  %v742_v15 = vrot.slane %v626_v9, %v3580_v11 }
 0x203   :  { %v746_v11 = vrot.slane %v626_v9, %v3777_v40 }
 0x204   :  { %v2050_v21 = vrot.slane %v2042_v19, %v3645_v46  ;;  %v2057_v22 = vrot.slane %v2043_v20, %v3645_v46 }
 0x206   :  { %v2058_v23 = vcombine.low %v2050_v21, %v2057_v22 }
 0x208   :  { %2138 = vst [vmem:[%s3957_s5 + $0x18] sm:$0xff] %v2058_v23 }
 0x21d   :  { %v1425_v29 = vpop.f32.mrf.mxu1  ;;  %v1496_v30 = vpop.f32.mrf.mxu0 }
 0x21e   :  { %v1426_v31 = vadd.f32 %v1425_v29, %v698_v25  ;;  %v1497_v32 = vadd.f32 %v1496_v30, %v706_v26 }
 0x21f   :  { %v1427_v33 = vpop.f32.mrf.mxu1  ;;  %v1498_v34 = vpop.f32.mrf.mxu0 }
 0x220   :  { %v1428_v35 = vadd.f32 %v1427_v33, %v702_v27  ;;  %v1499_v36 = vadd.f32 %v1498_v34, %v710_v28  ;;  %v1943_v37 = vmax.f32 %v1426_v31, 0.0  ;;  %v1945_v38 = vmax.f32 %v1497_v32, 0.0 }
 0x221   :  { %v754_v31 = vrot.slane %v626_v9, %v3780_v41  ;;  %v750_v32 = vrot.slane %v626_v9, %v3795_v47  ;;  %v758_v33 = vrot.slane %v626_v9, %v3798_v48 }
 0x222   :  { %v1944_v39 = vmax.f32 %v1428_v35, 0.0  ;;  %v1946_v0 = vmax.f32 %v1499_v36, 0.0 }
 0x224   :  { %v2059_v42 = vcombine.low %v1943_v37, %v1944_v39  ;;  %v2060_v43 = vcombine.low %v1945_v38, %v1946_v0 }
 0x226   :  { %v2067_v44 = vrot.slane %v2059_v42, %v3645_v46  ;;  %v2074_v17 = vrot.slane %v2060_v43, %v3645_v46 }
 0x228   :  { %v2075_v45 = vcombine.low %v2067_v44, %v2074_v17 }
 0x22a   :  { %2139 = vst [vmem:[%s3957_s5 + $0x20] sm:$0xff] %v2075_v45 }
 0x23f   :  { %v1567_v52 = vpop.f32.mrf.mxu1  ;;  %v1638_v53 = vpop.f32.mrf.mxu0 }
 0x240   :  { %v1568_v54 = vadd.f32 %v1567_v52, %v714_v49  ;;  %v1639_v55 = vadd.f32 %v1638_v53, %v722_v50 }
 0x241   :  { %v1569_v56 = vpop.f32.mrf.mxu1  ;;  %v1640_v58 = vpop.f32.mrf.mxu0 }
 0x242   :  { %v1570_v59 = vadd.f32 %v1569_v56, %v718_v51  ;;  %v1641_v60 = vadd.f32 %v1640_v58, %v726_v57  ;;  %v1947_v61 = vmax.f32 %v1568_v54, 0.0  ;;  %v1949_v62 = vmax.f32 %v1639_v55, 0.0 }
 0x244   :  { %v1948_v63 = vmax.f32 %v1570_v59, 0.0  ;;  %v1950_v1 = vmax.f32 %v1641_v60, 0.0 }
 0x246   :  { %v2076_v2 = vcombine.low %v1947_v61, %v1948_v63  ;;  %v2077_v7 = vcombine.low %v1949_v62, %v1950_v1 }
 0x248   :  { %v2084_v5 = vrot.slane %v2076_v2, %v3645_v46  ;;  %v2091_v6 = vrot.slane %v2077_v7, %v3645_v46 }
 0x24a   :  { %v2092_v8 = vcombine.low %v2084_v5, %v2091_v6 }
 0x24c   :  { %2140 = vst [vmem:[%s3957_s5 + $0x28] sm:$0xff] %v2092_v8 }
 0x261   :  { %v1709_v16 = vpop.f32.mrf.mxu1  ;;  %v1780_v18 = vpop.f32.mrf.mxu0 }
 0x262   :  { %v1710_v19 = vadd.f32 %v1709_v16, %v730_v12  ;;  %v1781_v20 = vadd.f32 %v1780_v18, %v738_v13 }
 0x263   :  { %v1711_v21 = vpop.f32.mrf.mxu1  ;;  %v1782_v22 = vpop.f32.mrf.mxu0 }
 0x264   :  { %v1712_v23 = vadd.f32 %v1711_v21, %v734_v14  ;;  %v1783_v24 = vadd.f32 %v1782_v22, %v742_v15  ;;  %v1951_v25 = vmax.f32 %v1710_v19, 0.0  ;;  %v1953_v26 = vmax.f32 %v1781_v20, 0.0 }
 0x266   :  { %v1952_v27 = vmax.f32 %v1712_v23, 0.0  ;;  %v1954_v28 = vmax.f32 %v1783_v24, 0.0 }
 0x268   :  { %v2093_v29 = vcombine.low %v1951_v25, %v1952_v27  ;;  %v2094_v3 = vcombine.low %v1953_v26, %v1954_v28 }
 0x26a   :  { %v2101_v4 = vrot.slane %v2093_v29, %v3645_v46  ;;  %v2108_v10 = vrot.slane %v2094_v3, %v3645_v46 }
 0x26c   :  { %v2109_v30 = vcombine.low %v2101_v4, %v2108_v10 }
 0x26e   :  { %2141 = vst [vmem:[%s3957_s5 + $0x30] sm:$0xff] %v2109_v30 }
 0x283   :  { %v1851_v34 = vpop.f32.mrf.mxu1  ;;  %v1922_v35 = vpop.f32.mrf.mxu0 }
 0x284   :  { %v1852_v36 = vadd.f32 %v1851_v34, %v746_v11  ;;  %v1923_v37 = vadd.f32 %v1922_v35, %v754_v31 }
 0x285   :  { %v1853_v38 = vpop.f32.mrf.mxu1  ;;  %v1924_v39 = vpop.f32.mrf.mxu0 }
 0x286   :  { %v1854_v0 = vadd.f32 %v1853_v38, %v750_v32  ;;  %v1925_v42 = vadd.f32 %v1924_v39, %v758_v33  ;;  %v1955_v43 = vmax.f32 %v1852_v36, 0.0  ;;  %v1957_v40 = vmax.f32 %v1923_v37, 0.0 }
 0x288   :  { %v1956_v44 = vmax.f32 %v1854_v0, 0.0  ;;  %v1958_v41 = vmax.f32 %v1925_v42, 0.0 }
 0x28a   :  { %v2110_v17 = vcombine.low %v1955_v43, %v1956_v44  ;;  %v2111_v47 = vcombine.low %v1957_v40, %v1958_v41 }
 0x28c   :  { %v2118_v48 = vrot.slane %v2110_v17, %v3645_v46  ;;  %v2125_v45 = vrot.slane %v2111_v47, %v3645_v46 }
 0x28e   :  { %v2126_v49 = vcombine.low %v2118_v48, %v2125_v45 }
 0x290   :  { %2149 = vst.msk [vmem:[%s3957_s5 + $0x38] sm:$0xff] %vm2148_vm8, %v2126_v49 }

// kernel: decoder_forward.6
= control target key start
LH: loop header
LB: loop body
LE: loop exit
PB: predicated region body
PF: predicated region fallthrough
CT: control target
= control target key end

     0   :  { %v748_v3 = vmov 0.0   ;;  %vm85_vm0 = vcmask 523264   ;;  %vm460_vm1 = vcmask 850944   ;;  %s1365_s0 = inlined_call_operand.vmem [shape: f32[64,1000], index: 0, kind: input, shape index: {}]   ;;  %s1366_s1 = inlined_call_operand.vmem [shape: f32[32,64], index: 1, kind: input, shape index: {}]   ;;  %s1367_s2 = inlined_call_operand.vmem [shape: f32[8,1], index: 2, kind: input, shape index: {}]   ;;  %s1368_s3 = inlined_call_operand.vmem [shape: f32[8,1], index: 3, kind: input, shape index: {}]   ;;  %s1369_s4 = inlined_call_operand.vmem [shape: f32[32,1000], index: 4, kind: output, shape index: {}]  }
   0x1   :  { %v78_v0 = vld [vmem:[%s1365_s0 + $0x1c8] sm:$0xff]  ;;  %v77_v1 = vld [vmem:[%s1365_s0 + $0x1c0] sm:$0xff]  ;;  %162 = vmatprep.mubr.f32.mxu0 %v748_v3  ;;  %251 = vmatprep.mubr.f32.mxu1 %v748_v3  ;;  %v80_v4 = vld [vmem:[%s1365_s0 + $0x1d8] sm:$0xff] }
   0x2   :  { %v70_v2 = vld [vmem:[%s1365_s0 + $0x188] sm:$0xff]  ;;  %114 = vmatprep.subr.mxu0 %v78_v0  ;;  %v69_v5 = vld [vmem:[%s1365_s0 + $0x180] sm:$0xff]  ;;  %v79_v6 = vld [vmem:[%s1365_s0 + $0x1d0] sm:$0xff]  ;;  %203 = vmatprep.subr.mxu1 %v80_v4 }
   0x3   :  { %115 = vmatpush1.msra.mxu0 %v77_v1  ;;  %v62_v7 = vld [vmem:[%s1365_s0 + $0x148] sm:$0xff]  ;;  %v72_v8 = vld [vmem:[%s1365_s0 + $0x198] sm:$0xff]  ;;  %204 = vmatpush1.msra.mxu1 %v79_v6  ;;  %v61_v9 = vld [vmem:[%s1365_s0 + $0x140] sm:$0xff] }
   0x4   :  { %116 = vmatprep.subr.mxu0 %v70_v2  ;;  %v71_v10 = vld [vmem:[%s1365_s0 + $0x190] sm:$0xff]  ;;  %v64_v11 = vld [vmem:[%s1365_s0 + $0x158] sm:$0xff]  ;;  %205 = vmatprep.subr.mxu1 %v72_v8  ;;  %v54_v12 = vld [vmem:[%s1365_s0 + $0x108] sm:$0xff] }
   0x5   :  { %117 = vmatpush1.msra.mxu0 %v69_v5  ;;  %v63_v13 = vld [vmem:[%s1365_s0 + $0x150] sm:$0xff]  ;;  %206 = vmatpush1.msra.mxu1 %v71_v10  ;;  %v53_v14 = vld [vmem:[%s1365_s0 + $0x100] sm:$0xff]  ;;  %v56_v15 = vld [vmem:[%s1365_s0 + $0x118] sm:$0xff] }
   0x6   :  { %118 = vmatprep.subr.mxu0 %v62_v7  ;;  %207 = vmatprep.subr.mxu1 %v64_v11  ;;  %v46_v16 = vld [vmem:[%s1365_s0 + $0xc8] sm:$0xff]  ;;  %v55_v17 = vld [vmem:[%s1365_s0 + $0x110] sm:$0xff]  ;;  %v45_v18 = vld [vmem:[%s1365_s0 + $0xc0] sm:$0xff] }
   0x7   :  { %119 = vmatpush1.msra.mxu0 %v61_v9  ;;  %208 = vmatpush1.msra.mxu1 %v63_v13  ;;  %v48_v19 = vld [vmem:[%s1365_s0 + $0xd8] sm:$0xff]  ;;  %v38_v20 = vld [vmem:[%s1365_s0 + $0x88] sm:$0xff]  ;;  %v47_v21 = vld [vmem:[%s1365_s0 + $0xd0] sm:$0xff] }
   0x8   :  { %120 = vmatprep.subr.mxu0 %v54_v12  ;;  %209 = vmatprep.subr.mxu1 %v56_v15  ;;  %v37_v22 = vld [vmem:[%s1365_s0 + $0x80] sm:$0xff]  ;;  %v40_v23 = vld [vmem:[%s1365_s0 + $0x98] sm:$0xff]  ;;  %v30_v24 = vld [vmem:[%s1365_s0 + $0x48] sm:$0xff] }
   0x9   :  { %121 = vmatpush1.msra.mxu0 %v53_v14  ;;  %210 = vmatpush1.msra.mxu1 %v55_v17  ;;  %v39_v25 = vld [vmem:[%s1365_s0 + $0x90] sm:$0xff]  ;;  %v29_v26 = vld [vmem:[%s1365_s0 + $0x40] sm:$0xff]  ;;  %v32_v27 = vld [vmem:[%s1365_s0 + $0x58] sm:$0xff] }
   0xa   :  { %122 = vmatprep.subr.mxu0 %v46_v16  ;;  %211 = vmatprep.subr.mxu1 %v48_v19  ;;  %v22_v28 = vld [vmem:[%s1365_s0 + $0x8] sm:$0xff]  ;;  %v31_v29 = vld [vmem:[%s1365_s0 + $0x50] sm:$0xff]  ;;  %v21_v30 = vld [vmem:[%s1365_s0] sm:$0xff] }
   0xb   :  { %123 = vmatpush1.msra.mxu0 %v45_v18  ;;  %212 = vmatpush1.msra.mxu1 %v47_v21  ;;  %v24_v31 = vld [vmem:[%s1365_s0 + $0x18] sm:$0xff]  ;;  %v873_v32 = vld [vmem:[%s1366_s1] sm:$0xff]  ;;  %v82_v33 = vld [vmem:[%s1365_s0 + $0x1e8] sm:$0xff] }
   0xc   :  { %124 = vmatprep.subr.mxu0 %v38_v20  ;;  %213 = vmatprep.subr.mxu1 %v40_v23  ;;  %v23_v34 = vld [vmem:[%s1365_s0 + $0x10] sm:$0xff]  ;;  %v81_v35 = vld [vmem:[%s1365_s0 + $0x1e0] sm:$0xff]  ;;  %v74_v36 = vld [vmem:[%s1365_s0 + $0x1a8] sm:$0xff] }
   0xd   :  { %125 = vmatpush1.msra.mxu0 %v37_v22  ;;  %214 = vmatpush1.msra.mxu1 %v39_v25  ;;  %v84_v37 = vld [vmem:[%s1365_s0 + $0x1f8] sm:$0xff]  ;;  %v73_v38 = vld [vmem:[%s1365_s0 + $0x1a0] sm:$0xff]  ;;  %v83_v39 = vld [vmem:[%s1365_s0 + $0x1f0] sm:$0xff] }
   0xe   :  { %126 = vmatprep.subr.mxu0 %v30_v24  ;;  %215 = vmatprep.subr.mxu1 %v32_v27  ;;  %v903_v40 = vld [vmem:[%s1366_s1 + $0x8] sm:$0xff]  ;;  %v76_v42 = vld [vmem:[%s1365_s0 + $0x1b8] sm:$0xff]  ;;  %v65_v43 = vld [vmem:[%s1365_s0 + $0x160] sm:$0xff] }
   0xf   :  { %127 = vmatpush1.msra.mxu0 %v29_v26  ;;  %216 = vmatpush1.msra.mxu1 %v31_v29  ;;  %v66_v41 = vld [vmem:[%s1365_s0 + $0x168] sm:$0xff]  ;;  %v75_v44 = vld [vmem:[%s1365_s0 + $0x1b0] sm:$0xff]  ;;  %v68_v46 = vld [vmem:[%s1365_s0 + $0x178] sm:$0xff] }
  0x10   :  { %128 = vmatprep.subr.mxu0 %v22_v28  ;;  %217 = vmatprep.subr.mxu1 %v24_v31  ;;  %v58_v45 = vld [vmem:[%s1365_s0 + $0x128] sm:$0xff]  ;;  %v57_v47 = vld [vmem:[%s1365_s0 + $0x120] sm:$0xff]  ;;  %v67_v48 = vld [vmem:[%s1365_s0 + $0x170] sm:$0xff] }
  0x11   :  { %129 = vmatpush1.msra.mxu0 %v21_v30  ;;  %218 = vmatpush1.msra.mxu1 %v23_v34  ;;  %v19_v49 = vld [vmem:[%s1366_s1 + $0x10] sm:$0xff]  ;;  %v50_v50 = vld [vmem:[%s1365_s0 + $0xe8] sm:$0xff]  ;;  %v60_v51 = vld [vmem:[%s1365_s0 + $0x138] sm:$0xff] }
  0x12   :  { %726 = vmatmul.mubr.msk.f32.vlgmr.msra.gmra.mxu0 %vm85_vm0, %v873_v32  ;;  %292 = vmatprep.subr.mxu0 %v82_v33  ;;  %v49_v52 = vld [vmem:[%s1365_s0 + $0xe0] sm:$0xff]  ;;  %v59_v53 = vld [vmem:[%s1365_s0 + $0x130] sm:$0xff]  ;;  %v42_v54 = vld [vmem:[%s1365_s0 + $0xa8] sm:$0xff] }
  0x13   :  { %293 = vmatpush1.msra.mxu0 %v81_v35  ;;  %730 = vmatmul.mubr.msk.f32.vlgmr.msra.gmra.mxu1 %vm85_vm0, %v873_v32  ;;  %v52_v55 = vld [vmem:[%s1365_s0 + $0xf8] sm:$0xff]  ;;  %v41_v56 = vld [vmem:[%s1365_s0 + $0xa0] sm:$0xff]  ;;  %v51_v57 = vld [vmem:[%s1365_s0 + $0xf0] sm:$0xff] }
  0x14   :  { %294 = vmatprep.subr.mxu0 %v74_v36  ;;  %381 = vmatprep.subr.mxu1 %v84_v37  ;;  %v20_v58 = vld [vmem:[%s1366_s1 + $0x18] sm:$0xff]  ;;  %v34_v59 = vld [vmem:[%s1365_s0 + $0x68] sm:$0xff]  ;;  %v33_v61 = vld [vmem:[%s1365_s0 + $0x60] sm:$0xff] }
  0x15   :  { %168 = vmatprep.mubr.f32.mxu0 %v748_v3  ;;  %295 = vmatpush1.msra.mxu0 %v73_v38  ;;  %v44_v60 = vld [vmem:[%s1365_s0 + $0xb8] sm:$0xff]  ;;  %v43_v62 = vld [vmem:[%s1365_s0 + $0xb0] sm:$0xff]  ;;  %v26_v63 = vld [vmem:[%s1365_s0 + $0x28] sm:$0xff] }
  0x16   :  { %382 = vmatpush1.msra.mxu1 %v83_v39  ;;  %727 = vmatmul.mubr.msk.f32.gmra.mxu0 %vm85_vm0, %v903_v40  ;;  %v36_v0 = vld [vmem:[%s1365_s0 + $0x78] sm:$0xff]  ;;  %v25_v1 = vld [vmem:[%s1365_s0 + $0x20] sm:$0xff]  ;;  %v35_v2 = vld [vmem:[%s1365_s0 + $0x70] sm:$0xff] }
  0x17   :  { %296 = vmatprep.subr.mxu0 %v66_v41  ;;  %383 = vmatprep.subr.mxu1 %v76_v42  ;;  %v28_v4 = vld [vmem:[%s1365_s0 + $0x38] sm:$0xff]  ;;  %v27_v5 = vld [vmem:[%s1365_s0 + $0x30] sm:$0xff] }
  0x18   :  { %257 = vmatprep.mubr.f32.mxu1 %v748_v3  ;;  %297 = vmatpush1.msra.mxu0 %v65_v43 }
  0x19   :  { %384 = vmatpush1.msra.mxu1 %v75_v44  ;;  %298 = vmatprep.subr.mxu0 %v58_v45 }
  0x1a   :  { %731 = vmatmul.mubr.msk.f32.gmra.mxu1 %vm85_vm0, %v903_v40  ;;  %385 = vmatprep.subr.mxu1 %v68_v46 }
  0x1b   :  { %174 = vmatprep.mubr.f32.mxu0 %v748_v3  ;;  %299 = vmatpush1.msra.mxu0 %v57_v47 }
  0x1c   :  { %386 = vmatpush1.msra.mxu1 %v67_v48  ;;  %728 = vmatmul.mubr.msk.f32.gmra.mxu0 %vm85_vm0, %v19_v49 }
  0x1d   :  { %300 = vmatprep.subr.mxu0 %v50_v50  ;;  %387 = vmatprep.subr.mxu1 %v60_v51 }
  0x1e   :  { %263 = vmatprep.mubr.f32.mxu1 %v748_v3  ;;  %301 = vmatpush1.msra.mxu0 %v49_v52 }
  0x1f   :  { %388 = vmatpush1.msra.mxu1 %v59_v53  ;;  %302 = vmatprep.subr.mxu0 %v42_v54 }
  0x20   :  { %732 = vmatmul.mubr.msk.f32.gmra.mxu1 %vm85_vm0, %v19_v49  ;;  %389 = vmatprep.subr.mxu1 %v52_v55 }
  0x21   :  { %180 = vmatprep.mubr.f32.mxu0 %v748_v3  ;;  %303 = vmatpush1.msra.mxu0 %v41_v56 }
  0x22   :  { %390 = vmatpush1.msra.mxu1 %v51_v57  ;;  %729 = vmatmul.mubr.msk.f32.gmra.mxu0 %vm85_vm0, %v20_v58 }
  0x23   :  { %304 = vmatprep.subr.mxu0 %v34_v59  ;;  %391 = vmatprep.subr.mxu1 %v44_v60 }
  0x24   :  { %269 = vmatprep.mubr.f32.mxu1 %v748_v3  ;;  %305 = vmatpush1.msra.mxu0 %v33_v61 }
  0x25   :  { %392 = vmatpush1.msra.mxu1 %v43_v62  ;;  %306 = vmatprep.subr.mxu0 %v26_v63 }
  0x26   :  { %733 = vmatmul.mubr.msk.f32.gmra.mxu1 %vm85_vm0, %v20_v58  ;;  %393 = vmatprep.subr.mxu1 %v36_v0 }
  0x27   :  { %307 = vmatpush1.msra.mxu0 %v25_v1  ;;  %340 = vmatprep.mubr.f32.mxu0 %v748_v3 }
  0x28   :  { %394 = vmatpush1.msra.mxu1 %v35_v2  ;;  %734 = vmatmul.mubr.msk.f32.vlgmr.msra.gmra.mxu0 %vm85_vm0, %v873_v32 }
  0x29   :  { %395 = vmatprep.subr.mxu1 %v28_v4  ;;  %429 = vmatprep.mubr.f32.mxu1 %v748_v3 }
  0x2a   :  { %396 = vmatpush1.msra.mxu1 %v27_v5  ;;  %346 = vmatprep.mubr.f32.mxu0 %v748_v3 }
  0x2b   :  { %738 = vmatmul.mubr.msk.f32.vlgmr.msra.gmra.mxu1 %vm85_vm0, %v873_v32 }
  0x2c   :  { %435 = vmatprep.mubr.f32.mxu1 %v748_v3  ;;  %735 = vmatmul.mubr.msk.f32.gmra.mxu0 %vm85_vm0, %v903_v40 }
  0x2d   :  { %352 = vmatprep.mubr.f32.mxu0 %v748_v3 }
  0x2f   :  { %739 = vmatmul.mubr.msk.f32.gmra.mxu1 %vm85_vm0, %v903_v40 }
  0x30   :  { %441 = vmatprep.mubr.f32.mxu1 %v748_v3  ;;  %736 = vmatmul.mubr.msk.f32.gmra.mxu0 %vm85_vm0, %v19_v49 }
  0x31   :  { %358 = vmatprep.mubr.f32.mxu0 %v748_v3 }
  0x33   :  { %740 = vmatmul.mubr.msk.f32.gmra.mxu1 %vm85_vm0, %v19_v49 }
  0x34   :  { %447 = vmatprep.mubr.f32.mxu1 %v748_v3  ;;  %737 = vmatmul.mubr.msk.f32.gmra.mxu0 %vm85_vm0, %v20_v58 }
  0x37   :  { %741 = vmatmul.mubr.msk.f32.gmra.mxu1 %vm85_vm0, %v20_v58 }
  0xd2   :  { %v1023_v6 = vpop.f32.mrf.mxu0 }
  0xd3   :  { %v1027_v8 = vpop.f32.mrf.mxu1  ;;  %v495_v17 = vmul.f32 %v1023_v6, %v1023_v6 }
  0xd4   :  { %v1025_v7 = vpop.f32.mrf.mxu0  ;;  %v497_v22 = vmul.f32 %v1027_v8, %v1027_v8 }
  0xd5   :  { %v1029_v9 = vpop.f32.mrf.mxu1  ;;  %v496_v14 = vmul.f32 %v1025_v7, %v1025_v7  ;;  %v454_v18 = vadd.f32 %v1025_v7, %v1023_v6 }
  0xd6   :  { %v1031_v10 = vpop.f32.mrf.mxu0  ;;  %v498_v40 = vmul.f32 %v1029_v9, %v1029_v9 }
  0xd7   :  { %v503_v20 = vmul.f32 %v1031_v10, %v1031_v10  ;;  %v527_v21 = vadd.f32 %v496_v14, %v495_v17  ;;  %v455_v29 = vadd.f32 %v454_v18, %v1027_v8 }
  0xd8   :  { %v1033_v11 = vpop.f32.mrf.mxu0 }
  0xd9   :  { %v504_v15 = vmul.f32 %v1033_v11, %v1033_v11  ;;  %v465_v25 = vadd.f32 %v1033_v11, %v1031_v10  ;;  %v528_v33 = vadd.f32 %v527_v21, %v497_v22  ;;  %v456_v39 = vadd.f32 %v455_v29, %v1029_v9 }
  0xda   :  { %v1035_v12 = vpop.f32.mrf.mxu1 }
  0xdb   :  { %v537_v26 = vadd.f32 %v504_v15, %v503_v20  ;;  %v505_v27 = vmul.f32 %v1035_v12, %v1035_v12  ;;  %v466_v37 = vadd.f32 %v465_v25, %v1035_v12  ;;  %v529_v46 = vadd.f32 %v528_v33, %v498_v40 }
  0xdc   :  { %v1037_v13 = vpop.f32.mrf.mxu1  ;;  %v1039_v3 = vpop.f32.mrf.mxu0 }
  0xdd   :  { %v511_v30 = vmul.f32 %v1039_v3, %v1039_v3  ;;  %v538_v38 = vadd.f32 %v537_v26, %v505_v27  ;;  %v506_v42 = vmul.f32 %v1037_v13, %v1037_v13  ;;  %v467_v50 = vadd.f32 %v466_v37, %v1037_v13 }
  0xde   :  { %v1045_v16 = vpop.f32.mrf.mxu0 }
  0xdf   :  { %v512_v23 = vmul.f32 %v1045_v16, %v1045_v16  ;;  %v475_v31 = vadd.f32 %v1045_v16, %v1039_v3  ;;  %v539_v51 = vadd.f32 %v538_v38, %v506_v42 }
  0xe0   :  { %v1051_v19 = vpop.f32.mrf.mxu1 }
  0xe1   :  { %v547_v34 = vadd.f32 %v512_v23, %v511_v30  ;;  %v513_v35 = vmul.f32 %v1051_v19, %v1051_v19  ;;  %v476_v43 = vadd.f32 %v475_v31, %v1051_v19 }
  0xe2   :  { %v1059_v24 = vpop.f32.mrf.mxu1  ;;  %v1065_v28 = vpop.f32.mrf.mxu0 }
  0xe3   :  { %v548_v47 = vadd.f32 %v547_v34, %v513_v35  ;;  %v519_v52 = vmul.f32 %v1065_v28, %v1065_v28  ;;  %v514_v56 = vmul.f32 %v1059_v24, %v1059_v24  ;;  %v477_v60 = vadd.f32 %v476_v43, %v1059_v24 }
  0xe4   :  { %v1072_v32 = vpop.f32.mrf.mxu0 }
  0xe5   :  { %v520_v44 = vmul.f32 %v1072_v32, %v1072_v32  ;;  %v485_v53 = vadd.f32 %v1072_v32, %v1065_v28  ;;  %v549_v2 = vadd.f32 %v548_v47, %v514_v56 }
  0xe6   :  { %v1076_v36 = vpop.f32.mrf.mxu1 }
  0xe7   :  { %v557_v61 = vadd.f32 %v520_v44, %v519_v52  ;;  %v521_v62 = vmul.f32 %v1076_v36, %v1076_v36  ;;  %v486_v15 = vadd.f32 %v485_v53, %v1076_v36 }
  0xe8   :  { %v1082_v41 = vpop.f32.mrf.mxu1  ;;  %v1089_v45 = vpop.f32.mrf.mxu0 }
  0xe9   :  { %v457_v48 = vadd.f32 %v456_v39, %v1089_v45  ;;  %v499_v49 = vmul.f32 %v1089_v45, %v1089_v45  ;;  %v522_v17 = vmul.f32 %v1082_v41, %v1082_v41  ;;  %v558_v29 = vadd.f32 %v557_v61, %v521_v62 }
  0xea   :  { %v1099_v54 = vpop.f32.mrf.mxu0  ;;  %v487_v42 = vadd.f32 %v486_v15, %v1082_v41 }
  0xeb   :  { %v1101_v55 = vpop.f32.mrf.mxu1  ;;  %v530_v57 = vadd.f32 %v529_v46, %v499_v49  ;;  %v458_v58 = vadd.f32 %v457_v48, %v1099_v54  ;;  %v500_v59 = vmul.f32 %v1099_v54, %v1099_v54 }
  0xec   :  { %v501_v63 = vmul.f32 %v1101_v55, %v1101_v55  ;;  %v1113_v0 = vpop.f32.mrf.mxu0 }
  0xed   :  { %v1115_v1 = vpop.f32.mrf.mxu1  ;;  %v468_v4 = vadd.f32 %v467_v50, %v1113_v0  ;;  %v507_v5 = vmul.f32 %v1113_v0, %v1113_v0  ;;  %v459_v14 = vadd.f32 %v458_v58, %v1101_v55  ;;  %v531_v22 = vadd.f32 %v530_v57, %v500_v59 }
  0xee   :  { %v1124_v18 = vpop.f32.mrf.mxu0  ;;  %v502_v21 = vmul.f32 %v1115_v1, %v1115_v1  ;;  %v461_v27 = vsel %vm460_vm1, %v1115_v1, 0.0 }
  0xef   :  { %v1126_v20 = vpop.f32.mrf.mxu1  ;;  %v540_v23 = vadd.f32 %v539_v51, %v507_v5  ;;  %v469_v25 = vadd.f32 %v468_v4, %v1124_v18  ;;  %v508_v26 = vmul.f32 %v1124_v18, %v1124_v18  ;;  %v462_v34 = vadd.f32 %v461_v27, %v459_v14 }
  0xf0   :  { %v509_v30 = vmul.f32 %v1126_v20, %v1126_v20  ;;  %v1137_v31 = vpop.f32.mrf.mxu0  ;;  %v532_v35 = vadd.f32 %v531_v22, %v501_v63  ;;  %v533_v39 = vsel %vm460_vm1, %v502_v21, 0.0 }
  0xf1   :  { %v1139_v33 = vpop.f32.mrf.mxu1  ;;  %v478_v37 = vadd.f32 %v477_v60, %v1137_v31  ;;  %v515_v38 = vmul.f32 %v1137_v31, %v1137_v31  ;;  %v470_v40 = vadd.f32 %v469_v25, %v1126_v20  ;;  %463 = vadd.xlane.f32.xlu0 %v462_v34  ;;  %v541_v48 = vadd.f32 %v540_v23, %v508_v26 }
  0xf2   :  { %v510_v43 = vmul.f32 %v1139_v33, %v1139_v33  ;;  %v1149_v44 = vpop.f32.mrf.mxu0  ;;  %v534_v47 = vadd.f32 %v533_v39, %v532_v35  ;;  %v471_v52 = vsel %vm460_vm1, %v1139_v33, 0.0  ;;  %v559_v60 = vadd.f32 %v558_v29, %v522_v17 }
  0xf3   :  { %v1151_v46 = vpop.f32.mrf.mxu1  ;;  %v550_v49 = vadd.f32 %v549_v2, %v515_v38  ;;  %v479_v50 = vadd.f32 %v478_v37, %v1149_v44  ;;  %v516_v51 = vmul.f32 %v1149_v44, %v1149_v44  ;;  %v472_v58 = vadd.f32 %v471_v52, %v470_v40 }
  0xf4   :  { %v517_v53 = vmul.f32 %v1151_v46, %v1151_v46  ;;  %535 = vadd.xlane.f32.xlu1 %v534_v47  ;;  %v1160_v56 = vpop.f32.mrf.mxu0  ;;  %v542_v59 = vadd.f32 %v541_v48, %v509_v30  ;;  %v543_v14 = vsel %vm460_vm1, %v510_v43, 0.0 }
  0xf5   :  { %v1162_v57 = vpop.f32.mrf.mxu1  ;;  %v488_v61 = vadd.f32 %v487_v42, %v1160_v56  ;;  %v523_v62 = vmul.f32 %v1160_v56, %v1160_v56  ;;  %v480_v63 = vadd.f32 %v479_v50, %v1151_v46  ;;  %473 = vadd.xlane.f32.xlu0 %v472_v58  ;;  %v551_v15 = vadd.f32 %v550_v49, %v516_v51 }
  0xf6   :  { %v518_v2 = vmul.f32 %v1162_v57, %v1162_v57  ;;  %v1170_v4 = vpop.f32.mrf.mxu0  ;;  %v481_v23 = vsel %vm460_vm1, %v1162_v57, 0.0  ;;  %v544_v27 = vadd.f32 %v543_v14, %v542_v59  ;;  %v749_v49 = vmov 0  }
  0xf7   :  { %v1172_v5 = vpop.f32.mrf.mxu1  ;;  %v560_v21 = vadd.f32 %v559_v60, %v523_v62  ;;  %v489_v17 = vadd.f32 %v488_v61, %v1170_v4  ;;  %v524_v22 = vmul.f32 %v1170_v4, %v1170_v4  ;;  %v482_v29 = vadd.f32 %v481_v23, %v480_v63  ;;  %744 = vset.pattern.permute.xlu0 %v749_v49 }
  0xf8   :  { %v525_v25 = vmul.f32 %v1172_v5, %v1172_v5  ;;  %v552_v30 = vadd.f32 %v551_v15, %v517_v53  ;;  %v553_v39 = vsel %vm460_vm1, %v518_v2, 0.0  ;;  %745 = vset.pattern.permute.xlu1 %v749_v49 }
  0xf9   :  { %v1182_v26 = vpop.f32.mrf.mxu1  ;;  %v561_v34 = vadd.f32 %v560_v21, %v524_v22  ;;  %v490_v35 = vadd.f32 %v489_v17, %v1172_v5  ;;  %545 = vadd.xlane.f32.xlu0 %v544_v27  ;;  %483 = vadd.xlane.f32.xlu1 %v482_v29  ;;  %v577_v29 = vld [vmem:[%s1367_s2] sm:$0xff] }
  0xfa   :  { %v491_v37 = vsel %vm460_vm1, %v1182_v26, 0.0  ;;  %v526_v38 = vmul.f32 %v1182_v26, %v1182_v26  ;;  %v554_v42 = vadd.f32 %v553_v39, %v552_v30 }
  0xfb   :  { %v492_v40 = vadd.f32 %v491_v37, %v490_v35  ;;  %v562_v43 = vadd.f32 %v561_v34, %v525_v25  ;;  %v581_v35 = vld [vmem:[%s1368_s3] sm:$0xff] }
  0xfc   :  { %v563_v47 = vsel %vm460_vm1, %v526_v38, 0.0 }
  0xfd   :  { %555 = vadd.xlane.f32.xlu0 %v554_v42  ;;  %493 = vadd.xlane.f32.xlu1 %v492_v40  ;;  %v564_v48 = vadd.f32 %v563_v47, %v562_v43 }
 0x101   :  { %565 = vadd.xlane.f32.xlu1 %v564_v48 }
 0x17a   :  { %v464_v50 = vpop.xlane.xlu0 %463 }
 0x17d   :  { %v536_v51 = vpop.xlane.xlu1 %535 }
 0x17e   :  { %v474_v52 = vpop.xlane.xlu0 %473 }
 0x17f   :  { %v567_v59 = vadd.f32 %v474_v52, %v464_v50 }
 0x182   :  { %v546_v53 = vpop.xlane.xlu0 %545  ;;  %v484_v58 = vpop.xlane.xlu1 %483 }
 0x183   :  { %v568_v60 = vadd.f32 %v567_v59, %v484_v58  ;;  %v570_v63 = vadd.f32 %v546_v53, %v536_v51 }
 0x186   :  { %v556_v61 = vpop.xlane.xlu0 %555  ;;  %v494_v62 = vpop.xlane.xlu1 %493 }
 0x187   :  { %v569_v2 = vadd.f32 %v568_v60, %v494_v62  ;;  %v571_v14 = vadd.f32 %v570_v63, %v556_v61 }
 0x189   :  { %v573_v15 = vmul.f32 0.00025, %v569_v2 }
 0x18a   :  { %v566_v21 = vpop.xlane.xlu1 %565 }
 0x18b   :  { %v572_v17 = vadd.f32 %v571_v14, %v566_v21  ;;  %v575_v22 = vmul.f32 %v573_v15, %v573_v15 }
 0x18d   :  { %v574_v23 = vmul.f32 0.00025, %v572_v17 }
 0x18f   :  { %v576_v25 = vsub.f32 %v574_v23, %v575_v22 }
 0x191   :  { %v578_v27 = vadd.f32 1e-05, %v576_v25 }
 0x193   :  { %746 = vrsqrt.f32 %v578_v27 }
 0x1a0   :  { %v747_v30 = vpop.eup %746 }
 0x1a1   :  { %v580_v34 = vmul.f32 %v747_v30, %v577_v29 }
 0x1a3   :  { %586 = vperm.xlu0 %744, %v580_v34   ;;  %v582_v37 = vmul.f32 %v580_v34, %v573_v15 }
 0x1a5   :  { %v583_v38 = vsub.f32 %v581_v35, %v582_v37 }
 0x1a7   :  { %623 = vperm.xlu1 %745, %v583_v38  }
 0x21e   :  { %v587_v39 = vpop.permute.xlu0 %586 }
 0x21f   :  { %v589_v40 = vmul.f32 %v587_v39, %v1023_v6  ;;  %v590_v42 = vmul.f32 %v587_v39, %v1025_v7  ;;  %v591_v43 = vmul.f32 %v587_v39, %v1027_v8  ;;  %v592_v47 = vmul.f32 %v587_v39, %v1029_v9 }
 0x220   :  { %v593_v48 = vmul.f32 %v587_v39, %v1089_v45  ;;  %v594_v49 = vmul.f32 %v587_v39, %v1099_v54  ;;  %v595_v50 = vmul.f32 %v587_v39, %v1101_v55  ;;  %v596_v51 = vmul.f32 %v587_v39, %v1115_v1 }
 0x221   :  { %v597_v52 = vmul.f32 %v587_v39, %v1031_v10  ;;  %v598_v53 = vmul.f32 %v587_v39, %v1033_v11  ;;  %v599_v6 = vmul.f32 %v587_v39, %v1035_v12  ;;  %v600_v7 = vmul.f32 %v587_v39, %v1037_v13 }
 0x222   :  { %v601_v8 = vmul.f32 %v587_v39, %v1113_v0  ;;  %v602_v9 = vmul.f32 %v587_v39, %v1124_v18  ;;  %v603_v45 = vmul.f32 %v587_v39, %v1126_v20  ;;  %v604_v54 = vmul.f32 %v587_v39, %v1139_v33  ;;  %v624_v58 = vpop.permute.xlu1 %623 }
 0x223   :  { %v605_v55 = vmul.f32 %v587_v39, %v1039_v3  ;;  %v606_v1 = vmul.f32 %v587_v39, %v1045_v16  ;;  %v607_v10 = vmul.f32 %v587_v39, %v1051_v19  ;;  %v608_v11 = vmul.f32 %v587_v39, %v1059_v24 }
 0x224   :  { %v609_v12 = vmul.f32 %v587_v39, %v1137_v31  ;;  %v610_v13 = vmul.f32 %v587_v39, %v1149_v44  ;;  %v611_v0 = vmul.f32 %v587_v39, %v1151_v46  ;;  %v612_v18 = vmul.f32 %v587_v39, %v1162_v57 }
 0x225   :  { %v613_v20 = vmul.f32 %v587_v39, %v1065_v28  ;;  %v614_v33 = vmul.f32 %v587_v39, %v1072_v32  ;;  %v615_v3 = vmul.f32 %v587_v39, %v1076_v36  ;;  %v616_v16 = vmul.f32 %v587_v39, %v1082_v41 }
 0x226   :  { %v617_v19 = vmul.f32 %v587_v39, %v1160_v56  ;;  %v618_v24 = vmul.f32 %v587_v39, %v1170_v4  ;;  %v619_v31 = vmul.f32 %v587_v39, %v1172_v5  ;;  %v620_v44 = vmul.f32 %v587_v39, %v1182_v26 }
 0x227   :  { %v626_v46 = vadd.f32 %v624_v58, %v589_v40  ;;  %v627_v59 = vadd.f32 %v624_v58, %v590_v42  ;;  %v628_v57 = vadd.f32 %v624_v58, %v591_v43  ;;  %v629_v60 = vadd.f32 %v624_v58, %v592_v47 }
 0x228   :  { %v630_v61 = vadd.f32 %v624_v58, %v593_v48  ;;  %v631_v28 = vadd.f32 %v624_v58, %v594_v49  ;;  %v632_v62 = vadd.f32 %v624_v58, %v595_v50  ;;  %v633_v32 = vadd.f32 %v624_v58, %v596_v51 }
 0x229   :  { %v634_v63 = vadd.f32 %v624_v58, %v597_v52  ;;  %v635_v36 = vadd.f32 %v624_v58, %v598_v53  ;;  %v636_v2 = vadd.f32 %v624_v58, %v599_v6  ;;  %v637_v41 = vadd.f32 %v624_v58, %v600_v7 }
 0x22a   :  { %v638_v14 = vadd.f32 %v624_v58, %v601_v8  ;;  %v639_v56 = vadd.f32 %v624_v58, %v602_v9  ;;  %v640_v15 = vadd.f32 %v624_v58, %v603_v45  ;;  %v641_v4 = vadd.f32 %v624_v58, %v604_v54 }
 0x22b   :  { %v642_v21 = vadd.f32 %v624_v58, %v605_v55  ;;  %v643_v5 = vadd.f32 %v624_v58, %v606_v1  ;;  %v644_v17 = vadd.f32 %v624_v58, %v607_v10  ;;  %v645_v26 = vadd.f32 %v624_v58, %v608_v11 }
 0x22c   :  { %v1229_v22 = vadd.f32 %v624_v58, %v609_v12  ;;  %v1231_v23 = vadd.f32 %v624_v58, %v610_v13  ;;  %v1233_v25 = vadd.f32 %v624_v58, %v611_v0  ;;  %v1235_v27 = vadd.f32 %v624_v58, %v612_v18 }
 0x22d   :  { %v1237_v29 = vadd.f32 %v624_v58, %v613_v20  ;;  %v1239_v30 = vadd.f32 %v624_v58, %v614_v33  ;;  %v1241_v34 = vadd.f32 %v624_v58, %v615_v3  ;;  %v1243_v35 = vadd.f32 %v624_v58, %v616_v16 }
 0x22e   :  { %v1245_v37 = vadd.f32 %v624_v58, %v617_v19  ;;  %v1247_v38 = vadd.f32 %v624_v58, %v618_v24  ;;  %v1249_v39 = vadd.f32 %v624_v58, %v619_v31  ;;  %v1251_v40 = vadd.f32 %v624_v58, %v620_v44 }
 0x22f   :  { %v658_v42 = vmax.f32 %v626_v46, 0.0  ;;  %v659_v43 = vmax.f32 %v627_v59, 0.0  ;;  %v660_v47 = vmax.f32 %v628_v57, 0.0  ;;  %v661_v48 = vmax.f32 %v629_v60, 0.0 }
 0x230   :  { %v662_v49 = vmax.f32 %v630_v61, 0.0  ;;  %v663_v50 = vmax.f32 %v631_v28, 0.0  ;;  %v664_v51 = vmax.f32 %v632_v62, 0.0  ;;  %v665_v52 = vmax.f32 %v633_v32, 0.0 }
 0x231   :  { %v666_v53 = vmax.f32 %v634_v63, 0.0  ;;  %v667_v6 = vmax.f32 %v635_v36, 0.0  ;;  %v668_v7 = vmax.f32 %v636_v2, 0.0  ;;  %v669_v8 = vmax.f32 %v637_v41, 0.0  ;;  %690 = vst [vmem:[%s1369_s4] sm:$0xff] %v658_v42  ;;  %691 = vst [vmem:[%s1369_s4 + $0x8] sm:$0xff] %v659_v43 }
 0x232   :  { %692 = vst [vmem:[%s1369_s4 + $0x10] sm:$0xff] %v660_v47  ;;  %693 = vst [vmem:[%s1369_s4 + $0x18] sm:$0xff] %v661_v48  ;;  %v670_v9 = vmax.f32 %v638_v14, 0.0  ;;  %v671_v45 = vmax.f32 %v639_v56, 0.0  ;;  %v672_v54 = vmax.f32 %v640_v15, 0.0  ;;  %v673_v55 = vmax.f32 %v641_v4, 0.0 }
 0x233   :  { %694 = vst [vmem:[%s1369_s4 + $0x20] sm:$0xff] %v662_v49  ;;  %695 = vst [vmem:[%s1369_s4 + $0x28] sm:$0xff] %v663_v50  ;;  %v674_v1 = vmax.f32 %v642_v21, 0.0  ;;  %v675_v10 = vmax.f32 %v643_v5, 0.0  ;;  %v676_v11 = vmax.f32 %v644_v17, 0.0  ;;  %v677_v12 = vmax.f32 %v645_v26, 0.0 }
 0x234   :  { %696 = vst [vmem:[%s1369_s4 + $0x30] sm:$0xff] %v664_v51  ;;  %697 = vst.msk [vmem:[%s1369_s4 + $0x38] sm:$0xff] %vm460_vm1, %v665_v52  ;;  %v678_v13 = vmax.f32 %v1229_v22, 0.0  ;;  %v679_v0 = vmax.f32 %v1231_v23, 0.0  ;;  %v680_v18 = vmax.f32 %v1233_v25, 0.0  ;;  %v681_v58 = vmax.f32 %v1235_v27, 0.0 }
 0x235   :  { %698 = vst [vmem:[%s1369_s4 + $0x40] sm:$0xff] %v666_v53  ;;  %699 = vst [vmem:[%s1369_s4 + $0x48] sm:$0xff] %v667_v6  ;;  %v682_v20 = vmax.f32 %v1237_v29, 0.0  ;;  %v683_v33 = vmax.f32 %v1239_v30, 0.0  ;;  %v684_v3 = vmax.f32 %v1241_v34, 0.0  ;;  %v685_v16 = vmax.f32 %v1243_v35, 0.0 }
 0x236   :  { %700 = vst [vmem:[%s1369_s4 + $0x50] sm:$0xff] %v668_v7  ;;  %701 = vst [vmem:[%s1369_s4 + $0x58] sm:$0xff] %v669_v8  ;;  %v686_v19 = vmax.f32 %v1245_v37, 0.0  ;;  %v687_v24 = vmax.f32 %v1247_v38, 0.0  ;;  %v688_v31 = vmax.f32 %v1249_v39, 0.0  ;;  %v689_v44 = vmax.f32 %v1251_v40, 0.0 }
 0x237   :  { %702 = vst [vmem:[%s1369_s4 + $0x60] sm:$0xff] %v670_v9  ;;  %703 = vst [vmem:[%s1369_s4 + $0x68] sm:$0xff] %v671_v45 }
 0x238   :  { %704 = vst [vmem:[%s1369_s4 + $0x70] sm:$0xff] %v672_v54  ;;  %705 = vst.msk [vmem:[%s1369_s4 + $0x78] sm:$0xff] %vm460_vm1, %v673_v55 }
 0x239   :  { %706 = vst [vmem:[%s1369_s4 + $0x80] sm:$0xff] %v674_v1  ;;  %707 = vst [vmem:[%s1369_s4 + $0x88] sm:$0xff] %v675_v10 }
 0x23a   :  { %708 = vst [vmem:[%s1369_s4 + $0x90] sm:$0xff] %v676_v11  ;;  %709 = vst [vmem:[%s1369_s4 + $0x98] sm:$0xff] %v677_v12 }
 0x23b   :  { %710 = vst [vmem:[%s1369_s4 + $0xa0] sm:$0xff] %v678_v13  ;;  %711 = vst [vmem:[%s1369_s4 + $0xa8] sm:$0xff] %v679_v0 }
 0x23c   :  { %712 = vst [vmem:[%s1369_s4 + $0xb0] sm:$0xff] %v680_v18  ;;  %713 = vst.msk [vmem:[%s1369_s4 + $0xb8] sm:$0xff] %vm460_vm1, %v681_v58 }
 0x23d   :  { %714 = vst [vmem:[%s1369_s4 + $0xc0] sm:$0xff] %v682_v20  ;;  %715 = vst [vmem:[%s1369_s4 + $0xc8] sm:$0xff] %v683_v33 }
 0x23e   :  { %716 = vst [vmem:[%s1369_s4 + $0xd0] sm:$0xff] %v684_v3  ;;  %717 = vst [vmem:[%s1369_s4 + $0xd8] sm:$0xff] %v685_v16 }
 0x23f   :  { %718 = vst [vmem:[%s1369_s4 + $0xe0] sm:$0xff] %v686_v19  ;;  %719 = vst [vmem:[%s1369_s4 + $0xe8] sm:$0xff] %v687_v24 }
 0x240   :  { %720 = vst [vmem:[%s1369_s4 + $0xf0] sm:$0xff] %v688_v31  ;;  %721 = vst.msk [vmem:[%s1369_s4 + $0xf8] sm:$0xff] %vm460_vm1, %v689_v44 }

// kernel: decoder_forward.7
= control target key start
LH: loop header
LB: loop body
LE: loop exit
PB: predicated region body
PF: predicated region fallthrough
CT: control target
= control target key end

     0   :  { %s1319_s12 = smov 0   ;;  %s1321_s13 = smov 0   ;;  %s1632_s0 = inlined_call_operand.vmem [shape: f32[32,4096], index: 0, kind: input, shape index: {}]   ;;  %s1633_s1 = inlined_call_operand.vmem [shape: f32[4,32], index: 1, kind: input, shape index: {}]   ;;  %s1634_s2 = inlined_call_operand.vmem [shape: f32[4,1], index: 2, kind: input, shape index: {}]   ;;  %s1635_s3 = inlined_call_operand.vmem [shape: f32[4,4096], index: 3, kind: output, shape index: {}]  }
   0x1   :  { %s1323_s14 = smov 0  }
   0x2 LB: > { %s1160_s15 = sadd.s32 4294967295, %s1295_s14   ;;  %s1336_s16 = sadd.s32 1, %s1295_s14   ;;  %s1295_s14 = sphi %s1323_s14, %s1638_s14   ;;  %s1291_s13 = sphi %s1321_s13, %s1637_s13   ;;  %s1287_s12 = sphi %s1319_s12, %s1636_s12  }
   0x3   : > { %s17_s17 = ssub.s32 %s1295_s14, %s1336_s16  ;;  %s20_s18 = sadd.s32 1, %s1291_s13 }
   0x4   : > { %p18_p0 = scmp.eq.s32.totalorder %s17_s17, 0  ;;  %p27_p1 = scmp.ne.s32.totalorder %s1291_s13, %s1287_s12 }
   0x5   : > { %p28_p2 = scmp.eq.s32.totalorder %s1295_s14, 0  ;;  %p1163_p4 = scmp.ge.s32.totalorder %s1295_s14, 2 }
   0x6   : > { %s1345_s19 = scalar_select %p18_p0, %s1291_s13, %s20_s18  }
   0x7   : > { %p29_p3 = por %p28_p2, %p27_p1  ;;  %127 = sbr.rel (%p1163_p4) target bundleno = 48 (0x30), region = 24 }
   0xc   : > { %130 = sbr.rel (!%p29_p3) target bundleno = 48 (0x30), region = 28  ;;  %s132_s20 = sand.u32 (%p29_p3), 1, %s1291_s13  }
   0xd   : > { %s1181_s21 = sshll.u32 (%p29_p3), %s1295_s14, 7  ;;  %s1164_s22 = sshll.u32 (%p29_p3), %s132_s20, 9 }
   0xe   : > { %s1353_s25 = scalar_lea.vmem (%p29_p3), %s1632_s0, %s1181_s21  ;;  %s1358_s26 = scalar_lea.vmem (%p29_p3), [#allocation2], %s1164_s22 }
   0xf   : > { %v150_v0 = vld [vmem:[%s1353_s25] sm:$0xff] (%p29_p3)  ;;  %v152_v1 = vld [vmem:[%s1353_s25 + $0x8] sm:$0xff] (%p29_p3)  ;;  %v154_v2 = vld [vmem:[%s1353_s25 + $0x10] sm:$0xff] (%p29_p3) }
  0x10   : > { %151 = vst [vmem:[%s1358_s26] sm:$0xff] (%p29_p3), %v150_v0  ;;  %153 = vst [vmem:[%s1358_s26 + $0x8] sm:$0xff] (%p29_p3), %v152_v1  ;;  %v156_v3 = vld [vmem:[%s1353_s25 + $0x18] sm:$0xff] (%p29_p3)  ;;  %v158_v4 = vld [vmem:[%s1353_s25 + $0x20] sm:$0xff] (%p29_p3) }
  0x11   : > { %155 = vst [vmem:[%s1358_s26 + $0x10] sm:$0xff] %v154_v2  ;;  %v160_v5 = vld [vmem:[%s1353_s25 + $0x28] sm:$0xff]  ;;  %157 = vst [vmem:[%s1358_s26 + $0x18] sm:$0xff] %v156_v3  ;;  %v162_v6 = vld [vmem:[%s1353_s25 + $0x30] sm:$0xff] }
  0x12   : > { %159 = vst [vmem:[%s1358_s26 + $0x20] sm:$0xff] %v158_v4  ;;  %161 = vst [vmem:[%s1358_s26 + $0x28] sm:$0xff] %v160_v5  ;;  %v164_v7 = vld [vmem:[%s1353_s25 + $0x38] sm:$0xff]  ;;  %v166_v8 = vld [vmem:[%s1353_s25 + $0x40] sm:$0xff] }
  0x13   : > { %163 = vst [vmem:[%s1358_s26 + $0x30] sm:$0xff] %v162_v6  ;;  %165 = vst [vmem:[%s1358_s26 + $0x38] sm:$0xff] %v164_v7  ;;  %v168_v9 = vld [vmem:[%s1353_s25 + $0x48] sm:$0xff]  ;;  %v170_v10 = vld [vmem:[%s1353_s25 + $0x50] sm:$0xff] }
  0x14   : > { %167 = vst [vmem:[%s1358_s26 + $0x40] sm:$0xff] %v166_v8  ;;  %v172_v11 = vld [vmem:[%s1353_s25 + $0x58] sm:$0xff]  ;;  %169 = vst [vmem:[%s1358_s26 + $0x48] sm:$0xff] %v168_v9  ;;  %v174_v12 = vld [vmem:[%s1353_s25 + $0x60] sm:$0xff] }
  0x15   : > { %171 = vst [vmem:[%s1358_s26 + $0x50] sm:$0xff] %v170_v10  ;;  %173 = vst [vmem:[%s1358_s26 + $0x58] sm:$0xff] %v172_v11  ;;  %v176_v13 = vld [vmem:[%s1353_s25 + $0x68] sm:$0xff]  ;;  %v178_v14 = vld [vmem:[%s1353_s25 + $0x70] sm:$0xff] }
  0x16   : > { %175 = vst [vmem:[%s1358_s26 + $0x60] sm:$0xff] %v174_v12  ;;  %177 = vst [vmem:[%s1358_s26 + $0x68] sm:$0xff] %v176_v13  ;;  %v180_v15 = vld [vmem:[%s1353_s25 + $0x78] sm:$0xff]  ;;  %v182_v16 = vld [vmem:[%s1353_s25 + $0x100] sm:$0xff] }
  0x17   : > { %179 = vst [vmem:[%s1358_s26 + $0x70] sm:$0xff] %v178_v14  ;;  %v184_v17 = vld [vmem:[%s1353_s25 + $0x108] sm:$0xff]  ;;  %181 = vst [vmem:[%s1358_s26 + $0x78] sm:$0xff] %v180_v15  ;;  %v186_v18 = vld [vmem:[%s1353_s25 + $0x110] sm:$0xff] }
  0x18   : > { %183 = vst [vmem:[%s1358_s26 + $0x80] sm:$0xff] %v182_v16  ;;  %185 = vst [vmem:[%s1358_s26 + $0x88] sm:$0xff] %v184_v17  ;;  %v188_v19 = vld [vmem:[%s1353_s25 + $0x118] sm:$0xff]  ;;  %v190_v20 = vld [vmem:[%s1353_s25 + $0x120] sm:$0xff] }
  0x19   : > { %187 = vst [vmem:[%s1358_s26 + $0x90] sm:$0xff] %v186_v18  ;;  %189 = vst [vmem:[%s1358_s26 + $0x98] sm:$0xff] %v188_v19  ;;  %v192_v21 = vld [vmem:[%s1353_s25 + $0x128] sm:$0xff]  ;;  %v194_v22 = vld [vmem:[%s1353_s25 + $0x130] sm:$0xff] }
  0x1a   : > { %191 = vst [vmem:[%s1358_s26 + $0xa0] sm:$0xff] %v190_v20  ;;  %v196_v23 = vld [vmem:[%s1353_s25 + $0x138] sm:$0xff]  ;;  %193 = vst [vmem:[%s1358_s26 + $0xa8] sm:$0xff] %v192_v21  ;;  %v198_v24 = vld [vmem:[%s1353_s25 + $0x140] sm:$0xff] }
  0x1b   : > { %195 = vst [vmem:[%s1358_s26 + $0xb0] sm:$0xff] %v194_v22  ;;  %197 = vst [vmem:[%s1358_s26 + $0xb8] sm:$0xff] %v196_v23  ;;  %v200_v25 = vld [vmem:[%s1353_s25 + $0x148] sm:$0xff]  ;;  %v202_v26 = vld [vmem:[%s1353_s25 + $0x150] sm:$0xff] }
  0x1c   : > { %199 = vst [vmem:[%s1358_s26 + $0xc0] sm:$0xff] %v198_v24  ;;  %201 = vst [vmem:[%s1358_s26 + $0xc8] sm:$0xff] %v200_v25  ;;  %v204_v27 = vld [vmem:[%s1353_s25 + $0x158] sm:$0xff]  ;;  %v206_v28 = vld [vmem:[%s1353_s25 + $0x160] sm:$0xff] }
  0x1d   : > { %203 = vst [vmem:[%s1358_s26 + $0xd0] sm:$0xff] %v202_v26  ;;  %v208_v29 = vld [vmem:[%s1353_s25 + $0x168] sm:$0xff]  ;;  %205 = vst [vmem:[%s1358_s26 + $0xd8] sm:$0xff] %v204_v27  ;;  %v210_v30 = vld [vmem:[%s1353_s25 + $0x170] sm:$0xff] }
  0x1e   : > { %207 = vst [vmem:[%s1358_s26 + $0xe0] sm:$0xff] %v206_v28  ;;  %209 = vst [vmem:[%s1358_s26 + $0xe8] sm:$0xff] %v208_v29  ;;  %v212_v31 = vld [vmem:[%s1353_s25 + $0x178] sm:$0xff]  ;;  %v214_v32 = vld [vmem:[%s1353_s25 + $0x200] sm:$0xff] }
  0x1f   : > { %211 = vst [vmem:[%s1358_s26 + $0xf0] sm:$0xff] %v210_v30  ;;  %213 = vst [vmem:[%s1358_s26 + $0xf8] sm:$0xff] %v212_v31  ;;  %v216_v33 = vld [vmem:[%s1353_s25 + $0x208] sm:$0xff]  ;;  %v218_v34 = vld [vmem:[%s1353_s25 + $0x210] sm:$0xff] }
  0x20   : > { %215 = vst [vmem:[%s1358_s26 + $0x100] sm:$0xff] %v214_v32  ;;  %v220_v35 = vld [vmem:[%s1353_s25 + $0x218] sm:$0xff]  ;;  %217 = vst [vmem:[%s1358_s26 + $0x108] sm:$0xff] %v216_v33  ;;  %v222_v36 = vld [vmem:[%s1353_s25 + $0x220] sm:$0xff] }
  0x21   : > { %219 = vst [vmem:[%s1358_s26 + $0x110] sm:$0xff] %v218_v34  ;;  %221 = vst [vmem:[%s1358_s26 + $0x118] sm:$0xff] %v220_v35  ;;  %v224_v37 = vld [vmem:[%s1353_s25 + $0x228] sm:$0xff]  ;;  %v226_v38 = vld [vmem:[%s1353_s25 + $0x230] sm:$0xff] }
  0x22   : > { %223 = vst [vmem:[%s1358_s26 + $0x120] sm:$0xff] %v222_v36  ;;  %225 = vst [vmem:[%s1358_s26 + $0x128] sm:$0xff] %v224_v37  ;;  %v228_v39 = vld [vmem:[%s1353_s25 + $0x238] sm:$0xff]  ;;  %v230_v40 = vld [vmem:[%s1353_s25 + $0x240] sm:$0xff] }
  0x23   : > { %227 = vst [vmem:[%s1358_s26 + $0x130] sm:$0xff] %v226_v38  ;;  %v232_v41 = vld [vmem:[%s1353_s25 + $0x248] sm:$0xff]  ;;  %229 = vst [vmem:[%s1358_s26 + $0x138] sm:$0xff] %v228_v39  ;;  %v234_v42 = vld [vmem:[%s1353_s25 + $0x250] sm:$0xff] }
  0x24   : > { %231 = vst [vmem:[%s1358_s26 + $0x140] sm:$0xff] %v230_v40  ;;  %233 = vst [vmem:[%s1358_s26 + $0x148] sm:$0xff] %v232_v41  ;;  %v236_v43 = vld [vmem:[%s1353_s25 + $0x258] sm:$0xff]  ;;  %v238_v44 = vld [vmem:[%s1353_s25 + $0x260] sm:$0xff] }
  0x25   : > { %235 = vst [vmem:[%s1358_s26 + $0x150] sm:$0xff] %v234_v42  ;;  %237 = vst [vmem:[%s1358_s26 + $0x158] sm:$0xff] %v236_v43  ;;  %v240_v45 = vld [vmem:[%s1353_s25 + $0x268] sm:$0xff]  ;;  %v242_v46 = vld [vmem:[%s1353_s25 + $0x270] sm:$0xff] }
  0x26   : > { %239 = vst [vmem:[%s1358_s26 + $0x160] sm:$0xff] %v238_v44  ;;  %v244_v47 = vld [vmem:[%s1353_s25 + $0x278] sm:$0xff]  ;;  %241 = vst [vmem:[%s1358_s26 + $0x168] sm:$0xff] %v240_v45  ;;  %v246_v48 = vld [vmem:[%s1353_s25 + $0x300] sm:$0xff] }
  0x27   : > { %243 = vst [vmem:[%s1358_s26 + $0x170] sm:$0xff] %v242_v46  ;;  %245 = vst [vmem:[%s1358_s26 + $0x178] sm:$0xff] %v244_v47  ;;  %v248_v49 = vld [vmem:[%s1353_s25 + $0x308] sm:$0xff]  ;;  %v250_v50 = vld [vmem:[%s1353_s25 + $0x310] sm:$0xff] }
  0x28   : > { %247 = vst [vmem:[%s1358_s26 + $0x180] sm:$0xff] %v246_v48  ;;  %249 = vst [vmem:[%s1358_s26 + $0x188] sm:$0xff] %v248_v49  ;;  %v252_v51 = vld [vmem:[%s1353_s25 + $0x318] sm:$0xff]  ;;  %v254_v52 = vld [vmem:[%s1353_s25 + $0x320] sm:$0xff] }
  0x29   : > { %251 = vst [vmem:[%s1358_s26 + $0x190] sm:$0xff] %v250_v50  ;;  %v256_v53 = vld [vmem:[%s1353_s25 + $0x328] sm:$0xff]  ;;  %253 = vst [vmem:[%s1358_s26 + $0x198] sm:$0xff] %v252_v51  ;;  %v258_v54 = vld [vmem:[%s1353_s25 + $0x330] sm:$0xff] }
  0x2a   : > { %255 = vst [vmem:[%s1358_s26 + $0x1a0] sm:$0xff] %v254_v52  ;;  %257 = vst [vmem:[%s1358_s26 + $0x1a8] sm:$0xff] %v256_v53  ;;  %v260_v55 = vld [vmem:[%s1353_s25 + $0x338] sm:$0xff]  ;;  %v262_v56 = vld [vmem:[%s1353_s25 + $0x340] sm:$0xff] }
  0x2b   : > { %259 = vst [vmem:[%s1358_s26 + $0x1b0] sm:$0xff] %v258_v54  ;;  %261 = vst [vmem:[%s1358_s26 + $0x1b8] sm:$0xff] %v260_v55  ;;  %v264_v57 = vld [vmem:[%s1353_s25 + $0x348] sm:$0xff]  ;;  %v266_v58 = vld [vmem:[%s1353_s25 + $0x350] sm:$0xff] }
  0x2c   : > { %263 = vst [vmem:[%s1358_s26 + $0x1c0] sm:$0xff] %v262_v56  ;;  %v268_v59 = vld [vmem:[%s1353_s25 + $0x358] sm:$0xff]  ;;  %265 = vst [vmem:[%s1358_s26 + $0x1c8] sm:$0xff] %v264_v57  ;;  %v270_v60 = vld [vmem:[%s1353_s25 + $0x360] sm:$0xff] }
  0x2d   : > { %267 = vst [vmem:[%s1358_s26 + $0x1d0] sm:$0xff] %v266_v58  ;;  %269 = vst [vmem:[%s1358_s26 + $0x1d8] sm:$0xff] %v268_v59  ;;  %v272_v61 = vld [vmem:[%s1353_s25 + $0x368] sm:$0xff]  ;;  %v274_v62 = vld [vmem:[%s1353_s25 + $0x370] sm:$0xff] }
  0x2e   : > { %271 = vst [vmem:[%s1358_s26 + $0x1e0] sm:$0xff] %v270_v60  ;;  %273 = vst [vmem:[%s1358_s26 + $0x1e8] sm:$0xff] %v272_v61  ;;  %v276_v63 = vld [vmem:[%s1353_s25 + $0x378] sm:$0xff] }
  0x2f   : > { %275 = vst [vmem:[%s1358_s26 + $0x1f0] sm:$0xff] %v274_v62  ;;  %277 = vst [vmem:[%s1358_s26 + $0x1f8] sm:$0xff] %v276_v63 }
  0x30 PF: > { %p1167_p5 = scmp.ge.s32.totalorder %s1295_s14, 1  ;;  %p282_p6 = scmp.lt.s32.totalorder %s1295_s14, 3 }
  0x32   : > { %p283_p7 = pnand %p1167_p5, %p282_p6 }
  0x33   : > { %s289_s27 = sand.u32 (!%p283_p7), 1, %s1287_s12   ;;  %s1169_s7 = sshll.u32 (!%p283_p7), %s1160_s15, 4 }
  0x34   : > { %286 = sbr.rel (%p283_p7) target bundleno = 333 (0x14d), region = 51  ;;  %s1168_s28 = sshll.u32 (!%p283_p7), %s289_s27, 9 }
  0x35   : > { %s1493_s4 = scalar_lea.vmem (!%p283_p7), [#allocation2], %s1168_s28  ;;  %p314_p8 = scmp.lt.s32.totalorder (!%p283_p7), %s1169_s7, 31 }
  0x39   : > { %v1297_v0 = vmov 0.0   ;;  %v384_v1 = vld [vmem:[%s1634_s2] sm:$0xf]  ;;  %v1298_v2 = vmov 0   ;;  %v369_v3 = vld [vmem:[%s1493_s4 + $0x188] sm:$0xff]  ;;  %v371_v4 = vld [vmem:[%s1493_s4 + $0x198] sm:$0xff] }
  0x3a   : > { %458 = vmatprep.mubr.f32.mxu0 %v1297_v0  ;;  %529 = vmatprep.mubr.f32.mxu1 %v1297_v0  ;;  %v368_v5 = vld [vmem:[%s1493_s4 + $0x180] sm:$0xff]  ;;  %v370_v6 = vld [vmem:[%s1493_s4 + $0x190] sm:$0xff]  ;;  %v353_v7 = vld [vmem:[%s1493_s4 + $0x108] sm:$0xff]  ;;  %vm390_vm0 = vcmask 261120   ;;  %s1640_s7 = smov (!%p314_p8, %s1169_s7), 31 }
  0x3b   : > { %1208 = vset.pattern.permute.xlu0 %v1298_v2  ;;  %418 = vmatprep.subr.mxu0 %v369_v3  ;;  %v355_v8 = vld [vmem:[%s1493_s4 + $0x118] sm:$0xff]  ;;  %v352_v9 = vld [vmem:[%s1493_s4 + $0x100] sm:$0xff]  ;;  %v354_v10 = vld [vmem:[%s1493_s4 + $0x110] sm:$0xff]  ;;  %s1170_s8 = sshll.u32 %s1640_s7, 2 }
  0x3c   : > { %387 = vperm.xlu0 %1208, %v384_v1   ;;  %489 = vmatprep.subr.mxu1 %v371_v4  ;;  %v337_v11 = vld [vmem:[%s1493_s4 + $0x88] sm:$0xff]  ;;  %v339_v12 = vld [vmem:[%s1493_s4 + $0x98] sm:$0xff]  ;;  %v336_v13 = vld [vmem:[%s1493_s4 + $0x80] sm:$0xff]  ;;  %s1612_s11 = scalar_lea.vmem %s1635_s3, %s1170_s8 }
  0x3d   : > { %419 = vmatpush1.msra.mxu0 %v368_v5  ;;  %490 = vmatpush1.msra.mxu1 %v370_v6  ;;  %v338_v14 = vld [vmem:[%s1493_s4 + $0x90] sm:$0xff]  ;;  %v321_v15 = vld [vmem:[%s1493_s4 + $0x8] sm:$0xff]  ;;  %v323_v16 = vld [vmem:[%s1493_s4 + $0x18] sm:$0xff] }
  0x3e   : > { %420 = vmatprep.subr.mxu0 %v353_v7  ;;  %491 = vmatprep.subr.mxu1 %v355_v8  ;;  %v320_v17 = vld [vmem:[%s1493_s4] sm:$0xff]  ;;  %v322_v18 = vld [vmem:[%s1493_s4 + $0x10] sm:$0xff]  ;;  %v373_v20 = vld [vmem:[%s1493_s4 + $0x1a8] sm:$0xff] }
  0x3f   : > { %421 = vmatpush1.msra.mxu0 %v352_v9  ;;  %492 = vmatpush1.msra.mxu1 %v354_v10  ;;  %v1514_v19 = vld [vmem:[%s1633_s1] sm:$0xf]  ;;  %v375_v21 = vld [vmem:[%s1493_s4 + $0x1b8] sm:$0xff]  ;;  %v374_v23 = vld [vmem:[%s1493_s4 + $0x1b0] sm:$0xff] }
  0x40   : > { %422 = vmatprep.subr.mxu0 %v337_v11  ;;  %493 = vmatprep.subr.mxu1 %v339_v12  ;;  %v372_v22 = vld [vmem:[%s1493_s4 + $0x1a0] sm:$0xff]  ;;  %v357_v24 = vld [vmem:[%s1493_s4 + $0x128] sm:$0xff]  ;;  %v359_v25 = vld [vmem:[%s1493_s4 + $0x138] sm:$0xff] }
  0x41   : > { %423 = vmatpush1.msra.mxu0 %v336_v13  ;;  %494 = vmatpush1.msra.mxu1 %v338_v14  ;;  %v356_v26 = vld [vmem:[%s1493_s4 + $0x120] sm:$0xff]  ;;  %v358_v27 = vld [vmem:[%s1493_s4 + $0x130] sm:$0xff]  ;;  %v341_v28 = vld [vmem:[%s1493_s4 + $0xa8] sm:$0xff] }
  0x42   : > { %424 = vmatprep.subr.mxu0 %v321_v15  ;;  %495 = vmatprep.subr.mxu1 %v323_v16  ;;  %v343_v29 = vld [vmem:[%s1493_s4 + $0xb8] sm:$0xff]  ;;  %v340_v30 = vld [vmem:[%s1493_s4 + $0xa0] sm:$0xff]  ;;  %v342_v31 = vld [vmem:[%s1493_s4 + $0xb0] sm:$0xff] }
  0x43   : > { %425 = vmatpush1.msra.mxu0 %v320_v17  ;;  %496 = vmatpush1.msra.mxu1 %v322_v18  ;;  %v325_v32 = vld [vmem:[%s1493_s4 + $0x28] sm:$0xff]  ;;  %v327_v33 = vld [vmem:[%s1493_s4 + $0x38] sm:$0xff]  ;;  %v324_v34 = vld [vmem:[%s1493_s4 + $0x20] sm:$0xff] }
  0x44   : > { %1171 = vmatmul.mubr.msk.f32.vlgmr.msra.gmra.mxu0 %vm390_vm0, %v1514_v19  ;;  %1172 = vmatmul.mubr.msk.f32.vlgmr.msra.gmra.mxu1 %vm390_vm0, %v1514_v19  ;;  %v326_v35 = vld [vmem:[%s1493_s4 + $0x30] sm:$0xff]  ;;  %v377_v36 = vld [vmem:[%s1493_s4 + $0x1c8] sm:$0xff]  ;;  %v379_v37 = vld [vmem:[%s1493_s4 + $0x1d8] sm:$0xff] }
  0x45   : > { %560 = vmatprep.subr.mxu0 %v373_v20  ;;  %631 = vmatprep.subr.mxu1 %v375_v21  ;;  %v376_v38 = vld [vmem:[%s1493_s4 + $0x1c0] sm:$0xff]  ;;  %v378_v39 = vld [vmem:[%s1493_s4 + $0x1d0] sm:$0xff]  ;;  %v361_v40 = vld [vmem:[%s1493_s4 + $0x148] sm:$0xff] }
  0x46   : > { %561 = vmatpush1.msra.mxu0 %v372_v22  ;;  %632 = vmatpush1.msra.mxu1 %v374_v23  ;;  %v363_v41 = vld [vmem:[%s1493_s4 + $0x158] sm:$0xff]  ;;  %v360_v42 = vld [vmem:[%s1493_s4 + $0x140] sm:$0xff]  ;;  %v362_v43 = vld [vmem:[%s1493_s4 + $0x150] sm:$0xff] }
  0x47   : > { %562 = vmatprep.subr.mxu0 %v357_v24  ;;  %633 = vmatprep.subr.mxu1 %v359_v25  ;;  %v345_v44 = vld [vmem:[%s1493_s4 + $0xc8] sm:$0xff]  ;;  %v347_v45 = vld [vmem:[%s1493_s4 + $0xd8] sm:$0xff]  ;;  %v344_v46 = vld [vmem:[%s1493_s4 + $0xc0] sm:$0xff] }
  0x48   : > { %563 = vmatpush1.msra.mxu0 %v356_v26  ;;  %634 = vmatpush1.msra.mxu1 %v358_v27  ;;  %v346_v47 = vld [vmem:[%s1493_s4 + $0xd0] sm:$0xff]  ;;  %v329_v48 = vld [vmem:[%s1493_s4 + $0x48] sm:$0xff]  ;;  %v331_v49 = vld [vmem:[%s1493_s4 + $0x58] sm:$0xff] }
  0x49   : > { %564 = vmatprep.subr.mxu0 %v341_v28  ;;  %635 = vmatprep.subr.mxu1 %v343_v29  ;;  %v328_v50 = vld [vmem:[%s1493_s4 + $0x40] sm:$0xff]  ;;  %v330_v51 = vld [vmem:[%s1493_s4 + $0x50] sm:$0xff]  ;;  %v381_v52 = vld [vmem:[%s1493_s4 + $0x1e8] sm:$0xff] }
  0x4a   : > { %565 = vmatpush1.msra.mxu0 %v340_v30  ;;  %636 = vmatpush1.msra.mxu1 %v342_v31  ;;  %v383_v53 = vld [vmem:[%s1493_s4 + $0x1f8] sm:$0xff]  ;;  %v380_v54 = vld [vmem:[%s1493_s4 + $0x1e0] sm:$0xff]  ;;  %v382_v55 = vld [vmem:[%s1493_s4 + $0x1f0] sm:$0xff] }
  0x4b   : > { %566 = vmatprep.subr.mxu0 %v325_v32  ;;  %637 = vmatprep.subr.mxu1 %v327_v33  ;;  %v365_v56 = vld [vmem:[%s1493_s4 + $0x168] sm:$0xff]  ;;  %v367_v57 = vld [vmem:[%s1493_s4 + $0x178] sm:$0xff]  ;;  %v364_v58 = vld [vmem:[%s1493_s4 + $0x160] sm:$0xff] }
  0x4c   : > { %567 = vmatpush1.msra.mxu0 %v324_v34  ;;  %600 = vmatprep.mubr.f32.mxu0 %v1297_v0  ;;  %v366_v59 = vld [vmem:[%s1493_s4 + $0x170] sm:$0xff]  ;;  %v349_v60 = vld [vmem:[%s1493_s4 + $0xe8] sm:$0xff]  ;;  %v351_v61 = vld [vmem:[%s1493_s4 + $0xf8] sm:$0xff] }
  0x4d   : > { %638 = vmatpush1.msra.mxu1 %v326_v35  ;;  %671 = vmatprep.mubr.f32.mxu1 %v1297_v0  ;;  %v348_v62 = vld [vmem:[%s1493_s4 + $0xe0] sm:$0xff]  ;;  %v350_v63 = vld [vmem:[%s1493_s4 + $0xf0] sm:$0xff]  ;;  %v333_v1 = vld [vmem:[%s1493_s4 + $0x68] sm:$0xff] }
  0x4e   : > { %1173 = vmatmul.mubr.msk.f32.vlgmr.msra.gmra.mxu0 %vm390_vm0, %v1514_v19  ;;  %1174 = vmatmul.mubr.msk.f32.vlgmr.msra.gmra.mxu1 %vm390_vm0, %v1514_v19  ;;  %v335_v2 = vld [vmem:[%s1493_s4 + $0x78] sm:$0xff]  ;;  %v332_v3 = vld [vmem:[%s1493_s4 + $0x60] sm:$0xff]  ;;  %v334_v4 = vld [vmem:[%s1493_s4 + $0x70] sm:$0xff] }
  0x4f   : > { %702 = vmatprep.subr.mxu0 %v377_v36  ;;  %773 = vmatprep.subr.mxu1 %v379_v37 }
  0x50   : > { %703 = vmatpush1.msra.mxu0 %v376_v38  ;;  %774 = vmatpush1.msra.mxu1 %v378_v39 }
  0x51   : > { %704 = vmatprep.subr.mxu0 %v361_v40  ;;  %775 = vmatprep.subr.mxu1 %v363_v41 }
  0x52   : > { %705 = vmatpush1.msra.mxu0 %v360_v42  ;;  %776 = vmatpush1.msra.mxu1 %v362_v43 }
  0x53   : > { %706 = vmatprep.subr.mxu0 %v345_v44  ;;  %777 = vmatprep.subr.mxu1 %v347_v45 }
  0x54   : > { %707 = vmatpush1.msra.mxu0 %v344_v46  ;;  %778 = vmatpush1.msra.mxu1 %v346_v47 }
  0x55   : > { %708 = vmatprep.subr.mxu0 %v329_v48  ;;  %779 = vmatprep.subr.mxu1 %v331_v49 }
  0x56   : > { %709 = vmatpush1.msra.mxu0 %v328_v50  ;;  %742 = vmatprep.mubr.f32.mxu0 %v1297_v0 }
  0x57   : > { %780 = vmatpush1.msra.mxu1 %v330_v51  ;;  %813 = vmatprep.mubr.f32.mxu1 %v1297_v0 }
  0x58   : > { %1175 = vmatmul.mubr.msk.f32.vlgmr.msra.gmra.mxu0 %vm390_vm0, %v1514_v19  ;;  %1176 = vmatmul.mubr.msk.f32.vlgmr.msra.gmra.mxu1 %vm390_vm0, %v1514_v19 }
  0x59   : > { %844 = vmatprep.subr.mxu0 %v381_v52  ;;  %915 = vmatprep.subr.mxu1 %v383_v53 }
  0x5a   : > { %845 = vmatpush1.msra.mxu0 %v380_v54  ;;  %916 = vmatpush1.msra.mxu1 %v382_v55 }
  0x5b   : > { %846 = vmatprep.subr.mxu0 %v365_v56  ;;  %917 = vmatprep.subr.mxu1 %v367_v57 }
  0x5c   : > { %847 = vmatpush1.msra.mxu0 %v364_v58  ;;  %918 = vmatpush1.msra.mxu1 %v366_v59 }
  0x5d   : > { %848 = vmatprep.subr.mxu0 %v349_v60  ;;  %919 = vmatprep.subr.mxu1 %v351_v61 }
  0x5e   : > { %849 = vmatpush1.msra.mxu0 %v348_v62  ;;  %920 = vmatpush1.msra.mxu1 %v350_v63 }
  0x5f   : > { %850 = vmatprep.subr.mxu0 %v333_v1  ;;  %921 = vmatprep.subr.mxu1 %v335_v2 }
  0x60   : > { %851 = vmatpush1.msra.mxu0 %v332_v3  ;;  %884 = vmatprep.mubr.f32.mxu0 %v1297_v0 }
  0x61   : > { %922 = vmatpush1.msra.mxu1 %v334_v4  ;;  %955 = vmatprep.mubr.f32.mxu1 %v1297_v0 }
  0x62   : > { %1177 = vmatmul.mubr.msk.f32.vlgmr.msra.gmra.mxu0 %vm390_vm0, %v1514_v19  ;;  %1178 = vmatmul.mubr.msk.f32.vlgmr.msra.gmra.mxu1 %vm390_vm0, %v1514_v19 }
  0xb7   : > { %v1586_v5 = vpop.permute.xlu0 %387 }
 0x104   : > { %v460_v6 = vpop.f32.mrf.mxu0  ;;  %v531_v7 = vpop.f32.mrf.mxu1 }
 0x105   : > { %v461_v8 = vadd.f32 %v460_v6, %v1586_v5  ;;  %v532_v9 = vadd.f32 %v531_v7, %v1586_v5 }
 0x106   : > { %v462_v10 = vpop.f32.mrf.mxu0  ;;  %v533_v11 = vpop.f32.mrf.mxu1 }
 0x107   : > { %v463_v12 = vadd.f32 %v462_v10, %v1586_v5  ;;  %v962_v13 = vsub.f32 0.0, %v461_v8  ;;  %v534_v0 = vadd.f32 %v533_v11, %v1586_v5  ;;  %v964_v14 = vsub.f32 0.0, %v532_v9 }
 0x109   : > { %v963_v15 = vsub.f32 0.0, %v463_v12  ;;  %v978_v16 = vmul.f32 1.442695, %v962_v13  ;;  %v965_v17 = vsub.f32 0.0, %v534_v0  ;;  %v982_v18 = vmul.f32 1.442695, %v964_v14 }
 0x10b   : > { %1209 = vpow2.f32 %v978_v16  ;;  %v980_v19 = vmul.f32 1.442695, %v963_v15  ;;  %v984_v20 = vmul.f32 1.442695, %v965_v17 }
 0x10c   : > { %1211 = vpow2.f32 %v982_v18 }
 0x10d   : > { %1213 = vpow2.f32 %v980_v19 }
 0x10e   : > { %1215 = vpow2.f32 %v984_v20  ;;  %v602_v21 = vpop.f32.mrf.mxu0  ;;  %v673_v22 = vpop.f32.mrf.mxu1 }
 0x10f   : > { %v603_v23 = vadd.f32 %v602_v21, %v1586_v5  ;;  %v674_v24 = vadd.f32 %v673_v22, %v1586_v5 }
 0x110   : > { %v604_v25 = vpop.f32.mrf.mxu0  ;;  %v675_v26 = vpop.f32.mrf.mxu1 }
 0x111   : > { %v966_v27 = vsub.f32 0.0, %v603_v23  ;;  %v968_v28 = vsub.f32 0.0, %v674_v24  ;;  %v605_v29 = vadd.f32 %v604_v25, %v1586_v5  ;;  %v676_v30 = vadd.f32 %v675_v26, %v1586_v5 }
 0x113   : > { %v986_v31 = vmul.f32 1.442695, %v966_v27  ;;  %v990_v32 = vmul.f32 1.442695, %v968_v28  ;;  %v967_v33 = vsub.f32 0.0, %v605_v29  ;;  %v969_v34 = vsub.f32 0.0, %v676_v30 }
 0x115   : > { %1217 = vpow2.f32 %v986_v31  ;;  %v988_v35 = vmul.f32 1.442695, %v967_v33  ;;  %v992_v36 = vmul.f32 1.442695, %v969_v34 }
 0x116   : > { %1219 = vpow2.f32 %v990_v32 }
 0x117   : > { %1221 = vpow2.f32 %v988_v35 }
 0x118   : > { %v1210_v37 = vpop.eup %1209  ;;  %1223 = vpow2.f32 %v992_v36  ;;  %v744_v38 = vpop.f32.mrf.mxu0 }
 0x119   : > { %v815_v39 = vpop.f32.mrf.mxu1  ;;  %v1212_v40 = vpop.eup %1211  ;;  %v1010_v41 = vadd.f32 1.0, %v1210_v37  ;;  %v745_v42 = vadd.f32 %v744_v38, %v1586_v5 }
 0x11a   : > { %v816_v43 = vadd.f32 %v815_v39, %v1586_v5  ;;  %v1214_v44 = vpop.eup %1213  ;;  %v1012_v45 = vadd.f32 1.0, %v1212_v40  ;;  %v746_v46 = vpop.f32.mrf.mxu0 }
 0x11b   : > { %v817_v47 = vpop.f32.mrf.mxu1  ;;  %v1216_v48 = vpop.eup %1215  ;;  %v1011_v49 = vadd.f32 1.0, %v1214_v44  ;;  %1225 = vrcp.f32 %v1010_v41  ;;  %v970_v50 = vsub.f32 0.0, %v745_v42  ;;  %v747_v53 = vadd.f32 %v746_v46, %v1586_v5 }
 0x11c   : > { %v972_v51 = vsub.f32 0.0, %v816_v43  ;;  %v1013_v52 = vadd.f32 1.0, %v1216_v48  ;;  %1227 = vrcp.f32 %v1012_v45  ;;  %v818_v54 = vadd.f32 %v817_v47, %v1586_v5 }
 0x11d   : > { %1229 = vrcp.f32 %v1011_v49  ;;  %v994_v55 = vmul.f32 1.442695, %v970_v50  ;;  %v971_v57 = vsub.f32 0.0, %v747_v53 }
 0x11e   : > { %v998_v56 = vmul.f32 1.442695, %v972_v51  ;;  %1231 = vrcp.f32 %v1013_v52  ;;  %v973_v58 = vsub.f32 0.0, %v818_v54 }
 0x11f   : > { %1233 = vpow2.f32 %v994_v55  ;;  %v996_v59 = vmul.f32 1.442695, %v971_v57 }
 0x120   : > { %1235 = vpow2.f32 %v998_v56  ;;  %v1000_v60 = vmul.f32 1.442695, %v973_v58 }
 0x121   : > { %1237 = vpow2.f32 %v996_v59 }
 0x122   : > { %v1218_v61 = vpop.eup %1217  ;;  %v886_v62 = vpop.f32.mrf.mxu0  ;;  %1239 = vpow2.f32 %v1000_v60 }
 0x123   : > { %v957_v63 = vpop.f32.mrf.mxu1  ;;  %v1220_v1 = vpop.eup %1219  ;;  %v1014_v2 = vadd.f32 1.0, %v1218_v61  ;;  %v887_v3 = vadd.f32 %v886_v62, %v1586_v5 }
 0x124   : > { %v958_v4 = vadd.f32 %v957_v63, %v1586_v5  ;;  %v1222_v6 = vpop.eup %1221  ;;  %v1016_v7 = vadd.f32 1.0, %v1220_v1  ;;  %v888_v8 = vpop.f32.mrf.mxu0 }
 0x125   : > { %v959_v9 = vpop.f32.mrf.mxu1  ;;  %v1224_v10 = vpop.eup %1223  ;;  %1241 = vrcp.f32 %v1014_v2  ;;  %v1015_v11 = vadd.f32 1.0, %v1222_v6  ;;  %v974_v12 = vsub.f32 0.0, %v887_v3  ;;  %v889_v14 = vadd.f32 %v888_v8, %v1586_v5 }
 0x126   : > { %v976_v13 = vsub.f32 0.0, %v958_v4  ;;  %1243 = vrcp.f32 %v1016_v7  ;;  %v1017_v0 = vadd.f32 1.0, %v1224_v10  ;;  %v960_v15 = vadd.f32 %v959_v9, %v1586_v5 }
 0x127   : > { %1245 = vrcp.f32 %v1015_v11  ;;  %v1002_v16 = vmul.f32 1.442695, %v974_v12  ;;  %v975_v19 = vsub.f32 0.0, %v889_v14 }
 0x128   : > { %v1006_v17 = vmul.f32 1.442695, %v976_v13  ;;  %v1226_v18 = vpop.eup %1225  ;;  %1247 = vrcp.f32 %v1017_v0  ;;  %v977_v20 = vsub.f32 0.0, %v960_v15 }
 0x129   : > { %v1228_v21 = vpop.eup %1227  ;;  %1249 = vpow2.f32 %v1002_v16  ;;  %v1004_v5 = vmul.f32 1.442695, %v975_v19 }
 0x12a   : > { %v1230_v22 = vpop.eup %1229  ;;  %1251 = vpow2.f32 %v1006_v17  ;;  %v1008_v23 = vmul.f32 1.442695, %v977_v20 }
 0x12b   : > { %v1232_v24 = vpop.eup %1231  ;;  %v1074_v25 = vcombine.low %v1226_v18, %v1230_v22  ;;  %1253 = vpow2.f32 %v1004_v5 }
 0x12c   : > { %v1234_v26 = vpop.eup %1233  ;;  %v1075_v27 = vcombine.low %v1228_v21, %v1232_v24  ;;  %1255 = vpow2.f32 %v1008_v23 }
 0x12d   : > { %v1236_v28 = vpop.eup %1235  ;;  %1090 = vst [vmem:[%s1612_s11] sm:$0xff] %v1074_v25  ;;  %v1018_v29 = vadd.f32 1.0, %v1234_v26 }
 0x12e   : > { %1091 = vst [vmem:[%s1612_s11 + $0x8] sm:$0xff] %v1075_v27  ;;  %v1020_v30 = vadd.f32 1.0, %v1236_v28  ;;  %v1238_v31 = vpop.eup %1237 }
 0x12f   : > { %v1240_v32 = vpop.eup %1239  ;;  %1257 = vrcp.f32 %v1018_v29  ;;  %v1019_v33 = vadd.f32 1.0, %v1238_v31 }
 0x130   : > { %1259 = vrcp.f32 %v1020_v30  ;;  %v1021_v34 = vadd.f32 1.0, %v1240_v32 }
 0x131   : > { %1261 = vrcp.f32 %v1019_v33 }
 0x132   : > { %v1242_v35 = vpop.eup %1241  ;;  %1263 = vrcp.f32 %v1021_v34 }
 0x133   : > { %v1244_v36 = vpop.eup %1243 }
 0x134   : > { %v1246_v37 = vpop.eup %1245 }
 0x135   : > { %v1248_v38 = vpop.eup %1247  ;;  %v1076_v39 = vcombine.low %v1242_v35, %v1246_v37 }
 0x136   : > { %v1250_v40 = vpop.eup %1249  ;;  %v1077_v41 = vcombine.low %v1244_v36, %v1248_v38 }
 0x137   : > { %v1252_v42 = vpop.eup %1251  ;;  %1092 = vst [vmem:[%s1612_s11 + $0x10] sm:$0xff] %v1076_v39  ;;  %v1022_v43 = vadd.f32 1.0, %v1250_v40 }
 0x138   : > { %1093 = vst [vmem:[%s1612_s11 + $0x18] sm:$0xff] %v1077_v41  ;;  %v1024_v44 = vadd.f32 1.0, %v1252_v42  ;;  %v1254_v45 = vpop.eup %1253 }
 0x139   : > { %v1256_v46 = vpop.eup %1255  ;;  %1265 = vrcp.f32 %v1022_v43  ;;  %v1023_v47 = vadd.f32 1.0, %v1254_v45 }
 0x13a   : > { %1267 = vrcp.f32 %v1024_v44  ;;  %v1025_v48 = vadd.f32 1.0, %v1256_v46 }
 0x13b   : > { %1269 = vrcp.f32 %v1023_v47 }
 0x13c   : > { %v1258_v49 = vpop.eup %1257  ;;  %1271 = vrcp.f32 %v1025_v48 }
 0x13d   : > { %v1260_v50 = vpop.eup %1259 }
 0x13e   : > { %v1262_v51 = vpop.eup %1261 }
 0x13f   : > { %v1264_v52 = vpop.eup %1263  ;;  %v1078_v53 = vcombine.low %v1258_v49, %v1262_v51 }
 0x140   : > { %v1079_v54 = vcombine.low %v1260_v50, %v1264_v52 }
 0x141   : > { %1094 = vst [vmem:[%s1612_s11 + $0x20] sm:$0xff] %v1078_v53 }
 0x142   : > { %1095 = vst [vmem:[%s1612_s11 + $0x28] sm:$0xff] %v1079_v54 }
 0x146   : > { %v1266_v55 = vpop.eup %1265 }
 0x147   : > { %v1268_v56 = vpop.eup %1267 }
 0x148   : > { %v1270_v57 = vpop.eup %1269 }
 0x149   : > { %v1272_v58 = vpop.eup %1271  ;;  %v1080_v59 = vcombine.low %v1266_v55, %v1270_v57 }
 0x14a   : > { %v1081_v60 = vcombine.low %v1268_v56, %v1272_v58 }
 0x14b   : > { %1096 = vst [vmem:[%s1612_s11 + $0x30] sm:$0xff] %v1080_v59 }
 0x14c   : > { %1097 = vst [vmem:[%s1612_s11 + $0x38] sm:$0xff] %v1081_v60 }
 0x14d PF: > { %p10_p9 = scmp.ge.s32.totalorder %s1336_s16, 4   ;;  %s1636_s12 = smov %s1291_s13 }
 0x14e   : > { %s1637_s13 = smov %s1345_s19  ;;  %s1638_s14 = smov %s1336_s16 }
 0x14f   :  { %12 = sbr.rel (!%p10_p9) target bundleno = 2 (0x2), region = 90 }

</bundles_post_ra>
